<compile_context>
chip_gen: v7x
topology: tpu7x:2x2x1
jax: 0.10.0
libtpu: 0.0.40
codegen_flags: <defaults>
</compile_context>

<pallas_src>
import jax
import jax.numpy as jnp
from jax.experimental import pallas as pl
from jax.experimental.pallas import tpu as pltpu

# Keep f32 matmuls at full precision (kernel + pure-JAX reference) so the
# 1e-4 comparison is never at the mercy of the backend's default bf16 passes.
jax.config.update("jax_default_matmul_precision", "highest")


# ---------------------------------------------------------------- kernel ----

def _cell_update(gates, c_prev, Hh):
    """LSTM cell update.

    Gate columns are pre-permuted to [i | f | o | g] and the i/f/o weight/bias
    columns are pre-scaled by 0.5 in prepare_params, so
        sigmoid(z) == 0.5 * tanh(z / 2) + 0.5
    collapses all three sigmoids + the g-tanh into ONE tanh over 4H lanes.
    """
    t = jnp.tanh(gates)                      # single EUP pass over all gates
    i = 0.5 * t[:, :Hh] + 0.5
    f = 0.5 * t[:, Hh:2 * Hh] + 0.5
    o = 0.5 * t[:, 2 * Hh:3 * Hh] + 0.5
    gg = t[:, 3 * Hh:]
    c_new = f * c_prev + i * gg
    h_new = o * jnp.tanh(c_new)
    return h_new, c_new


def fused_model_kernel(x_ref, wk_ref, bias_ref, ws_ref, out_ref):
    B, T, DIN = x_ref.shape
    H = wk_ref.shape[0]                      # 32
    HO = out_ref.shape[1]                    # 6
    LB = 4 * H                               # 128-lane block width of the slabs
    f32 = jnp.float32

    # ---- unpack the packed weight slabs (static, lane-aligned slices) ------
    whh1 = wk_ref[:, 0:LB]                       # (H, 4H)   lstm_1 recurrent (gate-scaled)
    w2f  = wk_ref[:, LB:3 * LB]                  # (H, 2*4H) fused [W_e_h | pad | cell W_hh]
    wec  = wk_ref[:, 3 * LB:3 * LB + H]          # (H, H)    W_e c-half
    cwih = wk_ref[:, 4 * LB:5 * LB]              # (H, 4H)   cell input (gate-scaled)
    wbT  = wk_ref[:, 5 * LB:5 * LB + H]          # (H, H)    W_b^T
    wih2 = wk_ref[:, 6 * LB:6 * LB + 4 * HO]     # (H, 4HO)  lstm_2 input (gate-scaled)

    b1   = bias_ref[:, 0:LB]                     # (1, 4H)
    cb   = bias_ref[:, LB:2 * LB]                # (1, 4H)
    batt = bias_ref[:, 2 * LB:2 * LB + H]        # (1, H)    b_b + b_e folded
    vb   = bias_ref[:, 3 * LB:3 * LB + H]        # (1, H)
    b2   = bias_ref[:, 4 * LB:4 * LB + 4 * HO]   # (1, 4HO)
    blr  = bias_ref[:, 5 * LB:5 * LB + HO]       # (1, HO)

    wih1 = ws_ref[:, 0:LB]                       # (DIN, 4H)
    whh2 = ws_ref[:, LB:LB + 4 * HO]             # (HO, 4HO) lstm_2 recurrent (gate-scaled)
    wlr  = ws_ref[:, 2 * LB:2 * LB + HO]         # (HO, HO)

    def dot(a, b):
        return jnp.dot(a, b, preferred_element_type=f32)

    # ------------- phase 1: nn.LSTM(DIN, H) + fused ReLU --------------------
    # carry-independent input projection, hoisted off the recurrence
    gx1 = [dot(x_ref[i], wih1) + b1 for i in range(B)]           # B x (T, 4H)
    gx1_t = [jnp.concatenate([gx1[i][t:t + 1, :] for i in range(B)], axis=0)
             for t in range(T)]                                  # T x (B, 4H)

    h = jnp.zeros((B, H), f32)
    c = jnp.zeros((B, H), f32)
    hs = []
    for t in range(T):                                           # fully unrolled
        g = gx1_t[t] + dot(h, whh1)
        h, c = _cell_update(g, c, H)
        hs.append(jnp.maximum(h, 0.0))                           # fused ReLU

    # re-pack phase-1 output per batch element (values only, no VMEM scratch)
    seq1 = [jnp.concatenate([hs[t][i:i + 1, :] for t in range(T)], axis=0)
            for i in range(B)]                                   # B x (T, H)

    # ------------- phase 2: attention + LSTMCell (serial over batch) --------
    # hoisted, carry-independent: relu(out1) @ W_b^T + (b_b + b_e)
    bts = [dot(seq1[i], wbT) + batt for i in range(B)]           # B x (T, H)

    h2 = jnp.zeros((T, H), f32)
    c2 = jnp.zeros((T, H), f32)
    outs2 = []
    for i in range(B):                                           # fully unrolled
        xi = seq1[i]
        r = dot(h2, w2f)                 # ONE MXU push feeds both h2 consumers
        a = r[:, :H] + dot(c2, wec) + bts[i]
        score = jnp.sum(jnp.tanh(a) * vb, axis=1, keepdims=True)         # (T, 1)
        score = score - jnp.max(score, axis=0, keepdims=True)
        e = jnp.exp(score)
        w = e * pl.reciprocal(jnp.sum(e, axis=0, keepdims=True))         # exact softmax(dim=0)
        weight = w * xi                                                   # (T, H)
        g = dot(weight, cwih) + r[:, LB:] + cb
        h2, c2 = _cell_update(g, c2, H)
        outs2.append(h2)

    # ------------- phase 3: nn.LSTM(H, HO) + ReLU + Linear + sigmoid --------
    gx2 = [dot(outs2[i], wih2) + b2 for i in range(B)]           # B x (T, 4HO)
    gx2_t = [jnp.concatenate([gx2[i][t:t + 1, :] for i in range(B)], axis=0)
             for t in range(T)]                                  # T x (B, 4HO)

    h3 = jnp.zeros((B, HO), f32)
    c3 = jnp.zeros((B, HO), f32)
    for t in range(T):
        g = gx2_t[t] + dot(h3, whh2)
        h3, c3 = _cell_update(g, c3, HO)

    y = dot(jnp.maximum(h3, 0.0), wlr) + blr
    out_ref[...] = 0.5 * jnp.tanh(0.5 * y) + 0.5                 # sigmoid via one tanh


# ------------------------------------------------ one-time param packing ----

def _perm_gate_rows(w, Hh):
    """PyTorch gate order along dim 0 is [i, f, g, o]; reorder to [i, f, o, g]."""
    return jnp.concatenate([w[:2 * Hh], w[3 * Hh:4 * Hh], w[2 * Hh:3 * Hh]], axis=0)


def _gate_scale(Hh, dtype=jnp.float32):
    # 0.5 on the i/f/o blocks folds the sigmoid->tanh rewrite into the weights.
    return jnp.concatenate([jnp.full((3 * Hh,), 0.5, dtype),
                            jnp.ones((Hh,), dtype)], axis=0)


def _prep_gate_weight(w, Hh):
    """(4H, K) torch weight -> (K, 4H) RHS, gate cols [i|f|o|g], i/f/o * 0.5."""
    w = _perm_gate_rows(w, Hh) * _gate_scale(Hh, w.dtype)[:, None]
    return w.T


def _prep_gate_bias(bih, bhh, Hh):
    b = _perm_gate_rows(bih + bhh, Hh) * _gate_scale(Hh)
    return b.reshape(1, 4 * Hh)


def _pad_lanes(a, n):
    return jnp.pad(a, ((0, 0), (0, n - a.shape[1])))


def prepare_params(p):
    """One-time preprocessing: gate permutation / transpose / bias folding /
    sigmoid->tanh 0.5 scaling / W_e split, packed into 3 lane-padded VMEM
    slabs.  Runs once, off the per-forward path."""
    H = p['W_hh1'].shape[1]
    HO = p['W_hh2'].shape[1]
    DIN = p['W_ih1'].shape[1]
    assert DIN == HO, "small-K slab packs the (DIN,*) and (HO,*) matrices together"
    LB = 4 * H

    whh1 = _prep_gate_weight(p['W_hh1'], H)
    wih1 = _prep_gate_weight(p['W_ih1'], H)
    b1 = _prep_gate_bias(p['b_ih1'], p['b_hh1'], H)

    cwih = _prep_gate_weight(p['W_ih_c'], H)
    cwhh = _prep_gate_weight(p['W_hh_c'], H)
    cb = _prep_gate_bias(p['b_ih_c'], p['b_hh_c'], H)

    wih2 = _prep_gate_weight(p['W_ih2'], HO)
    whh2 = _prep_gate_weight(p['W_hh2'], HO)
    b2 = _prep_gate_bias(p['b_ih2'], p['b_hh2'], HO)

    weh = p['W_e'][:, :H].T                       # W_e h-half
    wec = p['W_e'][:, H:].T                       # W_e c-half
    wbT = p['W_b'].T
    batt = (p['b_b'] + p['b_e']).reshape(1, H)    # fold the two attention biases
    vb = p['v_b'].reshape(1, H)
    wlr = p['W_lr'].T
    blr = p['b_lr'].reshape(1, HO)

    # Slab of every K=H RHS matrix, 128-lane blocks.  Blocks 1+2 form the fused
    # [W_e_h | pad | cell W_hh] RHS consumed by one h2 matmul in phase 2.
    slab_k = jnp.concatenate([
        whh1,                       # block 0
        _pad_lanes(weh, LB),        # block 1
        cwhh,                       # block 2
        _pad_lanes(wec, LB),        # block 3
        cwih,                       # block 4
        _pad_lanes(wbT, LB),        # block 5
        _pad_lanes(wih2, LB),       # block 6
    ], axis=1).astype(jnp.float32)

    slab_b = jnp.concatenate([
        b1, cb, _pad_lanes(batt, LB), _pad_lanes(vb, LB),
        _pad_lanes(b2, LB), _pad_lanes(blr, LB),
    ], axis=1).astype(jnp.float32)

    slab_s = jnp.concatenate([
        wih1, _pad_lanes(whh2, LB), _pad_lanes(wlr, LB),
    ], axis=1).astype(jnp.float32)

    return slab_k, slab_b, slab_s


# ---------------------------------------------------------------- wrapper ---

@jax.jit
def model_forward(x, slab_k, slab_b, slab_s):
    """x: (B, T, 6) float32 -> (B, 6) float32, matching model.forward."""
    B = x.shape[0]
    HO = 6      # hard-wired by the module: nn.LSTM(hidden, 6) / nn.Linear(6, 6)
    args = (x, slab_k, slab_b, slab_s)
    return pl.pallas_call(
        fused_model_kernel,
        out_shape=jax.ShapeDtypeStruct((B, HO), jnp.float32),
        in_specs=[pl.BlockSpec(memory_space=pltpu.MemorySpace.VMEM) for _ in args],
        out_specs=pl.BlockSpec(memory_space=pltpu.MemorySpace.VMEM),
    )(*args)


# --------------------------------------------------------- pure-JAX check ---

def _ref_lstm(x, Wih, Whh, bih, bhh):
    B, T, _ = x.shape
    H = Whh.shape[1]
    h = jnp.zeros((B, H), jnp.float32)
    c = jnp.zeros((B, H), jnp.float32)
    outs = []
    for t in range(T):
        g = x[:, t, :] @ Wih.T + bih + h @ Whh.T + bhh
        i = jax.nn.sigmoid(g[:, :H]); f = jax.nn.sigmoid(g[:, H:2 * H])
        gg = jnp.tanh(g[:, 2 * H:3 * H]); o = jax.nn.sigmoid(g[:, 3 * H:])
        c = f * c + i * gg
        h = o * jnp.tanh(c)
        outs.append(h)
    return jnp.stack(outs, axis=1)


def _ref_cell(x, h, c, Wih, Whh, bih, bhh):
    H = Whh.shape[1]
    g = x @ Wih.T + bih + h @ Whh.T + bhh
    i = jax.nn.sigmoid(g[:, :H]); f = jax.nn.sigmoid(g[:, H:2 * H])
    gg = jnp.tanh(g[:, 2 * H:3 * H]); o = jax.nn.sigmoid(g[:, 3 * H:])
    c = f * c + i * gg
    return o * jnp.tanh(c), c


@jax.jit
def model_reference(x, p):
    B, T, _ = x.shape
    H = p['W_hh1'].shape[1]
    out = _ref_lstm(x, p['W_ih1'], p['W_hh1'], p['b_ih1'], p['b_hh1'])
    out = jnp.maximum(out, 0.0)
    h = jnp.zeros((T, H), jnp.float32)
    c = jnp.zeros((T, H), jnp.float32)
    res = []
    for i in range(B):
        xi = out[i]
        hc = jnp.concatenate([h, c], axis=1)
        a = hc @ p['W_e'].T + p['b_e']
        b = xi @ p['W_b'].T + p['b_b']
        j = jnp.tanh(a + b) @ p['v_b'].T
        w = jax.nn.softmax(j, axis=0)
        h, c = _ref_cell(w * xi, h, c, p['W_ih_c'], p['W_hh_c'],
                         p['b_ih_c'], p['b_hh_c'])
        res.append(h)
    out = jnp.stack(res, axis=0)
    out = _ref_lstm(out, p['W_ih2'], p['W_hh2'], p['b_ih2'], p['b_hh2'])
    out = jnp.maximum(out, 0.0)
    out = jax.nn.sigmoid(out @ p['W_lr'].T + p['b_lr'])
    return out[:, -1, :]


# ------------------------------------------------------------------- main ---

if __name__ == "__main__":
    B, T, DIN, H = 2, 8, 6, 32
    key = jax.random.PRNGKey(0)
    ks = jax.random.split(key, 20)

    def u(k, shape, scale=0.2):
        return jax.random.uniform(k, shape, jnp.float32, -scale, scale)

    params = {
        # lstm (nn.LSTM(6, H, 1))
        'W_ih1': u(ks[0], (4 * H, DIN)), 'W_hh1': u(ks[1], (4 * H, H)),
        'b_ih1': u(ks[2], (4 * H,)),     'b_hh1': u(ks[3], (4 * H,)),
        # AttentionLayer
        'W_b': u(ks[4], (H, H)), 'b_b': u(ks[5], (H,)),
        'v_b': u(ks[6], (1, H)),
        'W_e': u(ks[7], (H, 2 * H)), 'b_e': u(ks[8], (H,)),
        # nn.LSTMCell(H, H)
        'W_ih_c': u(ks[9], (4 * H, H)),  'W_hh_c': u(ks[10], (4 * H, H)),
        'b_ih_c': u(ks[11], (4 * H,)),   'b_hh_c': u(ks[12], (4 * H,)),
        # lstm_2 (nn.LSTM(H, 6, 1))
        'W_ih2': u(ks[13], (4 * 6, H)),  'W_hh2': u(ks[14], (4 * 6, 6)),
        'b_ih2': u(ks[15], (4 * 6,)),    'b_hh2': u(ks[16], (4 * 6,)),
        # lr (nn.Linear(6, 6))
        'W_lr': u(ks[17], (6, 6)), 'b_lr': u(ks[18], (6,)),
    }

    x = jax.random.normal(ks[19], (B, T, DIN), jnp.float32)

    # one-time parameter packing (off the per-forward path)
    slab_k, slab_b, slab_s = jax.block_until_ready(prepare_params(params))

    out = jax.block_until_ready(model_forward(x, slab_k, slab_b, slab_s))
    ref = jax.block_until_ready(model_reference(x, params))

    assert out.shape == (B, 6), out.shape
    assert jnp.allclose(out, ref, atol=1e-4, rtol=1e-4), (out, ref)
    print("KERNEL_OK")
</pallas_src>

<mosaic_0001>
module attributes {stable_mosaic.version = 11 : i64} {
  func.func @fused_model_kernel(%arg0: memref<2x8x6xf32, #tpu.memory_space<vmem>>, %arg1: memref<32x896xf32, #tpu.memory_space<vmem>>, %arg2: memref<1x768xf32, #tpu.memory_space<vmem>>, %arg3: memref<6x384xf32, #tpu.memory_space<vmem>>, %arg4: memref<2x6xf32, #tpu.memory_space<vmem>>) attributes {dimension_semantics = [], scalar_prefetch = 0 : i64, scratch_operands = 0 : i64, tpu.core_type = #tpu.core_type<tc>} {
    %c0 = arith.constant 0 : index
    %c0_0 = arith.constant 0 : index
    %0 = vector.load %arg1[%c0, %c0_0] : memref<32x896xf32, #tpu.memory_space<vmem>>, vector<32x128xf32>
    %c0_1 = arith.constant 0 : index
    %c128 = arith.constant 128 : index
    %1 = vector.load %arg1[%c0_1, %c128] : memref<32x896xf32, #tpu.memory_space<vmem>>, vector<32x256xf32>
    %c0_2 = arith.constant 0 : index
    %c384 = arith.constant 384 : index
    %2 = vector.load %arg1[%c0_2, %c384] : memref<32x896xf32, #tpu.memory_space<vmem>>, vector<32x32xf32>
    %c0_3 = arith.constant 0 : index
    %c512 = arith.constant 512 : index
    %3 = vector.load %arg1[%c0_3, %c512] : memref<32x896xf32, #tpu.memory_space<vmem>>, vector<32x128xf32>
    %c0_4 = arith.constant 0 : index
    %c640 = arith.constant 640 : index
    %4 = vector.load %arg1[%c0_4, %c640] : memref<32x896xf32, #tpu.memory_space<vmem>>, vector<32x32xf32>
    %c0_5 = arith.constant 0 : index
    %c768 = arith.constant 768 : index
    %5 = vector.load %arg1[%c0_5, %c768] : memref<32x896xf32, #tpu.memory_space<vmem>>, vector<32x24xf32>
    %c0_6 = arith.constant 0 : index
    %c0_7 = arith.constant 0 : index
    %6 = vector.load %arg2[%c0_6, %c0_7] : memref<1x768xf32, #tpu.memory_space<vmem>>, vector<1x128xf32>
    %c0_8 = arith.constant 0 : index
    %c128_9 = arith.constant 128 : index
    %7 = vector.load %arg2[%c0_8, %c128_9] : memref<1x768xf32, #tpu.memory_space<vmem>>, vector<1x128xf32>
    %c0_10 = arith.constant 0 : index
    %c256 = arith.constant 256 : index
    %8 = vector.load %arg2[%c0_10, %c256] : memref<1x768xf32, #tpu.memory_space<vmem>>, vector<1x32xf32>
    %c0_11 = arith.constant 0 : index
    %c384_12 = arith.constant 384 : index
    %9 = vector.load %arg2[%c0_11, %c384_12] : memref<1x768xf32, #tpu.memory_space<vmem>>, vector<1x32xf32>
    %c0_13 = arith.constant 0 : index
    %c512_14 = arith.constant 512 : index
    %10 = vector.load %arg2[%c0_13, %c512_14] : memref<1x768xf32, #tpu.memory_space<vmem>>, vector<1x24xf32>
    %c0_15 = arith.constant 0 : index
    %c640_16 = arith.constant 640 : index
    %11 = vector.load %arg2[%c0_15, %c640_16] : memref<1x768xf32, #tpu.memory_space<vmem>>, vector<1x6xf32>
    %c0_17 = arith.constant 0 : index
    %c0_18 = arith.constant 0 : index
    %12 = vector.load %arg3[%c0_17, %c0_18] : memref<6x384xf32, #tpu.memory_space<vmem>>, vector<6x128xf32>
    %c0_19 = arith.constant 0 : index
    %c128_20 = arith.constant 128 : index
    %13 = vector.load %arg3[%c0_19, %c128_20] : memref<6x384xf32, #tpu.memory_space<vmem>>, vector<6x24xf32>
    %c0_21 = arith.constant 0 : index
    %c256_22 = arith.constant 256 : index
    %14 = vector.load %arg3[%c0_21, %c256_22] : memref<6x384xf32, #tpu.memory_space<vmem>>, vector<6x6xf32>
    %c0_23 = arith.constant 0 : index
    %c0_24 = arith.constant 0 : index
    %c0_25 = arith.constant 0 : index
    %15 = vector.load %arg0[%c0_23, %c0_24, %c0_25] : memref<2x8x6xf32, #tpu.memory_space<vmem>>, vector<1x8x6xf32>
    %16 = vector.shape_cast %15 : vector<1x8x6xf32> to vector<8x6xf32>
    %cst = arith.constant dense<0.000000e+00> : vector<8x128xf32>
    %17 = tpu.matmul %16, %12, %cst {dimension_numbers = #tpu.dot_dimension_numbers<[1], [0], [0], [1], [0, 0, 1, 1], [], []>, precision = #tpu.contract_precision<fp32>} : vector<8x6xf32>, vector<6x128xf32>, vector<8x128xf32> -> vector<8x128xf32>
    %18 = vector.broadcast %6 : vector<1x128xf32> to vector<8x128xf32>
    %19 = arith.addf %17, %18 : vector<8x128xf32>
    %c1 = arith.constant 1 : index
    %c0_26 = arith.constant 0 : index
    %c0_27 = arith.constant 0 : index
    %20 = vector.load %arg0[%c1, %c0_26, %c0_27] : memref<2x8x6xf32, #tpu.memory_space<vmem>>, vector<1x8x6xf32>
    %21 = vector.shape_cast %20 : vector<1x8x6xf32> to vector<8x6xf32>
    %cst_28 = arith.constant dense<0.000000e+00> : vector<8x128xf32>
    %22 = tpu.matmul %21, %12, %cst_28 {dimension_numbers = #tpu.dot_dimension_numbers<[1], [0], [0], [1], [0, 0, 1, 1], [], []>, precision = #tpu.contract_precision<fp32>} : vector<8x6xf32>, vector<6x128xf32>, vector<8x128xf32> -> vector<8x128xf32>
    %23 = vector.broadcast %6 : vector<1x128xf32> to vector<8x128xf32>
    %24 = arith.addf %22, %23 : vector<8x128xf32>
    %25 = vector.extract_strided_slice %19 {offsets = [0, 0], sizes = [1, 128], strides = [1, 1]} : vector<8x128xf32> to vector<1x128xf32>
    %26 = vector.extract_strided_slice %24 {offsets = [0, 0], sizes = [1, 128], strides = [1, 1]} : vector<8x128xf32> to vector<1x128xf32>
    %27 = tpu.concatenate %25, %26 in 0 : vector<1x128xf32>, vector<1x128xf32> -> vector<2x128xf32>
    %28 = vector.extract_strided_slice %19 {offsets = [1, 0], sizes = [1, 128], strides = [1, 1]} : vector<8x128xf32> to vector<1x128xf32>
    %29 = vector.extract_strided_slice %24 {offsets = [1, 0], sizes = [1, 128], strides = [1, 1]} : vector<8x128xf32> to vector<1x128xf32>
    %30 = tpu.concatenate %28, %29 in 0 : vector<1x128xf32>, vector<1x128xf32> -> vector<2x128xf32>
    %31 = vector.extract_strided_slice %19 {offsets = [2, 0], sizes = [1, 128], strides = [1, 1]} : vector<8x128xf32> to vector<1x128xf32>
    %32 = vector.extract_strided_slice %24 {offsets = [2, 0], sizes = [1, 128], strides = [1, 1]} : vector<8x128xf32> to vector<1x128xf32>
    %33 = tpu.concatenate %31, %32 in 0 : vector<1x128xf32>, vector<1x128xf32> -> vector<2x128xf32>
    %34 = vector.extract_strided_slice %19 {offsets = [3, 0], sizes = [1, 128], strides = [1, 1]} : vector<8x128xf32> to vector<1x128xf32>
    %35 = vector.extract_strided_slice %24 {offsets = [3, 0], sizes = [1, 128], strides = [1, 1]} : vector<8x128xf32> to vector<1x128xf32>
    %36 = tpu.concatenate %34, %35 in 0 : vector<1x128xf32>, vector<1x128xf32> -> vector<2x128xf32>
    %37 = vector.extract_strided_slice %19 {offsets = [4, 0], sizes = [1, 128], strides = [1, 1]} : vector<8x128xf32> to vector<1x128xf32>
    %38 = vector.extract_strided_slice %24 {offsets = [4, 0], sizes = [1, 128], strides = [1, 1]} : vector<8x128xf32> to vector<1x128xf32>
    %39 = tpu.concatenate %37, %38 in 0 : vector<1x128xf32>, vector<1x128xf32> -> vector<2x128xf32>
    %40 = vector.extract_strided_slice %19 {offsets = [5, 0], sizes = [1, 128], strides = [1, 1]} : vector<8x128xf32> to vector<1x128xf32>
    %41 = vector.extract_strided_slice %24 {offsets = [5, 0], sizes = [1, 128], strides = [1, 1]} : vector<8x128xf32> to vector<1x128xf32>
    %42 = tpu.concatenate %40, %41 in 0 : vector<1x128xf32>, vector<1x128xf32> -> vector<2x128xf32>
    %43 = vector.extract_strided_slice %19 {offsets = [6, 0], sizes = [1, 128], strides = [1, 1]} : vector<8x128xf32> to vector<1x128xf32>
    %44 = vector.extract_strided_slice %24 {offsets = [6, 0], sizes = [1, 128], strides = [1, 1]} : vector<8x128xf32> to vector<1x128xf32>
    %45 = tpu.concatenate %43, %44 in 0 : vector<1x128xf32>, vector<1x128xf32> -> vector<2x128xf32>
    %46 = vector.extract_strided_slice %19 {offsets = [7, 0], sizes = [1, 128], strides = [1, 1]} : vector<8x128xf32> to vector<1x128xf32>
    %47 = vector.extract_strided_slice %24 {offsets = [7, 0], sizes = [1, 128], strides = [1, 1]} : vector<8x128xf32> to vector<1x128xf32>
    %48 = tpu.concatenate %46, %47 in 0 : vector<1x128xf32>, vector<1x128xf32> -> vector<2x128xf32>
    %cst_29 = arith.constant 0.000000e+00 : f32
    %49 = vector.broadcast %cst_29 : f32 to vector<2x32xf32>
    %cst_30 = arith.constant 0.000000e+00 : f32
    %50 = vector.broadcast %cst_30 : f32 to vector<2x32xf32>
    %cst_31 = arith.constant dense<0.000000e+00> : vector<2x128xf32>
    %51 = tpu.matmul %49, %0, %cst_31 {dimension_numbers = #tpu.dot_dimension_numbers<[1], [0], [0], [1], [0, 0, 1, 1], [], []>, precision = #tpu.contract_precision<fp32>} : vector<2x32xf32>, vector<32x128xf32>, vector<2x128xf32> -> vector<2x128xf32>
    %52 = arith.addf %27, %51 : vector<2x128xf32>
    %53 = math.tanh %52 : vector<2x128xf32>
    %54 = vector.extract_strided_slice %53 {offsets = [0, 0], sizes = [2, 32], strides = [1, 1]} : vector<2x128xf32> to vector<2x32xf32>
    %cst_32 = arith.constant 5.000000e-01 : f32
    %55 = vector.broadcast %cst_32 : f32 to vector<2x32xf32>
    %56 = arith.mulf %55, %54 : vector<2x32xf32>
    %cst_33 = arith.constant 5.000000e-01 : f32
    %57 = vector.broadcast %cst_33 : f32 to vector<2x32xf32>
    %58 = arith.addf %56, %57 : vector<2x32xf32>
    %59 = vector.extract_strided_slice %53 {offsets = [0, 32], sizes = [2, 32], strides = [1, 1]} : vector<2x128xf32> to vector<2x32xf32>
    %cst_34 = arith.constant 5.000000e-01 : f32
    %60 = vector.broadcast %cst_34 : f32 to vector<2x32xf32>
    %61 = arith.mulf %60, %59 : vector<2x32xf32>
    %cst_35 = arith.constant 5.000000e-01 : f32
    %62 = vector.broadcast %cst_35 : f32 to vector<2x32xf32>
    %63 = arith.addf %61, %62 : vector<2x32xf32>
    %64 = vector.extract_strided_slice %53 {offsets = [0, 64], sizes = [2, 32], strides = [1, 1]} : vector<2x128xf32> to vector<2x32xf32>
    %cst_36 = arith.constant 5.000000e-01 : f32
    %65 = vector.broadcast %cst_36 : f32 to vector<2x32xf32>
    %66 = arith.mulf %65, %64 : vector<2x32xf32>
    %cst_37 = arith.constant 5.000000e-01 : f32
    %67 = vector.broadcast %cst_37 : f32 to vector<2x32xf32>
    %68 = arith.addf %66, %67 : vector<2x32xf32>
    %69 = vector.extract_strided_slice %53 {offsets = [0, 96], sizes = [2, 32], strides = [1, 1]} : vector<2x128xf32> to vector<2x32xf32>
    %70 = arith.mulf %63, %50 : vector<2x32xf32>
    %71 = arith.mulf %58, %69 : vector<2x32xf32>
    %72 = arith.addf %70, %71 : vector<2x32xf32>
    %73 = math.tanh %72 : vector<2x32xf32>
    %74 = arith.mulf %68, %73 : vector<2x32xf32>
    %cst_38 = arith.constant 0.000000e+00 : f32
    %75 = vector.broadcast %cst_38 : f32 to vector<2x32xf32>
    %76 = arith.maximumf %74, %75 : vector<2x32xf32>
    %cst_39 = arith.constant dense<0.000000e+00> : vector<2x128xf32>
    %77 = tpu.matmul %74, %0, %cst_39 {dimension_numbers = #tpu.dot_dimension_numbers<[1], [0], [0], [1], [0, 0, 1, 1], [], []>, precision = #tpu.contract_precision<fp32>} : vector<2x32xf32>, vector<32x128xf32>, vector<2x128xf32> -> vector<2x128xf32>
    %78 = arith.addf %30, %77 : vector<2x128xf32>
    %79 = math.tanh %78 : vector<2x128xf32>
    %80 = vector.extract_strided_slice %79 {offsets = [0, 0], sizes = [2, 32], strides = [1, 1]} : vector<2x128xf32> to vector<2x32xf32>
    %cst_40 = arith.constant 5.000000e-01 : f32
    %81 = vector.broadcast %cst_40 : f32 to vector<2x32xf32>
    %82 = arith.mulf %81, %80 : vector<2x32xf32>
    %cst_41 = arith.constant 5.000000e-01 : f32
    %83 = vector.broadcast %cst_41 : f32 to vector<2x32xf32>
    %84 = arith.addf %82, %83 : vector<2x32xf32>
    %85 = vector.extract_strided_slice %79 {offsets = [0, 32], sizes = [2, 32], strides = [1, 1]} : vector<2x128xf32> to vector<2x32xf32>
    %cst_42 = arith.constant 5.000000e-01 : f32
    %86 = vector.broadcast %cst_42 : f32 to vector<2x32xf32>
    %87 = arith.mulf %86, %85 : vector<2x32xf32>
    %cst_43 = arith.constant 5.000000e-01 : f32
    %88 = vector.broadcast %cst_43 : f32 to vector<2x32xf32>
    %89 = arith.addf %87, %88 : vector<2x32xf32>
    %90 = vector.extract_strided_slice %79 {offsets = [0, 64], sizes = [2, 32], strides = [1, 1]} : vector<2x128xf32> to vector<2x32xf32>
    %cst_44 = arith.constant 5.000000e-01 : f32
    %91 = vector.broadcast %cst_44 : f32 to vector<2x32xf32>
    %92 = arith.mulf %91, %90 : vector<2x32xf32>
    %cst_45 = arith.constant 5.000000e-01 : f32
    %93 = vector.broadcast %cst_45 : f32 to vector<2x32xf32>
    %94 = arith.addf %92, %93 : vector<2x32xf32>
    %95 = vector.extract_strided_slice %79 {offsets = [0, 96], sizes = [2, 32], strides = [1, 1]} : vector<2x128xf32> to vector<2x32xf32>
    %96 = arith.mulf %89, %72 : vector<2x32xf32>
    %97 = arith.mulf %84, %95 : vector<2x32xf32>
    %98 = arith.addf %96, %97 : vector<2x32xf32>
    %99 = math.tanh %98 : vector<2x32xf32>
    %100 = arith.mulf %94, %99 : vector<2x32xf32>
    %cst_46 = arith.constant 0.000000e+00 : f32
    %101 = vector.broadcast %cst_46 : f32 to vector<2x32xf32>
    %102 = arith.maximumf %100, %101 : vector<2x32xf32>
    %cst_47 = arith.constant dense<0.000000e+00> : vector<2x128xf32>
    %103 = tpu.matmul %100, %0, %cst_47 {dimension_numbers = #tpu.dot_dimension_numbers<[1], [0], [0], [1], [0, 0, 1, 1], [], []>, precision = #tpu.contract_precision<fp32>} : vector<2x32xf32>, vector<32x128xf32>, vector<2x128xf32> -> vector<2x128xf32>
    %104 = arith.addf %33, %103 : vector<2x128xf32>
    %105 = math.tanh %104 : vector<2x128xf32>
    %106 = vector.extract_strided_slice %105 {offsets = [0, 0], sizes = [2, 32], strides = [1, 1]} : vector<2x128xf32> to vector<2x32xf32>
    %cst_48 = arith.constant 5.000000e-01 : f32
    %107 = vector.broadcast %cst_48 : f32 to vector<2x32xf32>
    %108 = arith.mulf %107, %106 : vector<2x32xf32>
    %cst_49 = arith.constant 5.000000e-01 : f32
    %109 = vector.broadcast %cst_49 : f32 to vector<2x32xf32>
    %110 = arith.addf %108, %109 : vector<2x32xf32>
    %111 = vector.extract_strided_slice %105 {offsets = [0, 32], sizes = [2, 32], strides = [1, 1]} : vector<2x128xf32> to vector<2x32xf32>
    %cst_50 = arith.constant 5.000000e-01 : f32
    %112 = vector.broadcast %cst_50 : f32 to vector<2x32xf32>
    %113 = arith.mulf %112, %111 : vector<2x32xf32>
    %cst_51 = arith.constant 5.000000e-01 : f32
    %114 = vector.broadcast %cst_51 : f32 to vector<2x32xf32>
    %115 = arith.addf %113, %114 : vector<2x32xf32>
    %116 = vector.extract_strided_slice %105 {offsets = [0, 64], sizes = [2, 32], strides = [1, 1]} : vector<2x128xf32> to vector<2x32xf32>
    %cst_52 = arith.constant 5.000000e-01 : f32
    %117 = vector.broadcast %cst_52 : f32 to vector<2x32xf32>
    %118 = arith.mulf %117, %116 : vector<2x32xf32>
    %cst_53 = arith.constant 5.000000e-01 : f32
    %119 = vector.broadcast %cst_53 : f32 to vector<2x32xf32>
    %120 = arith.addf %118, %119 : vector<2x32xf32>
    %121 = vector.extract_strided_slice %105 {offsets = [0, 96], sizes = [2, 32], strides = [1, 1]} : vector<2x128xf32> to vector<2x32xf32>
    %122 = arith.mulf %115, %98 : vector<2x32xf32>
    %123 = arith.mulf %110, %121 : vector<2x32xf32>
    %124 = arith.addf %122, %123 : vector<2x32xf32>
    %125 = math.tanh %124 : vector<2x32xf32>
    %126 = arith.mulf %120, %125 : vector<2x32xf32>
    %cst_54 = arith.constant 0.000000e+00 : f32
    %127 = vector.broadcast %cst_54 : f32 to vector<2x32xf32>
    %128 = arith.maximumf %126, %127 : vector<2x32xf32>
    %cst_55 = arith.constant dense<0.000000e+00> : vector<2x128xf32>
    %129 = tpu.matmul %126, %0, %cst_55 {dimension_numbers = #tpu.dot_dimension_numbers<[1], [0], [0], [1], [0, 0, 1, 1], [], []>, precision = #tpu.contract_precision<fp32>} : vector<2x32xf32>, vector<32x128xf32>, vector<2x128xf32> -> vector<2x128xf32>
    %130 = arith.addf %36, %129 : vector<2x128xf32>
    %131 = math.tanh %130 : vector<2x128xf32>
    %132 = vector.extract_strided_slice %131 {offsets = [0, 0], sizes = [2, 32], strides = [1, 1]} : vector<2x128xf32> to vector<2x32xf32>
    %cst_56 = arith.constant 5.000000e-01 : f32
    %133 = vector.broadcast %cst_56 : f32 to vector<2x32xf32>
    %134 = arith.mulf %133, %132 : vector<2x32xf32>
    %cst_57 = arith.constant 5.000000e-01 : f32
    %135 = vector.broadcast %cst_57 : f32 to vector<2x32xf32>
    %136 = arith.addf %134, %135 : vector<2x32xf32>
    %137 = vector.extract_strided_slice %131 {offsets = [0, 32], sizes = [2, 32], strides = [1, 1]} : vector<2x128xf32> to vector<2x32xf32>
    %cst_58 = arith.constant 5.000000e-01 : f32
    %138 = vector.broadcast %cst_58 : f32 to vector<2x32xf32>
    %139 = arith.mulf %138, %137 : vector<2x32xf32>
    %cst_59 = arith.constant 5.000000e-01 : f32
    %140 = vector.broadcast %cst_59 : f32 to vector<2x32xf32>
    %141 = arith.addf %139, %140 : vector<2x32xf32>
    %142 = vector.extract_strided_slice %131 {offsets = [0, 64], sizes = [2, 32], strides = [1, 1]} : vector<2x128xf32> to vector<2x32xf32>
    %cst_60 = arith.constant 5.000000e-01 : f32
    %143 = vector.broadcast %cst_60 : f32 to vector<2x32xf32>
    %144 = arith.mulf %143, %142 : vector<2x32xf32>
    %cst_61 = arith.constant 5.000000e-01 : f32
    %145 = vector.broadcast %cst_61 : f32 to vector<2x32xf32>
    %146 = arith.addf %144, %145 : vector<2x32xf32>
    %147 = vector.extract_strided_slice %131 {offsets = [0, 96], sizes = [2, 32], strides = [1, 1]} : vector<2x128xf32> to vector<2x32xf32>
    %148 = arith.mulf %141, %124 : vector<2x32xf32>
    %149 = arith.mulf %136, %147 : vector<2x32xf32>
    %150 = arith.addf %148, %149 : vector<2x32xf32>
    %151 = math.tanh %150 : vector<2x32xf32>
    %152 = arith.mulf %146, %151 : vector<2x32xf32>
    %cst_62 = arith.constant 0.000000e+00 : f32
    %153 = vector.broadcast %cst_62 : f32 to vector<2x32xf32>
    %154 = arith.maximumf %152, %153 : vector<2x32xf32>
    %cst_63 = arith.constant dense<0.000000e+00> : vector<2x128xf32>
    %155 = tpu.matmul %152, %0, %cst_63 {dimension_numbers = #tpu.dot_dimension_numbers<[1], [0], [0], [1], [0, 0, 1, 1], [], []>, precision = #tpu.contract_precision<fp32>} : vector<2x32xf32>, vector<32x128xf32>, vector<2x128xf32> -> vector<2x128xf32>
    %156 = arith.addf %39, %155 : vector<2x128xf32>
    %157 = math.tanh %156 : vector<2x128xf32>
    %158 = vector.extract_strided_slice %157 {offsets = [0, 0], sizes = [2, 32], strides = [1, 1]} : vector<2x128xf32> to vector<2x32xf32>
    %cst_64 = arith.constant 5.000000e-01 : f32
    %159 = vector.broadcast %cst_64 : f32 to vector<2x32xf32>
    %160 = arith.mulf %159, %158 : vector<2x32xf32>
    %cst_65 = arith.constant 5.000000e-01 : f32
    %161 = vector.broadcast %cst_65 : f32 to vector<2x32xf32>
    %162 = arith.addf %160, %161 : vector<2x32xf32>
    %163 = vector.extract_strided_slice %157 {offsets = [0, 32], sizes = [2, 32], strides = [1, 1]} : vector<2x128xf32> to vector<2x32xf32>
    %cst_66 = arith.constant 5.000000e-01 : f32
    %164 = vector.broadcast %cst_66 : f32 to vector<2x32xf32>
    %165 = arith.mulf %164, %163 : vector<2x32xf32>
    %cst_67 = arith.constant 5.000000e-01 : f32
    %166 = vector.broadcast %cst_67 : f32 to vector<2x32xf32>
    %167 = arith.addf %165, %166 : vector<2x32xf32>
    %168 = vector.extract_strided_slice %157 {offsets = [0, 64], sizes = [2, 32], strides = [1, 1]} : vector<2x128xf32> to vector<2x32xf32>
    %cst_68 = arith.constant 5.000000e-01 : f32
    %169 = vector.broadcast %cst_68 : f32 to vector<2x32xf32>
    %170 = arith.mulf %169, %168 : vector<2x32xf32>
    %cst_69 = arith.constant 5.000000e-01 : f32
    %171 = vector.broadcast %cst_69 : f32 to vector<2x32xf32>
    %172 = arith.addf %170, %171 : vector<2x32xf32>
    %173 = vector.extract_strided_slice %157 {offsets = [0, 96], sizes = [2, 32], strides = [1, 1]} : vector<2x128xf32> to vector<2x32xf32>
    %174 = arith.mulf %167, %150 : vector<2x32xf32>
    %175 = arith.mulf %162, %173 : vector<2x32xf32>
    %176 = arith.addf %174, %175 : vector<2x32xf32>
    %177 = math.tanh %176 : vector<2x32xf32>
    %178 = arith.mulf %172, %177 : vector<2x32xf32>
    %cst_70 = arith.constant 0.000000e+00 : f32
    %179 = vector.broadcast %cst_70 : f32 to vector<2x32xf32>
    %180 = arith.maximumf %178, %179 : vector<2x32xf32>
    %cst_71 = arith.constant dense<0.000000e+00> : vector<2x128xf32>
    %181 = tpu.matmul %178, %0, %cst_71 {dimension_numbers = #tpu.dot_dimension_numbers<[1], [0], [0], [1], [0, 0, 1, 1], [], []>, precision = #tpu.contract_precision<fp32>} : vector<2x32xf32>, vector<32x128xf32>, vector<2x128xf32> -> vector<2x128xf32>
    %182 = arith.addf %42, %181 : vector<2x128xf32>
    %183 = math.tanh %182 : vector<2x128xf32>
    %184 = vector.extract_strided_slice %183 {offsets = [0, 0], sizes = [2, 32], strides = [1, 1]} : vector<2x128xf32> to vector<2x32xf32>
    %cst_72 = arith.constant 5.000000e-01 : f32
    %185 = vector.broadcast %cst_72 : f32 to vector<2x32xf32>
    %186 = arith.mulf %185, %184 : vector<2x32xf32>
    %cst_73 = arith.constant 5.000000e-01 : f32
    %187 = vector.broadcast %cst_73 : f32 to vector<2x32xf32>
    %188 = arith.addf %186, %187 : vector<2x32xf32>
    %189 = vector.extract_strided_slice %183 {offsets = [0, 32], sizes = [2, 32], strides = [1, 1]} : vector<2x128xf32> to vector<2x32xf32>
    %cst_74 = arith.constant 5.000000e-01 : f32
    %190 = vector.broadcast %cst_74 : f32 to vector<2x32xf32>
    %191 = arith.mulf %190, %189 : vector<2x32xf32>
    %cst_75 = arith.constant 5.000000e-01 : f32
    %192 = vector.broadcast %cst_75 : f32 to vector<2x32xf32>
    %193 = arith.addf %191, %192 : vector<2x32xf32>
    %194 = vector.extract_strided_slice %183 {offsets = [0, 64], sizes = [2, 32], strides = [1, 1]} : vector<2x128xf32> to vector<2x32xf32>
    %cst_76 = arith.constant 5.000000e-01 : f32
    %195 = vector.broadcast %cst_76 : f32 to vector<2x32xf32>
    %196 = arith.mulf %195, %194 : vector<2x32xf32>
    %cst_77 = arith.constant 5.000000e-01 : f32
    %197 = vector.broadcast %cst_77 : f32 to vector<2x32xf32>
    %198 = arith.addf %196, %197 : vector<2x32xf32>
    %199 = vector.extract_strided_slice %183 {offsets = [0, 96], sizes = [2, 32], strides = [1, 1]} : vector<2x128xf32> to vector<2x32xf32>
    %200 = arith.mulf %193, %176 : vector<2x32xf32>
    %201 = arith.mulf %188, %199 : vector<2x32xf32>
    %202 = arith.addf %200, %201 : vector<2x32xf32>
    %203 = math.tanh %202 : vector<2x32xf32>
    %204 = arith.mulf %198, %203 : vector<2x32xf32>
    %cst_78 = arith.constant 0.000000e+00 : f32
    %205 = vector.broadcast %cst_78 : f32 to vector<2x32xf32>
    %206 = arith.maximumf %204, %205 : vector<2x32xf32>
    %cst_79 = arith.constant dense<0.000000e+00> : vector<2x128xf32>
    %207 = tpu.matmul %204, %0, %cst_79 {dimension_numbers = #tpu.dot_dimension_numbers<[1], [0], [0], [1], [0, 0, 1, 1], [], []>, precision = #tpu.contract_precision<fp32>} : vector<2x32xf32>, vector<32x128xf32>, vector<2x128xf32> -> vector<2x128xf32>
    %208 = arith.addf %45, %207 : vector<2x128xf32>
    %209 = math.tanh %208 : vector<2x128xf32>
    %210 = vector.extract_strided_slice %209 {offsets = [0, 0], sizes = [2, 32], strides = [1, 1]} : vector<2x128xf32> to vector<2x32xf32>
    %cst_80 = arith.constant 5.000000e-01 : f32
    %211 = vector.broadcast %cst_80 : f32 to vector<2x32xf32>
    %212 = arith.mulf %211, %210 : vector<2x32xf32>
    %cst_81 = arith.constant 5.000000e-01 : f32
    %213 = vector.broadcast %cst_81 : f32 to vector<2x32xf32>
    %214 = arith.addf %212, %213 : vector<2x32xf32>
    %215 = vector.extract_strided_slice %209 {offsets = [0, 32], sizes = [2, 32], strides = [1, 1]} : vector<2x128xf32> to vector<2x32xf32>
    %cst_82 = arith.constant 5.000000e-01 : f32
    %216 = vector.broadcast %cst_82 : f32 to vector<2x32xf32>
    %217 = arith.mulf %216, %215 : vector<2x32xf32>
    %cst_83 = arith.constant 5.000000e-01 : f32
    %218 = vector.broadcast %cst_83 : f32 to vector<2x32xf32>
    %219 = arith.addf %217, %218 : vector<2x32xf32>
    %220 = vector.extract_strided_slice %209 {offsets = [0, 64], sizes = [2, 32], strides = [1, 1]} : vector<2x128xf32> to vector<2x32xf32>
    %cst_84 = arith.constant 5.000000e-01 : f32
    %221 = vector.broadcast %cst_84 : f32 to vector<2x32xf32>
    %222 = arith.mulf %221, %220 : vector<2x32xf32>
    %cst_85 = arith.constant 5.000000e-01 : f32
    %223 = vector.broadcast %cst_85 : f32 to vector<2x32xf32>
    %224 = arith.addf %222, %223 : vector<2x32xf32>
    %225 = vector.extract_strided_slice %209 {offsets = [0, 96], sizes = [2, 32], strides = [1, 1]} : vector<2x128xf32> to vector<2x32xf32>
    %226 = arith.mulf %219, %202 : vector<2x32xf32>
    %227 = arith.mulf %214, %225 : vector<2x32xf32>
    %228 = arith.addf %226, %227 : vector<2x32xf32>
    %229 = math.tanh %228 : vector<2x32xf32>
    %230 = arith.mulf %224, %229 : vector<2x32xf32>
    %cst_86 = arith.constant 0.000000e+00 : f32
    %231 = vector.broadcast %cst_86 : f32 to vector<2x32xf32>
    %232 = arith.maximumf %230, %231 : vector<2x32xf32>
    %cst_87 = arith.constant dense<0.000000e+00> : vector<2x128xf32>
    %233 = tpu.matmul %230, %0, %cst_87 {dimension_numbers = #tpu.dot_dimension_numbers<[1], [0], [0], [1], [0, 0, 1, 1], [], []>, precision = #tpu.contract_precision<fp32>} : vector<2x32xf32>, vector<32x128xf32>, vector<2x128xf32> -> vector<2x128xf32>
    %234 = arith.addf %48, %233 : vector<2x128xf32>
    %235 = math.tanh %234 : vector<2x128xf32>
    %236 = vector.extract_strided_slice %235 {offsets = [0, 0], sizes = [2, 32], strides = [1, 1]} : vector<2x128xf32> to vector<2x32xf32>
    %cst_88 = arith.constant 5.000000e-01 : f32
    %237 = vector.broadcast %cst_88 : f32 to vector<2x32xf32>
    %238 = arith.mulf %237, %236 : vector<2x32xf32>
    %cst_89 = arith.constant 5.000000e-01 : f32
    %239 = vector.broadcast %cst_89 : f32 to vector<2x32xf32>
    %240 = arith.addf %238, %239 : vector<2x32xf32>
    %241 = vector.extract_strided_slice %235 {offsets = [0, 32], sizes = [2, 32], strides = [1, 1]} : vector<2x128xf32> to vector<2x32xf32>
    %cst_90 = arith.constant 5.000000e-01 : f32
    %242 = vector.broadcast %cst_90 : f32 to vector<2x32xf32>
    %243 = arith.mulf %242, %241 : vector<2x32xf32>
    %cst_91 = arith.constant 5.000000e-01 : f32
    %244 = vector.broadcast %cst_91 : f32 to vector<2x32xf32>
    %245 = arith.addf %243, %244 : vector<2x32xf32>
    %246 = vector.extract_strided_slice %235 {offsets = [0, 64], sizes = [2, 32], strides = [1, 1]} : vector<2x128xf32> to vector<2x32xf32>
    %cst_92 = arith.constant 5.000000e-01 : f32
    %247 = vector.broadcast %cst_92 : f32 to vector<2x32xf32>
    %248 = arith.mulf %247, %246 : vector<2x32xf32>
    %cst_93 = arith.constant 5.000000e-01 : f32
    %249 = vector.broadcast %cst_93 : f32 to vector<2x32xf32>
    %250 = arith.addf %248, %249 : vector<2x32xf32>
    %251 = vector.extract_strided_slice %235 {offsets = [0, 96], sizes = [2, 32], strides = [1, 1]} : vector<2x128xf32> to vector<2x32xf32>
    %252 = arith.mulf %245, %228 : vector<2x32xf32>
    %253 = arith.mulf %240, %251 : vector<2x32xf32>
    %254 = arith.addf %252, %253 : vector<2x32xf32>
    %255 = math.tanh %254 : vector<2x32xf32>
    %256 = arith.mulf %250, %255 : vector<2x32xf32>
    %cst_94 = arith.constant 0.000000e+00 : f32
    %257 = vector.broadcast %cst_94 : f32 to vector<2x32xf32>
    %258 = arith.maximumf %256, %257 : vector<2x32xf32>
    %259 = vector.extract_strided_slice %76 {offsets = [0, 0], sizes = [1, 32], strides = [1, 1]} : vector<2x32xf32> to vector<1x32xf32>
    %260 = vector.extract_strided_slice %102 {offsets = [0, 0], sizes = [1, 32], strides = [1, 1]} : vector<2x32xf32> to vector<1x32xf32>
    %261 = vector.extract_strided_slice %128 {offsets = [0, 0], sizes = [1, 32], strides = [1, 1]} : vector<2x32xf32> to vector<1x32xf32>
    %262 = vector.extract_strided_slice %154 {offsets = [0, 0], sizes = [1, 32], strides = [1, 1]} : vector<2x32xf32> to vector<1x32xf32>
    %263 = vector.extract_strided_slice %180 {offsets = [0, 0], sizes = [1, 32], strides = [1, 1]} : vector<2x32xf32> to vector<1x32xf32>
    %264 = vector.extract_strided_slice %206 {offsets = [0, 0], sizes = [1, 32], strides = [1, 1]} : vector<2x32xf32> to vector<1x32xf32>
    %265 = vector.extract_strided_slice %232 {offsets = [0, 0], sizes = [1, 32], strides = [1, 1]} : vector<2x32xf32> to vector<1x32xf32>
    %266 = vector.extract_strided_slice %258 {offsets = [0, 0], sizes = [1, 32], strides = [1, 1]} : vector<2x32xf32> to vector<1x32xf32>
    %267 = tpu.concatenate %259, %260, %261, %262, %263, %264, %265, %266 in 0 : vector<1x32xf32>, vector<1x32xf32>, vector<1x32xf32>, vector<1x32xf32>, vector<1x32xf32>, vector<1x32xf32>, vector<1x32xf32>, vector<1x32xf32> -> vector<8x32xf32>
    %268 = vector.extract_strided_slice %76 {offsets = [1, 0], sizes = [1, 32], strides = [1, 1]} : vector<2x32xf32> to vector<1x32xf32>
    %269 = vector.extract_strided_slice %102 {offsets = [1, 0], sizes = [1, 32], strides = [1, 1]} : vector<2x32xf32> to vector<1x32xf32>
    %270 = vector.extract_strided_slice %128 {offsets = [1, 0], sizes = [1, 32], strides = [1, 1]} : vector<2x32xf32> to vector<1x32xf32>
    %271 = vector.extract_strided_slice %154 {offsets = [1, 0], sizes = [1, 32], strides = [1, 1]} : vector<2x32xf32> to vector<1x32xf32>
    %272 = vector.extract_strided_slice %180 {offsets = [1, 0], sizes = [1, 32], strides = [1, 1]} : vector<2x32xf32> to vector<1x32xf32>
    %273 = vector.extract_strided_slice %206 {offsets = [1, 0], sizes = [1, 32], strides = [1, 1]} : vector<2x32xf32> to vector<1x32xf32>
    %274 = vector.extract_strided_slice %232 {offsets = [1, 0], sizes = [1, 32], strides = [1, 1]} : vector<2x32xf32> to vector<1x32xf32>
    %275 = vector.extract_strided_slice %258 {offsets = [1, 0], sizes = [1, 32], strides = [1, 1]} : vector<2x32xf32> to vector<1x32xf32>
    %276 = tpu.concatenate %268, %269, %270, %271, %272, %273, %274, %275 in 0 : vector<1x32xf32>, vector<1x32xf32>, vector<1x32xf32>, vector<1x32xf32>, vector<1x32xf32>, vector<1x32xf32>, vector<1x32xf32>, vector<1x32xf32> -> vector<8x32xf32>
    %cst_95 = arith.constant dense<0.000000e+00> : vector<8x32xf32>
    %277 = tpu.matmul %267, %4, %cst_95 {dimension_numbers = #tpu.dot_dimension_numbers<[1], [0], [0], [1], [0, 0, 1, 1], [], []>, precision = #tpu.contract_precision<fp32>} : vector<8x32xf32>, vector<32x32xf32>, vector<8x32xf32> -> vector<8x32xf32>
    %278 = vector.broadcast %8 : vector<1x32xf32> to vector<8x32xf32>
    %279 = arith.addf %277, %278 : vector<8x32xf32>
    %cst_96 = arith.constant dense<0.000000e+00> : vector<8x32xf32>
    %280 = tpu.matmul %276, %4, %cst_96 {dimension_numbers = #tpu.dot_dimension_numbers<[1], [0], [0], [1], [0, 0, 1, 1], [], []>, precision = #tpu.contract_precision<fp32>} : vector<8x32xf32>, vector<32x32xf32>, vector<8x32xf32> -> vector<8x32xf32>
    %281 = vector.broadcast %8 : vector<1x32xf32> to vector<8x32xf32>
    %282 = arith.addf %280, %281 : vector<8x32xf32>
    %cst_97 = arith.constant 0.000000e+00 : f32
    %283 = vector.broadcast %cst_97 : f32 to vector<8x32xf32>
    %cst_98 = arith.constant 0.000000e+00 : f32
    %284 = vector.broadcast %cst_98 : f32 to vector<8x32xf32>
    %cst_99 = arith.constant dense<0.000000e+00> : vector<8x256xf32>
    %285 = tpu.matmul %283, %1, %cst_99 {dimension_numbers = #tpu.dot_dimension_numbers<[1], [0], [0], [1], [0, 0, 1, 1], [], []>, precision = #tpu.contract_precision<fp32>} : vector<8x32xf32>, vector<32x256xf32>, vector<8x256xf32> -> vector<8x256xf32>
    %286 = vector.extract_strided_slice %285 {offsets = [0, 0], sizes = [8, 32], strides = [1, 1]} : vector<8x256xf32> to vector<8x32xf32>
    %cst_100 = arith.constant dense<0.000000e+00> : vector<8x32xf32>
    %287 = tpu.matmul %284, %2, %cst_100 {dimension_numbers = #tpu.dot_dimension_numbers<[1], [0], [0], [1], [0, 0, 1, 1], [], []>, precision = #tpu.contract_precision<fp32>} : vector<8x32xf32>, vector<32x32xf32>, vector<8x32xf32> -> vector<8x32xf32>
    %288 = arith.addf %286, %287 : vector<8x32xf32>
    %289 = arith.addf %288, %279 : vector<8x32xf32>
    %290 = math.tanh %289 : vector<8x32xf32>
    %291 = vector.broadcast %9 : vector<1x32xf32> to vector<8x32xf32>
    %292 = arith.mulf %290, %291 : vector<8x32xf32>
    %cst_101 = arith.constant dense<0.000000e+00> : vector<8xf32>
    %293 = vector.multi_reduction <add>, %292, %cst_101 [1] : vector<8x32xf32> to vector<8xf32>
    %294 = vector.shape_cast %293 : vector<8xf32> to vector<8x1xf32>
    %cst_102 = arith.constant dense<0xFF800000> : vector<1xf32>
    %295 = vector.multi_reduction <maximumf>, %294, %cst_102 [0] : vector<8x1xf32> to vector<1xf32>
    %296 = vector.shape_cast %295 : vector<1xf32> to vector<1x1xf32>
    %297 = vector.broadcast %296 : vector<1x1xf32> to vector<8x1xf32>
    %298 = arith.subf %294, %297 : vector<8x1xf32>
    %299 = math.exp %298 : vector<8x1xf32>
    %cst_103 = arith.constant dense<0.000000e+00> : vector<1xf32>
    %300 = vector.multi_reduction <add>, %299, %cst_103 [0] : vector<8x1xf32> to vector<1xf32>
    %301 = vector.shape_cast %300 : vector<1xf32> to vector<1x1xf32>
    %302 = tpu.reciprocal %301 : vector<1x1xf32> -> vector<1x1xf32>
    %303 = vector.broadcast %302 : vector<1x1xf32> to vector<8x1xf32>
    %304 = arith.mulf %299, %303 : vector<8x1xf32>
    %305 = vector.broadcast %304 : vector<8x1xf32> to vector<8x32xf32>
    %306 = arith.mulf %305, %267 : vector<8x32xf32>
    %cst_104 = arith.constant dense<0.000000e+00> : vector<8x128xf32>
    %307 = tpu.matmul %306, %3, %cst_104 {dimension_numbers = #tpu.dot_dimension_numbers<[1], [0], [0], [1], [0, 0, 1, 1], [], []>, precision = #tpu.contract_precision<fp32>} : vector<8x32xf32>, vector<32x128xf32>, vector<8x128xf32> -> vector<8x128xf32>
    %308 = vector.extract_strided_slice %285 {offsets = [0, 128], sizes = [8, 128], strides = [1, 1]} : vector<8x256xf32> to vector<8x128xf32>
    %309 = arith.addf %307, %308 : vector<8x128xf32>
    %310 = vector.broadcast %7 : vector<1x128xf32> to vector<8x128xf32>
    %311 = arith.addf %309, %310 : vector<8x128xf32>
    %312 = math.tanh %311 : vector<8x128xf32>
    %313 = vector.extract_strided_slice %312 {offsets = [0, 0], sizes = [8, 32], strides = [1, 1]} : vector<8x128xf32> to vector<8x32xf32>
    %cst_105 = arith.constant 5.000000e-01 : f32
    %314 = vector.broadcast %cst_105 : f32 to vector<8x32xf32>
    %315 = arith.mulf %314, %313 : vector<8x32xf32>
    %cst_106 = arith.constant 5.000000e-01 : f32
    %316 = vector.broadcast %cst_106 : f32 to vector<8x32xf32>
    %317 = arith.addf %315, %316 : vector<8x32xf32>
    %318 = vector.extract_strided_slice %312 {offsets = [0, 32], sizes = [8, 32], strides = [1, 1]} : vector<8x128xf32> to vector<8x32xf32>
    %cst_107 = arith.constant 5.000000e-01 : f32
    %319 = vector.broadcast %cst_107 : f32 to vector<8x32xf32>
    %320 = arith.mulf %319, %318 : vector<8x32xf32>
    %cst_108 = arith.constant 5.000000e-01 : f32
    %321 = vector.broadcast %cst_108 : f32 to vector<8x32xf32>
    %322 = arith.addf %320, %321 : vector<8x32xf32>
    %323 = vector.extract_strided_slice %312 {offsets = [0, 64], sizes = [8, 32], strides = [1, 1]} : vector<8x128xf32> to vector<8x32xf32>
    %cst_109 = arith.constant 5.000000e-01 : f32
    %324 = vector.broadcast %cst_109 : f32 to vector<8x32xf32>
    %325 = arith.mulf %324, %323 : vector<8x32xf32>
    %cst_110 = arith.constant 5.000000e-01 : f32
    %326 = vector.broadcast %cst_110 : f32 to vector<8x32xf32>
    %327 = arith.addf %325, %326 : vector<8x32xf32>
    %328 = vector.extract_strided_slice %312 {offsets = [0, 96], sizes = [8, 32], strides = [1, 1]} : vector<8x128xf32> to vector<8x32xf32>
    %329 = arith.mulf %322, %284 : vector<8x32xf32>
    %330 = arith.mulf %317, %328 : vector<8x32xf32>
    %331 = arith.addf %329, %330 : vector<8x32xf32>
    %332 = math.tanh %331 : vector<8x32xf32>
    %333 = arith.mulf %327, %332 : vector<8x32xf32>
    %cst_111 = arith.constant dense<0.000000e+00> : vector<8x256xf32>
    %334 = tpu.matmul %333, %1, %cst_111 {dimension_numbers = #tpu.dot_dimension_numbers<[1], [0], [0], [1], [0, 0, 1, 1], [], []>, precision = #tpu.contract_precision<fp32>} : vector<8x32xf32>, vector<32x256xf32>, vector<8x256xf32> -> vector<8x256xf32>
    %335 = vector.extract_strided_slice %334 {offsets = [0, 0], sizes = [8, 32], strides = [1, 1]} : vector<8x256xf32> to vector<8x32xf32>
    %cst_112 = arith.constant dense<0.000000e+00> : vector<8x32xf32>
    %336 = tpu.matmul %331, %2, %cst_112 {dimension_numbers = #tpu.dot_dimension_numbers<[1], [0], [0], [1], [0, 0, 1, 1], [], []>, precision = #tpu.contract_precision<fp32>} : vector<8x32xf32>, vector<32x32xf32>, vector<8x32xf32> -> vector<8x32xf32>
    %337 = arith.addf %335, %336 : vector<8x32xf32>
    %338 = arith.addf %337, %282 : vector<8x32xf32>
    %339 = math.tanh %338 : vector<8x32xf32>
    %340 = vector.broadcast %9 : vector<1x32xf32> to vector<8x32xf32>
    %341 = arith.mulf %339, %340 : vector<8x32xf32>
    %cst_113 = arith.constant dense<0.000000e+00> : vector<8xf32>
    %342 = vector.multi_reduction <add>, %341, %cst_113 [1] : vector<8x32xf32> to vector<8xf32>
    %343 = vector.shape_cast %342 : vector<8xf32> to vector<8x1xf32>
    %cst_114 = arith.constant dense<0xFF800000> : vector<1xf32>
    %344 = vector.multi_reduction <maximumf>, %343, %cst_114 [0] : vector<8x1xf32> to vector<1xf32>
    %345 = vector.shape_cast %344 : vector<1xf32> to vector<1x1xf32>
    %346 = vector.broadcast %345 : vector<1x1xf32> to vector<8x1xf32>
    %347 = arith.subf %343, %346 : vector<8x1xf32>
    %348 = math.exp %347 : vector<8x1xf32>
    %cst_115 = arith.constant dense<0.000000e+00> : vector<1xf32>
    %349 = vector.multi_reduction <add>, %348, %cst_115 [0] : vector<8x1xf32> to vector<1xf32>
    %350 = vector.shape_cast %349 : vector<1xf32> to vector<1x1xf32>
    %351 = tpu.reciprocal %350 : vector<1x1xf32> -> vector<1x1xf32>
    %352 = vector.broadcast %351 : vector<1x1xf32> to vector<8x1xf32>
    %353 = arith.mulf %348, %352 : vector<8x1xf32>
    %354 = vector.broadcast %353 : vector<8x1xf32> to vector<8x32xf32>
    %355 = arith.mulf %354, %276 : vector<8x32xf32>
    %cst_116 = arith.constant dense<0.000000e+00> : vector<8x128xf32>
    %356 = tpu.matmul %355, %3, %cst_116 {dimension_numbers = #tpu.dot_dimension_numbers<[1], [0], [0], [1], [0, 0, 1, 1], [], []>, precision = #tpu.contract_precision<fp32>} : vector<8x32xf32>, vector<32x128xf32>, vector<8x128xf32> -> vector<8x128xf32>
    %357 = vector.extract_strided_slice %334 {offsets = [0, 128], sizes = [8, 128], strides = [1, 1]} : vector<8x256xf32> to vector<8x128xf32>
    %358 = arith.addf %356, %357 : vector<8x128xf32>
    %359 = vector.broadcast %7 : vector<1x128xf32> to vector<8x128xf32>
    %360 = arith.addf %358, %359 : vector<8x128xf32>
    %361 = math.tanh %360 : vector<8x128xf32>
    %362 = vector.extract_strided_slice %361 {offsets = [0, 0], sizes = [8, 32], strides = [1, 1]} : vector<8x128xf32> to vector<8x32xf32>
    %cst_117 = arith.constant 5.000000e-01 : f32
    %363 = vector.broadcast %cst_117 : f32 to vector<8x32xf32>
    %364 = arith.mulf %363, %362 : vector<8x32xf32>
    %cst_118 = arith.constant 5.000000e-01 : f32
    %365 = vector.broadcast %cst_118 : f32 to vector<8x32xf32>
    %366 = arith.addf %364, %365 : vector<8x32xf32>
    %367 = vector.extract_strided_slice %361 {offsets = [0, 32], sizes = [8, 32], strides = [1, 1]} : vector<8x128xf32> to vector<8x32xf32>
    %cst_119 = arith.constant 5.000000e-01 : f32
    %368 = vector.broadcast %cst_119 : f32 to vector<8x32xf32>
    %369 = arith.mulf %368, %367 : vector<8x32xf32>
    %cst_120 = arith.constant 5.000000e-01 : f32
    %370 = vector.broadcast %cst_120 : f32 to vector<8x32xf32>
    %371 = arith.addf %369, %370 : vector<8x32xf32>
    %372 = vector.extract_strided_slice %361 {offsets = [0, 64], sizes = [8, 32], strides = [1, 1]} : vector<8x128xf32> to vector<8x32xf32>
    %cst_121 = arith.constant 5.000000e-01 : f32
    %373 = vector.broadcast %cst_121 : f32 to vector<8x32xf32>
    %374 = arith.mulf %373, %372 : vector<8x32xf32>
    %cst_122 = arith.constant 5.000000e-01 : f32
    %375 = vector.broadcast %cst_122 : f32 to vector<8x32xf32>
    %376 = arith.addf %374, %375 : vector<8x32xf32>
    %377 = vector.extract_strided_slice %361 {offsets = [0, 96], sizes = [8, 32], strides = [1, 1]} : vector<8x128xf32> to vector<8x32xf32>
    %378 = arith.mulf %371, %331 : vector<8x32xf32>
    %379 = arith.mulf %366, %377 : vector<8x32xf32>
    %380 = arith.addf %378, %379 : vector<8x32xf32>
    %381 = math.tanh %380 : vector<8x32xf32>
    %382 = arith.mulf %376, %381 : vector<8x32xf32>
    %cst_123 = arith.constant dense<0.000000e+00> : vector<8x24xf32>
    %383 = tpu.matmul %333, %5, %cst_123 {dimension_numbers = #tpu.dot_dimension_numbers<[1], [0], [0], [1], [0, 0, 1, 1], [], []>, precision = #tpu.contract_precision<fp32>} : vector<8x32xf32>, vector<32x24xf32>, vector<8x24xf32> -> vector<8x24xf32>
    %384 = vector.broadcast %10 : vector<1x24xf32> to vector<8x24xf32>
    %385 = arith.addf %383, %384 : vector<8x24xf32>
    %cst_124 = arith.constant dense<0.000000e+00> : vector<8x24xf32>
    %386 = tpu.matmul %382, %5, %cst_124 {dimension_numbers = #tpu.dot_dimension_numbers<[1], [0], [0], [1], [0, 0, 1, 1], [], []>, precision = #tpu.contract_precision<fp32>} : vector<8x32xf32>, vector<32x24xf32>, vector<8x24xf32> -> vector<8x24xf32>
    %387 = vector.broadcast %10 : vector<1x24xf32> to vector<8x24xf32>
    %388 = arith.addf %386, %387 : vector<8x24xf32>
    %389 = vector.extract_strided_slice %385 {offsets = [0, 0], sizes = [1, 24], strides = [1, 1]} : vector<8x24xf32> to vector<1x24xf32>
    %390 = vector.extract_strided_slice %388 {offsets = [0, 0], sizes = [1, 24], strides = [1, 1]} : vector<8x24xf32> to vector<1x24xf32>
    %391 = tpu.concatenate %389, %390 in 0 : vector<1x24xf32>, vector<1x24xf32> -> vector<2x24xf32>
    %392 = vector.extract_strided_slice %385 {offsets = [1, 0], sizes = [1, 24], strides = [1, 1]} : vector<8x24xf32> to vector<1x24xf32>
    %393 = vector.extract_strided_slice %388 {offsets = [1, 0], sizes = [1, 24], strides = [1, 1]} : vector<8x24xf32> to vector<1x24xf32>
    %394 = tpu.concatenate %392, %393 in 0 : vector<1x24xf32>, vector<1x24xf32> -> vector<2x24xf32>
    %395 = vector.extract_strided_slice %385 {offsets = [2, 0], sizes = [1, 24], strides = [1, 1]} : vector<8x24xf32> to vector<1x24xf32>
    %396 = vector.extract_strided_slice %388 {offsets = [2, 0], sizes = [1, 24], strides = [1, 1]} : vector<8x24xf32> to vector<1x24xf32>
    %397 = tpu.concatenate %395, %396 in 0 : vector<1x24xf32>, vector<1x24xf32> -> vector<2x24xf32>
    %398 = vector.extract_strided_slice %385 {offsets = [3, 0], sizes = [1, 24], strides = [1, 1]} : vector<8x24xf32> to vector<1x24xf32>
    %399 = vector.extract_strided_slice %388 {offsets = [3, 0], sizes = [1, 24], strides = [1, 1]} : vector<8x24xf32> to vector<1x24xf32>
    %400 = tpu.concatenate %398, %399 in 0 : vector<1x24xf32>, vector<1x24xf32> -> vector<2x24xf32>
    %401 = vector.extract_strided_slice %385 {offsets = [4, 0], sizes = [1, 24], strides = [1, 1]} : vector<8x24xf32> to vector<1x24xf32>
    %402 = vector.extract_strided_slice %388 {offsets = [4, 0], sizes = [1, 24], strides = [1, 1]} : vector<8x24xf32> to vector<1x24xf32>
    %403 = tpu.concatenate %401, %402 in 0 : vector<1x24xf32>, vector<1x24xf32> -> vector<2x24xf32>
    %404 = vector.extract_strided_slice %385 {offsets = [5, 0], sizes = [1, 24], strides = [1, 1]} : vector<8x24xf32> to vector<1x24xf32>
    %405 = vector.extract_strided_slice %388 {offsets = [5, 0], sizes = [1, 24], strides = [1, 1]} : vector<8x24xf32> to vector<1x24xf32>
    %406 = tpu.concatenate %404, %405 in 0 : vector<1x24xf32>, vector<1x24xf32> -> vector<2x24xf32>
    %407 = vector.extract_strided_slice %385 {offsets = [6, 0], sizes = [1, 24], strides = [1, 1]} : vector<8x24xf32> to vector<1x24xf32>
    %408 = vector.extract_strided_slice %388 {offsets = [6, 0], sizes = [1, 24], strides = [1, 1]} : vector<8x24xf32> to vector<1x24xf32>
    %409 = tpu.concatenate %407, %408 in 0 : vector<1x24xf32>, vector<1x24xf32> -> vector<2x24xf32>
    %410 = vector.extract_strided_slice %385 {offsets = [7, 0], sizes = [1, 24], strides = [1, 1]} : vector<8x24xf32> to vector<1x24xf32>
    %411 = vector.extract_strided_slice %388 {offsets = [7, 0], sizes = [1, 24], strides = [1, 1]} : vector<8x24xf32> to vector<1x24xf32>
    %412 = tpu.concatenate %410, %411 in 0 : vector<1x24xf32>, vector<1x24xf32> -> vector<2x24xf32>
    %cst_125 = arith.constant 0.000000e+00 : f32
    %413 = vector.broadcast %cst_125 : f32 to vector<2x6xf32>
    %cst_126 = arith.constant 0.000000e+00 : f32
    %414 = vector.broadcast %cst_126 : f32 to vector<2x6xf32>
    %cst_127 = arith.constant dense<0.000000e+00> : vector<2x24xf32>
    %415 = tpu.matmul %413, %13, %cst_127 {dimension_numbers = #tpu.dot_dimension_numbers<[1], [0], [0], [1], [0, 0, 1, 1], [], []>, precision = #tpu.contract_precision<fp32>} : vector<2x6xf32>, vector<6x24xf32>, vector<2x24xf32> -> vector<2x24xf32>
    %416 = arith.addf %391, %415 : vector<2x24xf32>
    %417 = math.tanh %416 : vector<2x24xf32>
    %418 = vector.extract_strided_slice %417 {offsets = [0, 0], sizes = [2, 6], strides = [1, 1]} : vector<2x24xf32> to vector<2x6xf32>
    %cst_128 = arith.constant 5.000000e-01 : f32
    %419 = vector.broadcast %cst_128 : f32 to vector<2x6xf32>
    %420 = arith.mulf %419, %418 : vector<2x6xf32>
    %cst_129 = arith.constant 5.000000e-01 : f32
    %421 = vector.broadcast %cst_129 : f32 to vector<2x6xf32>
    %422 = arith.addf %420, %421 : vector<2x6xf32>
    %423 = vector.extract_strided_slice %417 {offsets = [0, 6], sizes = [2, 6], strides = [1, 1]} : vector<2x24xf32> to vector<2x6xf32>
    %cst_130 = arith.constant 5.000000e-01 : f32
    %424 = vector.broadcast %cst_130 : f32 to vector<2x6xf32>
    %425 = arith.mulf %424, %423 : vector<2x6xf32>
    %cst_131 = arith.constant 5.000000e-01 : f32
    %426 = vector.broadcast %cst_131 : f32 to vector<2x6xf32>
    %427 = arith.addf %425, %426 : vector<2x6xf32>
    %428 = vector.extract_strided_slice %417 {offsets = [0, 12], sizes = [2, 6], strides = [1, 1]} : vector<2x24xf32> to vector<2x6xf32>
    %cst_132 = arith.constant 5.000000e-01 : f32
    %429 = vector.broadcast %cst_132 : f32 to vector<2x6xf32>
    %430 = arith.mulf %429, %428 : vector<2x6xf32>
    %cst_133 = arith.constant 5.000000e-01 : f32
    %431 = vector.broadcast %cst_133 : f32 to vector<2x6xf32>
    %432 = arith.addf %430, %431 : vector<2x6xf32>
    %433 = vector.extract_strided_slice %417 {offsets = [0, 18], sizes = [2, 6], strides = [1, 1]} : vector<2x24xf32> to vector<2x6xf32>
    %434 = arith.mulf %427, %414 : vector<2x6xf32>
    %435 = arith.mulf %422, %433 : vector<2x6xf32>
    %436 = arith.addf %434, %435 : vector<2x6xf32>
    %437 = math.tanh %436 : vector<2x6xf32>
    %438 = arith.mulf %432, %437 : vector<2x6xf32>
    %cst_134 = arith.constant dense<0.000000e+00> : vector<2x24xf32>
    %439 = tpu.matmul %438, %13, %cst_134 {dimension_numbers = #tpu.dot_dimension_numbers<[1], [0], [0], [1], [0, 0, 1, 1], [], []>, precision = #tpu.contract_precision<fp32>} : vector<2x6xf32>, vector<6x24xf32>, vector<2x24xf32> -> vector<2x24xf32>
    %440 = arith.addf %394, %439 : vector<2x24xf32>
    %441 = math.tanh %440 : vector<2x24xf32>
    %442 = vector.extract_strided_slice %441 {offsets = [0, 0], sizes = [2, 6], strides = [1, 1]} : vector<2x24xf32> to vector<2x6xf32>
    %cst_135 = arith.constant 5.000000e-01 : f32
    %443 = vector.broadcast %cst_135 : f32 to vector<2x6xf32>
    %444 = arith.mulf %443, %442 : vector<2x6xf32>
    %cst_136 = arith.constant 5.000000e-01 : f32
    %445 = vector.broadcast %cst_136 : f32 to vector<2x6xf32>
    %446 = arith.addf %444, %445 : vector<2x6xf32>
    %447 = vector.extract_strided_slice %441 {offsets = [0, 6], sizes = [2, 6], strides = [1, 1]} : vector<2x24xf32> to vector<2x6xf32>
    %cst_137 = arith.constant 5.000000e-01 : f32
    %448 = vector.broadcast %cst_137 : f32 to vector<2x6xf32>
    %449 = arith.mulf %448, %447 : vector<2x6xf32>
    %cst_138 = arith.constant 5.000000e-01 : f32
    %450 = vector.broadcast %cst_138 : f32 to vector<2x6xf32>
    %451 = arith.addf %449, %450 : vector<2x6xf32>
    %452 = vector.extract_strided_slice %441 {offsets = [0, 12], sizes = [2, 6], strides = [1, 1]} : vector<2x24xf32> to vector<2x6xf32>
    %cst_139 = arith.constant 5.000000e-01 : f32
    %453 = vector.broadcast %cst_139 : f32 to vector<2x6xf32>
    %454 = arith.mulf %453, %452 : vector<2x6xf32>
    %cst_140 = arith.constant 5.000000e-01 : f32
    %455 = vector.broadcast %cst_140 : f32 to vector<2x6xf32>
    %456 = arith.addf %454, %455 : vector<2x6xf32>
    %457 = vector.extract_strided_slice %441 {offsets = [0, 18], sizes = [2, 6], strides = [1, 1]} : vector<2x24xf32> to vector<2x6xf32>
    %458 = arith.mulf %451, %436 : vector<2x6xf32>
    %459 = arith.mulf %446, %457 : vector<2x6xf32>
    %460 = arith.addf %458, %459 : vector<2x6xf32>
    %461 = math.tanh %460 : vector<2x6xf32>
    %462 = arith.mulf %456, %461 : vector<2x6xf32>
    %cst_141 = arith.constant dense<0.000000e+00> : vector<2x24xf32>
    %463 = tpu.matmul %462, %13, %cst_141 {dimension_numbers = #tpu.dot_dimension_numbers<[1], [0], [0], [1], [0, 0, 1, 1], [], []>, precision = #tpu.contract_precision<fp32>} : vector<2x6xf32>, vector<6x24xf32>, vector<2x24xf32> -> vector<2x24xf32>
    %464 = arith.addf %397, %463 : vector<2x24xf32>
    %465 = math.tanh %464 : vector<2x24xf32>
    %466 = vector.extract_strided_slice %465 {offsets = [0, 0], sizes = [2, 6], strides = [1, 1]} : vector<2x24xf32> to vector<2x6xf32>
    %cst_142 = arith.constant 5.000000e-01 : f32
    %467 = vector.broadcast %cst_142 : f32 to vector<2x6xf32>
    %468 = arith.mulf %467, %466 : vector<2x6xf32>
    %cst_143 = arith.constant 5.000000e-01 : f32
    %469 = vector.broadcast %cst_143 : f32 to vector<2x6xf32>
    %470 = arith.addf %468, %469 : vector<2x6xf32>
    %471 = vector.extract_strided_slice %465 {offsets = [0, 6], sizes = [2, 6], strides = [1, 1]} : vector<2x24xf32> to vector<2x6xf32>
    %cst_144 = arith.constant 5.000000e-01 : f32
    %472 = vector.broadcast %cst_144 : f32 to vector<2x6xf32>
    %473 = arith.mulf %472, %471 : vector<2x6xf32>
    %cst_145 = arith.constant 5.000000e-01 : f32
    %474 = vector.broadcast %cst_145 : f32 to vector<2x6xf32>
    %475 = arith.addf %473, %474 : vector<2x6xf32>
    %476 = vector.extract_strided_slice %465 {offsets = [0, 12], sizes = [2, 6], strides = [1, 1]} : vector<2x24xf32> to vector<2x6xf32>
    %cst_146 = arith.constant 5.000000e-01 : f32
    %477 = vector.broadcast %cst_146 : f32 to vector<2x6xf32>
    %478 = arith.mulf %477, %476 : vector<2x6xf32>
    %cst_147 = arith.constant 5.000000e-01 : f32
    %479 = vector.broadcast %cst_147 : f32 to vector<2x6xf32>
    %480 = arith.addf %478, %479 : vector<2x6xf32>
    %481 = vector.extract_strided_slice %465 {offsets = [0, 18], sizes = [2, 6], strides = [1, 1]} : vector<2x24xf32> to vector<2x6xf32>
    %482 = arith.mulf %475, %460 : vector<2x6xf32>
    %483 = arith.mulf %470, %481 : vector<2x6xf32>
    %484 = arith.addf %482, %483 : vector<2x6xf32>
    %485 = math.tanh %484 : vector<2x6xf32>
    %486 = arith.mulf %480, %485 : vector<2x6xf32>
    %cst_148 = arith.constant dense<0.000000e+00> : vector<2x24xf32>
    %487 = tpu.matmul %486, %13, %cst_148 {dimension_numbers = #tpu.dot_dimension_numbers<[1], [0], [0], [1], [0, 0, 1, 1], [], []>, precision = #tpu.contract_precision<fp32>} : vector<2x6xf32>, vector<6x24xf32>, vector<2x24xf32> -> vector<2x24xf32>
    %488 = arith.addf %400, %487 : vector<2x24xf32>
    %489 = math.tanh %488 : vector<2x24xf32>
    %490 = vector.extract_strided_slice %489 {offsets = [0, 0], sizes = [2, 6], strides = [1, 1]} : vector<2x24xf32> to vector<2x6xf32>
    %cst_149 = arith.constant 5.000000e-01 : f32
    %491 = vector.broadcast %cst_149 : f32 to vector<2x6xf32>
    %492 = arith.mulf %491, %490 : vector<2x6xf32>
    %cst_150 = arith.constant 5.000000e-01 : f32
    %493 = vector.broadcast %cst_150 : f32 to vector<2x6xf32>
    %494 = arith.addf %492, %493 : vector<2x6xf32>
    %495 = vector.extract_strided_slice %489 {offsets = [0, 6], sizes = [2, 6], strides = [1, 1]} : vector<2x24xf32> to vector<2x6xf32>
    %cst_151 = arith.constant 5.000000e-01 : f32
    %496 = vector.broadcast %cst_151 : f32 to vector<2x6xf32>
    %497 = arith.mulf %496, %495 : vector<2x6xf32>
    %cst_152 = arith.constant 5.000000e-01 : f32
    %498 = vector.broadcast %cst_152 : f32 to vector<2x6xf32>
    %499 = arith.addf %497, %498 : vector<2x6xf32>
    %500 = vector.extract_strided_slice %489 {offsets = [0, 12], sizes = [2, 6], strides = [1, 1]} : vector<2x24xf32> to vector<2x6xf32>
    %cst_153 = arith.constant 5.000000e-01 : f32
    %501 = vector.broadcast %cst_153 : f32 to vector<2x6xf32>
    %502 = arith.mulf %501, %500 : vector<2x6xf32>
    %cst_154 = arith.constant 5.000000e-01 : f32
    %503 = vector.broadcast %cst_154 : f32 to vector<2x6xf32>
    %504 = arith.addf %502, %503 : vector<2x6xf32>
    %505 = vector.extract_strided_slice %489 {offsets = [0, 18], sizes = [2, 6], strides = [1, 1]} : vector<2x24xf32> to vector<2x6xf32>
    %506 = arith.mulf %499, %484 : vector<2x6xf32>
    %507 = arith.mulf %494, %505 : vector<2x6xf32>
    %508 = arith.addf %506, %507 : vector<2x6xf32>
    %509 = math.tanh %508 : vector<2x6xf32>
    %510 = arith.mulf %504, %509 : vector<2x6xf32>
    %cst_155 = arith.constant dense<0.000000e+00> : vector<2x24xf32>
    %511 = tpu.matmul %510, %13, %cst_155 {dimension_numbers = #tpu.dot_dimension_numbers<[1], [0], [0], [1], [0, 0, 1, 1], [], []>, precision = #tpu.contract_precision<fp32>} : vector<2x6xf32>, vector<6x24xf32>, vector<2x24xf32> -> vector<2x24xf32>
    %512 = arith.addf %403, %511 : vector<2x24xf32>
    %513 = math.tanh %512 : vector<2x24xf32>
    %514 = vector.extract_strided_slice %513 {offsets = [0, 0], sizes = [2, 6], strides = [1, 1]} : vector<2x24xf32> to vector<2x6xf32>
    %cst_156 = arith.constant 5.000000e-01 : f32
    %515 = vector.broadcast %cst_156 : f32 to vector<2x6xf32>
    %516 = arith.mulf %515, %514 : vector<2x6xf32>
    %cst_157 = arith.constant 5.000000e-01 : f32
    %517 = vector.broadcast %cst_157 : f32 to vector<2x6xf32>
    %518 = arith.addf %516, %517 : vector<2x6xf32>
    %519 = vector.extract_strided_slice %513 {offsets = [0, 6], sizes = [2, 6], strides = [1, 1]} : vector<2x24xf32> to vector<2x6xf32>
    %cst_158 = arith.constant 5.000000e-01 : f32
    %520 = vector.broadcast %cst_158 : f32 to vector<2x6xf32>
    %521 = arith.mulf %520, %519 : vector<2x6xf32>
    %cst_159 = arith.constant 5.000000e-01 : f32
    %522 = vector.broadcast %cst_159 : f32 to vector<2x6xf32>
    %523 = arith.addf %521, %522 : vector<2x6xf32>
    %524 = vector.extract_strided_slice %513 {offsets = [0, 12], sizes = [2, 6], strides = [1, 1]} : vector<2x24xf32> to vector<2x6xf32>
    %cst_160 = arith.constant 5.000000e-01 : f32
    %525 = vector.broadcast %cst_160 : f32 to vector<2x6xf32>
    %526 = arith.mulf %525, %524 : vector<2x6xf32>
    %cst_161 = arith.constant 5.000000e-01 : f32
    %527 = vector.broadcast %cst_161 : f32 to vector<2x6xf32>
    %528 = arith.addf %526, %527 : vector<2x6xf32>
    %529 = vector.extract_strided_slice %513 {offsets = [0, 18], sizes = [2, 6], strides = [1, 1]} : vector<2x24xf32> to vector<2x6xf32>
    %530 = arith.mulf %523, %508 : vector<2x6xf32>
    %531 = arith.mulf %518, %529 : vector<2x6xf32>
    %532 = arith.addf %530, %531 : vector<2x6xf32>
    %533 = math.tanh %532 : vector<2x6xf32>
    %534 = arith.mulf %528, %533 : vector<2x6xf32>
    %cst_162 = arith.constant dense<0.000000e+00> : vector<2x24xf32>
    %535 = tpu.matmul %534, %13, %cst_162 {dimension_numbers = #tpu.dot_dimension_numbers<[1], [0], [0], [1], [0, 0, 1, 1], [], []>, precision = #tpu.contract_precision<fp32>} : vector<2x6xf32>, vector<6x24xf32>, vector<2x24xf32> -> vector<2x24xf32>
    %536 = arith.addf %406, %535 : vector<2x24xf32>
    %537 = math.tanh %536 : vector<2x24xf32>
    %538 = vector.extract_strided_slice %537 {offsets = [0, 0], sizes = [2, 6], strides = [1, 1]} : vector<2x24xf32> to vector<2x6xf32>
    %cst_163 = arith.constant 5.000000e-01 : f32
    %539 = vector.broadcast %cst_163 : f32 to vector<2x6xf32>
    %540 = arith.mulf %539, %538 : vector<2x6xf32>
    %cst_164 = arith.constant 5.000000e-01 : f32
    %541 = vector.broadcast %cst_164 : f32 to vector<2x6xf32>
    %542 = arith.addf %540, %541 : vector<2x6xf32>
    %543 = vector.extract_strided_slice %537 {offsets = [0, 6], sizes = [2, 6], strides = [1, 1]} : vector<2x24xf32> to vector<2x6xf32>
    %cst_165 = arith.constant 5.000000e-01 : f32
    %544 = vector.broadcast %cst_165 : f32 to vector<2x6xf32>
    %545 = arith.mulf %544, %543 : vector<2x6xf32>
    %cst_166 = arith.constant 5.000000e-01 : f32
    %546 = vector.broadcast %cst_166 : f32 to vector<2x6xf32>
    %547 = arith.addf %545, %546 : vector<2x6xf32>
    %548 = vector.extract_strided_slice %537 {offsets = [0, 12], sizes = [2, 6], strides = [1, 1]} : vector<2x24xf32> to vector<2x6xf32>
    %cst_167 = arith.constant 5.000000e-01 : f32
    %549 = vector.broadcast %cst_167 : f32 to vector<2x6xf32>
    %550 = arith.mulf %549, %548 : vector<2x6xf32>
    %cst_168 = arith.constant 5.000000e-01 : f32
    %551 = vector.broadcast %cst_168 : f32 to vector<2x6xf32>
    %552 = arith.addf %550, %551 : vector<2x6xf32>
    %553 = vector.extract_strided_slice %537 {offsets = [0, 18], sizes = [2, 6], strides = [1, 1]} : vector<2x24xf32> to vector<2x6xf32>
    %554 = arith.mulf %547, %532 : vector<2x6xf32>
    %555 = arith.mulf %542, %553 : vector<2x6xf32>
    %556 = arith.addf %554, %555 : vector<2x6xf32>
    %557 = math.tanh %556 : vector<2x6xf32>
    %558 = arith.mulf %552, %557 : vector<2x6xf32>
    %cst_169 = arith.constant dense<0.000000e+00> : vector<2x24xf32>
    %559 = tpu.matmul %558, %13, %cst_169 {dimension_numbers = #tpu.dot_dimension_numbers<[1], [0], [0], [1], [0, 0, 1, 1], [], []>, precision = #tpu.contract_precision<fp32>} : vector<2x6xf32>, vector<6x24xf32>, vector<2x24xf32> -> vector<2x24xf32>
    %560 = arith.addf %409, %559 : vector<2x24xf32>
    %561 = math.tanh %560 : vector<2x24xf32>
    %562 = vector.extract_strided_slice %561 {offsets = [0, 0], sizes = [2, 6], strides = [1, 1]} : vector<2x24xf32> to vector<2x6xf32>
    %cst_170 = arith.constant 5.000000e-01 : f32
    %563 = vector.broadcast %cst_170 : f32 to vector<2x6xf32>
    %564 = arith.mulf %563, %562 : vector<2x6xf32>
    %cst_171 = arith.constant 5.000000e-01 : f32
    %565 = vector.broadcast %cst_171 : f32 to vector<2x6xf32>
    %566 = arith.addf %564, %565 : vector<2x6xf32>
    %567 = vector.extract_strided_slice %561 {offsets = [0, 6], sizes = [2, 6], strides = [1, 1]} : vector<2x24xf32> to vector<2x6xf32>
    %cst_172 = arith.constant 5.000000e-01 : f32
    %568 = vector.broadcast %cst_172 : f32 to vector<2x6xf32>
    %569 = arith.mulf %568, %567 : vector<2x6xf32>
    %cst_173 = arith.constant 5.000000e-01 : f32
    %570 = vector.broadcast %cst_173 : f32 to vector<2x6xf32>
    %571 = arith.addf %569, %570 : vector<2x6xf32>
    %572 = vector.extract_strided_slice %561 {offsets = [0, 12], sizes = [2, 6], strides = [1, 1]} : vector<2x24xf32> to vector<2x6xf32>
    %cst_174 = arith.constant 5.000000e-01 : f32
    %573 = vector.broadcast %cst_174 : f32 to vector<2x6xf32>
    %574 = arith.mulf %573, %572 : vector<2x6xf32>
    %cst_175 = arith.constant 5.000000e-01 : f32
    %575 = vector.broadcast %cst_175 : f32 to vector<2x6xf32>
    %576 = arith.addf %574, %575 : vector<2x6xf32>
    %577 = vector.extract_strided_slice %561 {offsets = [0, 18], sizes = [2, 6], strides = [1, 1]} : vector<2x24xf32> to vector<2x6xf32>
    %578 = arith.mulf %571, %556 : vector<2x6xf32>
    %579 = arith.mulf %566, %577 : vector<2x6xf32>
    %580 = arith.addf %578, %579 : vector<2x6xf32>
    %581 = math.tanh %580 : vector<2x6xf32>
    %582 = arith.mulf %576, %581 : vector<2x6xf32>
    %cst_176 = arith.constant dense<0.000000e+00> : vector<2x24xf32>
    %583 = tpu.matmul %582, %13, %cst_176 {dimension_numbers = #tpu.dot_dimension_numbers<[1], [0], [0], [1], [0, 0, 1, 1], [], []>, precision = #tpu.contract_precision<fp32>} : vector<2x6xf32>, vector<6x24xf32>, vector<2x24xf32> -> vector<2x24xf32>
    %584 = arith.addf %412, %583 : vector<2x24xf32>
    %585 = math.tanh %584 : vector<2x24xf32>
    %586 = vector.extract_strided_slice %585 {offsets = [0, 0], sizes = [2, 6], strides = [1, 1]} : vector<2x24xf32> to vector<2x6xf32>
    %cst_177 = arith.constant 5.000000e-01 : f32
    %587 = vector.broadcast %cst_177 : f32 to vector<2x6xf32>
    %588 = arith.mulf %587, %586 : vector<2x6xf32>
    %cst_178 = arith.constant 5.000000e-01 : f32
    %589 = vector.broadcast %cst_178 : f32 to vector<2x6xf32>
    %590 = arith.addf %588, %589 : vector<2x6xf32>
    %591 = vector.extract_strided_slice %585 {offsets = [0, 6], sizes = [2, 6], strides = [1, 1]} : vector<2x24xf32> to vector<2x6xf32>
    %cst_179 = arith.constant 5.000000e-01 : f32
    %592 = vector.broadcast %cst_179 : f32 to vector<2x6xf32>
    %593 = arith.mulf %592, %591 : vector<2x6xf32>
    %cst_180 = arith.constant 5.000000e-01 : f32
    %594 = vector.broadcast %cst_180 : f32 to vector<2x6xf32>
    %595 = arith.addf %593, %594 : vector<2x6xf32>
    %596 = vector.extract_strided_slice %585 {offsets = [0, 12], sizes = [2, 6], strides = [1, 1]} : vector<2x24xf32> to vector<2x6xf32>
    %cst_181 = arith.constant 5.000000e-01 : f32
    %597 = vector.broadcast %cst_181 : f32 to vector<2x6xf32>
    %598 = arith.mulf %597, %596 : vector<2x6xf32>
    %cst_182 = arith.constant 5.000000e-01 : f32
    %599 = vector.broadcast %cst_182 : f32 to vector<2x6xf32>
    %600 = arith.addf %598, %599 : vector<2x6xf32>
    %601 = vector.extract_strided_slice %585 {offsets = [0, 18], sizes = [2, 6], strides = [1, 1]} : vector<2x24xf32> to vector<2x6xf32>
    %602 = arith.mulf %595, %580 : vector<2x6xf32>
    %603 = arith.mulf %590, %601 : vector<2x6xf32>
    %604 = arith.addf %602, %603 : vector<2x6xf32>
    %605 = math.tanh %604 : vector<2x6xf32>
    %606 = arith.mulf %600, %605 : vector<2x6xf32>
    %cst_183 = arith.constant 0.000000e+00 : f32
    %607 = vector.broadcast %cst_183 : f32 to vector<2x6xf32>
    %608 = arith.maximumf %606, %607 : vector<2x6xf32>
    %cst_184 = arith.constant dense<0.000000e+00> : vector<2x6xf32>
    %609 = tpu.matmul %608, %14, %cst_184 {dimension_numbers = #tpu.dot_dimension_numbers<[1], [0], [0], [1], [0, 0, 1, 1], [], []>, precision = #tpu.contract_precision<fp32>} : vector<2x6xf32>, vector<6x6xf32>, vector<2x6xf32> -> vector<2x6xf32>
    %610 = vector.broadcast %11 : vector<1x6xf32> to vector<2x6xf32>
    %611 = arith.addf %609, %610 : vector<2x6xf32>
    %cst_185 = arith.constant 5.000000e-01 : f32
    %612 = vector.broadcast %cst_185 : f32 to vector<2x6xf32>
    %613 = arith.mulf %612, %611 : vector<2x6xf32>
    %614 = math.tanh %613 : vector<2x6xf32>
    %cst_186 = arith.constant 5.000000e-01 : f32
    %615 = vector.broadcast %cst_186 : f32 to vector<2x6xf32>
    %616 = arith.mulf %615, %614 : vector<2x6xf32>
    %cst_187 = arith.constant 5.000000e-01 : f32
    %617 = vector.broadcast %cst_187 : f32 to vector<2x6xf32>
    %618 = arith.addf %616, %617 : vector<2x6xf32>
    %c0_188 = arith.constant 0 : index
    %c0_189 = arith.constant 0 : index
    %619 = vector.load %arg4[%c0_188, %c0_189] : memref<2x6xf32, #tpu.memory_space<vmem>>, vector<2x6xf32>
    tpu.vector_store %arg4[%c0_188, %c0_189], %618 {strides = array<i32>} : memref<2x6xf32, #tpu.memory_space<vmem>>, vector<2x6xf32>,
    return
  }
}

</mosaic_0001>

<bundles_post_ra>
// kernel: model_forward.1
= control target key start
LH: loop header
LB: loop body
LE: loop exit
PB: predicated region body
PF: predicated region fallthrough
CT: control target
= control target key end

     0   :  { %9 = vsyncpa [#allocation3], 0  ;;  %s19169_s0 = inlined_call_operand.vmem [shape: f32[2,8,6], index: 0, kind: input, shape index: {}]   ;;  %s19170_s1 = inlined_call_operand.hbm [shape: f32[32,896], index: 1, kind: input, shape index: {}]   ;;  %s19171_s2 = inlined_call_operand.vmem [shape: f32[1,768], index: 2, kind: input, shape index: {}]   ;;  %s19172_s3 = inlined_call_operand.vmem [shape: f32[6,384], index: 3, kind: input, shape index: {}]   ;;  %s19173_s4 = inlined_call_operand.hbm [shape: f32[2,6], index: 4, kind: output, shape index: {}]  }
   0x1   :  { %10 = vsyncpa [#allocation4], 0  ;;  %s17523_s15 = smov [#allocation2]   ;;  %s17475_s19 = scalar_lea.hbm %s19170_s1, 3584 }
   0x2   :  { %s18_s16 = sshll.u32 %s17523_s15, 4  ;;  %p17476_p0 = scmp.ne.s32.totalorder %s19170_s1, %s17475_s19  ;;  %s19_s16 = int_to_ptr.vmem [resolvable:$true] %s18_s16 }
   0x3   :  { %p17479_p1 = scmp.lt.u32.totalorder %s17475_s19, %s19170_s1 }
   0x5   :  { %p17481_p2 = pnand %p17479_p1, %p17476_p0 }
   0x7   :  { %17484 = shalt.err (!%p17481_p2)
}
   0x8   :  { %s17485_s24 = scalar_lea.vmem %s19_s16, 3584  ;;  %p17490_p4 = scmp.lt.s32.totalorder %s19_s16, %s19_s16 }
   0x9   :  { %p17486_p3 = scmp.ne.s32.totalorder %s19_s16, %s17485_s24  ;;  %p17491_p5 = scmp.lt.s32.totalorder %s17485_s24, %s17485_s24 }
   0xb   :  { %p17492_p6 = por %p17491_p5, %p17490_p4 }
   0xd   :  { %p17493_p7 = pnand %p17492_p6, %p17486_p3 }
   0xf   :  { %17496 = shalt.err (!%p17493_p7)
}
  0x10   :  { %s17524_s25 = smov 896   ;;  %s17525_s26 = smov 56  }
  0x11   :  { %24 = dma.hbm_to_vmem [thread:$0]  %s19170_s1, 3584, %s19_s16, [#allocation3], %s17524_s25, %s17524_s25, %s17525_s26  }
  0x12   :  { %17519 = dma.done.wait [#allocation3], 3584  }
  0x13   :  { %17520 = vsyncadd [#allocation3], 4294963712  ;;  %v17526_v0 = vmov 0.0   ;;  %vm17527_vm0 = vmmov 0   ;;  %vm80_vm1 = vcmask 1045504   ;;  %vm76_vm2 = vcmask 48128  }
  0x14   :  { %15202 = vmatprep.subr.mxu1 %v17526_v0  ;;  %15204 = vmatprep.mubr.msk.f32.mxu1 %vm17527_vm0, %v17526_v0  ;;  %v66_v1 = vld [vmem:[%s19172_s3] sm:$0x3f]  ;;  %v14584_v5 = vld [vmem:[%s19169_s0 + $0x8] sm:$0xff]  ;;  %v34_v26 = vld [vmem:[#allocation2 + $0x70] sm:$0xff]  ;;  %v17528_v28 = vmov 0.0|0.0   ;;  %vm984_vm3 = vcmask 1040384  }
  0x15   :  { %15207 = vmatprep.subr.mxu0 %v17526_v0  ;;  %15209 = vmatprep.mubr.msk.f32.mxu0 %vm17527_vm0, %v17526_v0  ;;  %v69_v2 = vld [vmem:[%s19169_s0] sm:$0xff]  ;;  %v82_v3 = vsel %vm80_vm1, %v66_v1, 0  ;;  %v533_v8 = vsel %vm76_vm2, %v14584_v5, 0  ;;  %v32_v22 = vld [vmem:[#allocation2] sm:$0xff]  ;;  %v35_v27 = vld [vmem:[#allocation2 + $0xa8] sm:$0xff]  ;;  %v1031_v29 = vand.u32 4294901760, %v34_v26 }
  0x16   :  { %v78_v4 = vsel %vm76_vm2, %v69_v2, 0  ;;  %v17590_v6 = vand.u32 4294901760, %v82_v3  ;;  %v17595_v9 = vand.u32 4294901760, %v533_v8  ;;  %v33_v23 = vld [vmem:[#allocation2 + $0x38] sm:$0xff]  ;;  %v1025_v24 = vand.u32 4294901760, %v32_v22  ;;  %s17529_s9 = smov 32  }
  0x17   :  { %v17592_v7 = vand.u32 4294901760, %v78_v4  ;;  %v1028_v25 = vand.u32 4294901760, %v33_v23  ;;  %v1034_v30 = vand.u32 4294901760, %v35_v27  ;;  %v1119_v34 = vsub.f32 %v34_v26, %v1031_v29  ;;  %v14583_v57 = vld [vmem:[%s19171_s2] ss:$0 sm:$0xff]  ;;  %s17530_s10 = smov 64  }
  0x18   :  { %15203 = vmatpush3.msra.mxu1 %v17590_v6  ;;  %v162_v11 = vsub.f32 %v82_v3, %v17590_v6  ;;  %v602_v12 = vsub.f32 %v533_v8, %v17595_v9  ;;  %v1105_v31 = vsub.f32 %v32_v22, %v1025_v24  ;;  %vm1020_vm4 = vcmask 261120   ;;  %s17531_s17 = smov 96   ;;  %s17532_s22 = smov 110  }
  0x19   :  { %v151_v10 = vsub.f32 %v78_v4, %v17592_v7  ;;  %15232 = vmatprep.subr.mxu1 %v17526_v0  ;;  %v1112_v32 = vsub.f32 %v33_v23, %v1028_v25  ;;  %v1126_v35 = vsub.f32 %v35_v27, %v1034_v30  ;;  %v1120_v40 = vand.u32 4294901760, %v1119_v34  ;;  %s17533_s23 = smov 6   ;;  %s17534_s24 = smov 116  }
  0x1a   :  { %v163_v14 = vand.u32 4294901760, %v162_v11  ;;  %v603_v15 = vand.u32 4294901760, %v602_v12  ;;  %v1106_v37 = vand.u32 4294901760, %v1105_v31  ;;  %v17655_v42 = vpack.c.bf16 %v1028_v25, %v1025_v24  ;;  %s17535_s28 = smov [#allocation5]  }
  0x1b   :  { %v152_v13 = vand.u32 4294901760, %v151_v10  ;;  %v17637_v33 = vpack.c.bf16 %v1112_v32, %v1105_v31  ;;  %v17641_v36 = vpack.c.bf16 %v1126_v35, %v1119_v34  ;;  %v1113_v38 = vand.u32 4294901760, %v1112_v32  ;;  %s14574_s29 = sshll.u32 %s17535_s28, 4  ;;  %s14575_s29 = int_to_ptr.vmem [resolvable:$true] %s14574_s29 }
  0x1c   :  { %v164_v17 = vsub.f32 %v162_v11, %v163_v14  ;;  %v604_v18 = vsub.f32 %v602_v12, %v603_v15  ;;  %v1127_v41 = vand.u32 4294901760, %v1126_v35  ;;  %v1107_v43 = vsub.f32 %v1105_v31, %v1106_v37  ;;  %s17497_s30 = scalar_lea.vmem %s14575_s29, 32  ;;  %p17502_p9 = scmp.lt.s32.totalorder %s14575_s29, %s14575_s29 }
  0x1d   :  { %v153_v16 = vsub.f32 %v151_v10, %v152_v13  ;;  %v17652_v39 = vpack.c.bf16 %v1113_v38, %v1106_v37  ;;  %v1114_v44 = vsub.f32 %v1112_v32, %v1113_v38  ;;  %v17665_v46 = vpack.c.bf16 %v1034_v30, %v1031_v29  ;;  %p17498_p8 = scmp.ne.s32.totalorder %s14575_s29, %s17497_s30  ;;  %p17503_p10 = scmp.lt.s32.totalorder %s17497_s30, %s17497_s30 }
  0x1e   :  { %v165_v20 = vand.u32 4294901760, %v164_v17  ;;  %v605_v21 = vand.u32 4294901760, %v604_v18  ;;  %v17659_v45 = vpack.c.bf16 %v1127_v41, %v1120_v40  ;;  %v1108_v47 = vand.u32 4294901760, %v1107_v43 }
  0x1f   :  { %v154_v19 = vand.u32 4294901760, %v153_v16  ;;  %v1115_v48 = vand.u32 4294901760, %v1114_v44  ;;  %v1121_v49 = vsub.f32 %v1119_v34, %v1120_v40  ;;  %v1128_v50 = vsub.f32 %v1126_v35, %v1127_v41  ;;  %p17504_p11 = por %p17503_p10, %p17502_p9 }
  0x20   :  { %15208 = vmatpush3.msra.mxu0 %v165_v20  ;;  %vm5137_vm5 = vcmask 1041408   ;;  %vm5139_vm6 = vcmask 1042432   ;;  %vm5141_vm7 = vcmask 1043456   ;;  %vm5143_vm8 = vcmask 1044480  }
  0x21   :  { %15205 = vmatmul.mubr.f32.vlgmr.msra.gmra.mrb[0].mxu1 %v154_v19  ;;  %15210 = vmatmul.mubr.f32.vlgmr.msra.gmra.mrb[0].mxu0 %v17592_v7  ;;  %v17674_v51 = vpack.c.bf16 %v1115_v48, %v1108_v47  ;;  %v1122_v52 = vand.u32 4294901760, %v1121_v49  ;;  %v1129_v53 = vand.u32 4294901760, %v1128_v50  ;;  %vm5146_vm9 = vcmask 1046528   ;;  %p17505_p12 = pnand %p17504_p11, %p17498_p8 }
  0x22   :  { %15233 = vmatpush3.msra.mxu1 %v17590_v6  ;;  %15234 = vmatprep.mubr.msk.f32.mxu1 %vm17527_vm0, %v17526_v0  ;;  %vm14566_vm10 = vcmask 41984  }
  0x23   :  { %15237 = vmatprep.subr.mxu1 %v17526_v0  ;;  %15212 = vmatprep.subr.mxu0 %v17526_v0  ;;  %v17684_v54 = vpack.c.bf16 %v1129_v53, %v1122_v52 }
  0x24   :  { %15214 = vmatprep.mubr.msk.f32.mxu0 %vm17527_vm0, %v17526_v0  ;;  %15213 = vmatpush3.msra.mxu0 %v162_v11 }
  0x25   :  { %15235 = vmatmul.mubr.f32.vlgmr.msra.gmra.mrb[2].mxu1 %v605_v21  ;;  %15217 = vmatprep.subr.mxu0 %v17526_v0 }
  0x26   :  { %15238 = vmatpush3.msra.mxu1 %v165_v20  ;;  %15239 = vmatprep.mubr.msk.f32.mxu1 %vm17527_vm0, %v17526_v0 }
  0x27   :  { %15242 = vmatprep.subr.mxu1 %v17526_v0 }
  0x29   :  { %15215 = vmatmul.mubr.f32.vlgmr.msra.gmra.mrb[0].mxu0 %v151_v10 }
  0x2a   :  { %15218 = vmatpush3.msra.mxu0 %v17590_v6  ;;  %15219 = vmatprep.mubr.msk.f32.mxu0 %vm17527_vm0, %v17526_v0 }
  0x2b   :  { %15222 = vmatprep.subr.mxu0 %v17526_v0 }
  0x2d   :  { %15240 = vmatmul.mubr.f32.vlgmr.msra.gmra.mrb[2].mxu1 %v17595_v9 }
  0x2e   :  { %15243 = vmatpush3.msra.mxu1 %v162_v11  ;;  %15244 = vmatprep.mubr.msk.f32.mxu1 %vm17527_vm0, %v17526_v0 }
  0x2f   :  { %15247 = vmatprep.subr.mxu1 %v17526_v0 }
  0x31   :  { %15220 = vmatmul.mubr.f32.vlgmr.msra.gmra.mrb[0].mxu0 %v152_v13 }
  0x32   :  { %15223 = vmatpush3.msra.mxu0 %v163_v14  ;;  %15224 = vmatprep.mubr.msk.f32.mxu0 %vm17527_vm0, %v17526_v0 }
  0x33   :  { %15227 = vmatprep.subr.mxu0 %v17526_v0 }
  0x35   :  { %15245 = vmatmul.mubr.f32.vlgmr.msra.gmra.mrb[2].mxu1 %v602_v12 }
  0x36   :  { %15248 = vmatpush3.msra.mxu1 %v17590_v6  ;;  %15249 = vmatprep.mubr.msk.f32.mxu1 %vm17527_vm0, %v17526_v0 }
  0x37   :  { %15252 = vmatprep.subr.mxu1 %v17526_v0 }
  0x39   :  { %15225 = vmatmul.mubr.f32.vlgmr.msra.gmra.mrb[0].mxu0 %v17592_v7 }
  0x3a   :  { %15228 = vmatpush3.msra.mxu0 %v17590_v6  ;;  %15229 = vmatprep.mubr.msk.f32.mxu0 %vm17527_vm0, %v17526_v0 }
  0x3b   :  { %16600 = vmatprep.subr.bf16.mxu0 %v17528_v28 }
  0x3d   :  { %15250 = vmatmul.mubr.f32.vlgmr.msra.gmra.mrb[2].mxu1 %v603_v15 }
  0x3e   :  { %15253 = vmatpush3.msra.mxu1 %v163_v14  ;;  %15254 = vmatprep.mubr.msk.f32.mxu1 %vm17527_vm0, %v17526_v0 }
  0x3f   :  { %15257 = vmatprep.subr.mxu1 %v17526_v0 }
  0x41   :  { %15230 = vmatmul.mubr.f32.vlgmr.msra.gmra.mrb[0].mxu0 %v17592_v7 }
  0x42   :  { %16602 = vmatpush3.bf16.msra.mxu0 %v17637_v33  ;;  %15292 = vmatprep.mubr.msk.f32.mxu0 %vm17527_vm0, %v17526_v0 }
  0x43   :  { %16603 = vmatprep.subr.bf16.mxu0 %v17528_v28 }
  0x45   :  { %15255 = vmatmul.mubr.f32.vlgmr.msra.gmra.mrb[2].mxu1 %v17595_v9 }
  0x46   :  { %15258 = vmatpush3.msra.mxu1 %v17590_v6  ;;  %15259 = vmatprep.mubr.msk.f32.mxu1 %vm17527_vm0, %v17526_v0 }
  0x47   :  { %16588 = vmatprep.subr.bf16.mxu1 %v17528_v28  ;;  %16605 = vmatpush3.bf16.msra.mxu0 %v17641_v36 }
  0x48   :  { %16612 = vmatprep.subr.bf16.mxu0 %v17528_v28 }
  0x4a   :  { %15293 = vmatmul.mubr.f32.vlgmr.msra.gmra.mrb[2].mxu0 %v17526_v0 }
  0x4b   :  { %16614 = vmatpush3.bf16.msra.mxu0 %v17652_v39  ;;  %15314 = vmatprep.mubr.msk.f32.mxu0 %vm17527_vm0, %v17526_v0 }
  0x4c   :  { %16615 = vmatprep.subr.bf16.mxu0 %v17528_v28 }
  0x4d   :  { %15260 = vmatmul.mubr.f32.vlgmr.msra.gmra.mrb[2].mxu1 %v17595_v9 }
  0x4e   :  { %16590 = vmatpush3.bf16.msra.mxu1 %v17655_v42  ;;  %15270 = vmatprep.mubr.msk.f32.mxu1 %vm17527_vm0, %v17526_v0 }
  0x4f   :  { %16591 = vmatprep.subr.bf16.mxu1 %v17528_v28  ;;  %16617 = vmatpush3.bf16.msra.mxu0 %v17659_v45 }
  0x50   :  { %16624 = vmatprep.subr.bf16.mxu0 %v17528_v28 }
  0x52   :  { %16593 = vmatpush3.bf16.msra.mxu1 %v17665_v46  ;;  %15315 = vmatmul.mubr.f32.vlgmr.msra.gmra.mrb[4].mxu0 %v17526_v0 }
  0x53   :  { %16594 = vmatprep.subr.bf16.mxu1 %v17528_v28  ;;  %16626 = vmatpush3.bf16.msra.mxu0 %v17655_v42 }
  0x54   :  { %16627 = vmatprep.subr.bf16.mxu0 %v17528_v28  ;;  %15336 = vmatprep.mubr.msk.f32.mxu0 %vm17527_vm0, %v17526_v0 }
  0x55   :  { %15271 = vmatmul.mubr.f32.vlgmr.msra.gmra.mrb[4].mxu1 %v17526_v0 }
  0x56   :  { %16596 = vmatpush3.bf16.msra.mxu1 %v17674_v51  ;;  %15281 = vmatprep.mubr.msk.f32.mxu1 %vm17527_vm0, %v17526_v0 }
  0x57   :  { %16597 = vmatprep.subr.bf16.mxu1 %v17528_v28  ;;  %16629 = vmatpush3.bf16.msra.mxu0 %v17665_v46 }
  0x58   :  { %16636 = vmatprep.subr.bf16.mxu0 %v17528_v28 }
  0x5a   :  { %16599 = vmatpush3.bf16.msra.mxu1 %v17684_v54 }
  0x5b   :  { %16606 = vmatprep.subr.bf16.mxu1 %v17528_v28 }
  0x5d   :  { %15282 = vmatmul.mubr.f32.vlgmr.msra.gmra.mrb[6].mxu1 %v17526_v0 }
  0x5e   :  { %16608 = vmatpush3.bf16.msra.mxu1 %v17655_v42  ;;  %15303 = vmatprep.mubr.msk.f32.mxu1 %vm17527_vm0, %v17526_v0 }
  0x5f   :  { %16609 = vmatprep.subr.bf16.mxu1 %v17528_v28 }
  0x62   :  { %16611 = vmatpush3.bf16.msra.mxu1 %v17665_v46 }
  0x63   :  { %16618 = vmatprep.subr.bf16.mxu1 %v17528_v28 }
  0x65   :  { %15304 = vmatmul.mubr.f32.vlgmr.msra.gmra.mrb[8].mxu1 %v17526_v0 }
  0x66   :  { %16620 = vmatpush3.bf16.msra.mxu1 %v17655_v42  ;;  %15325 = vmatprep.mubr.msk.f32.mxu1 %vm17527_vm0, %v17526_v0 }
  0x67   :  { %16621 = vmatprep.subr.bf16.mxu1 %v17528_v28 }
  0x6a   :  { %16623 = vmatpush3.bf16.msra.mxu1 %v17665_v46 }
  0x6b   :  { %16630 = vmatprep.subr.bf16.mxu1 %v17528_v28 }
  0x6d   :  { %15326 = vmatmul.mubr.f32.vlgmr.msra.gmra.mrb[10].mxu1 %v17526_v0 }
  0x6e   :  { %16632 = vmatpush3.bf16.msra.mxu1 %v17674_v51  ;;  %15347 = vmatprep.mubr.msk.f32.mxu1 %vm17527_vm0, %v17526_v0 }
  0x6f   :  { %16633 = vmatprep.subr.bf16.mxu1 %v17528_v28 }
  0x72   :  { %16635 = vmatpush3.bf16.msra.mxu1 %v17684_v54 }
  0x73   :  { %16642 = vmatprep.subr.bf16.mxu1 %v17528_v28 }
  0xf4   :  { %v156_v55 = vpop.f32.mrb[0].mxu1 }
  0xf5   :  { %v15206_v56 = vpop.f32.mrb[1].mxu1  ;;  %v157_v58 = vadd.f32 %v14583_v57, %v156_v55 }
 0x114   :  { %v526_v59 = vpop.f32.mrb[0].mxu0 }
 0x115   :  { %v17261_v60 = vadd.f32 %v526_v59, %v157_v58  ;;  %v15231_v61 = vpop.f32.mrb[1].mxu0 }
 0x117   :  { %v987_v4 = vrot.slane %v17261_v60, 1  ;;  %v990_v5 = vrot.slane %v17261_v60, 2  ;;  %v995_v6 = vrot.slane %v17261_v60, 3  ;;  %v1000_v7 = vrot.slane %v17261_v60, 4 }
 0x118   :  { %v1005_v8 = vrot.slane %v17261_v60, 5  ;;  %v1010_v9 = vrot.slane %v17261_v60, 6  ;;  %v1015_v10 = vrot.slane %v17261_v60, 7 }
 0x11d   :  { %v1270_v62 = vpop.f32.mrb[2].mxu0 }
 0x11e   :  { %v15294_v63 = vpop.f32.mrb[3].mxu0 }
 0x120   :  { %v977_v1 = vpop.f32.mrb[2].mxu1 }
 0x121   :  { %v17262_v2 = vadd.f32 %v14583_v57, %v977_v1  ;;  %v15261_v3 = vpop.f32.mrb[3].mxu1 }
 0x123   :  { %v982_v11 = vrot.slane %v17262_v2, 7  ;;  %v17718_v12 = vsel %vm984_vm3, %v987_v4, %v17262_v2  ;;  %v992_v13 = vrot.slane %v17262_v2, 1  ;;  %v997_v14 = vrot.slane %v17262_v2, 2 }
 0x124   :  { %v1002_v15 = vrot.slane %v17262_v2, 3  ;;  %v1007_v16 = vrot.slane %v17262_v2, 4  ;;  %v1012_v17 = vrot.slane %v17262_v2, 5  ;;  %v1017_v18 = vrot.slane %v17262_v2, 6 }
 0x125   :  { %v1430_v19 = vpop.f32.mrb[4].mxu0  ;;  %v985_v20 = vsel %vm984_vm3, %v17261_v60, %v982_v11  ;;  %v17722_v21 = vsel %vm984_vm3, %v990_v5, %v992_v13  ;;  %v17725_v22 = vsel %vm984_vm3, %v995_v6, %v997_v14 }
 0x126   :  { %v15316_v23 = vpop.f32.mrb[5].mxu0  ;;  %v17728_v24 = vsel %vm984_vm3, %v1000_v7, %v1002_v15  ;;  %v17731_v25 = vsel %vm984_vm3, %v1005_v8, %v1007_v16  ;;  %v17734_v26 = vsel %vm984_vm3, %v1010_v9, %v1012_v17  ;;  %v17737_v27 = vsel %vm984_vm3, %v1015_v10, %v1017_v18 }
 0x128   :  { %v1099_v29 = vpop.f32.mrb[4].mxu1 }
 0x129   :  { %v15272_v30 = vpop.f32.mrb[5].mxu1 }
 0x130   :  { %v1190_v31 = vpop.f32.mrb[6].mxu1 }
 0x131   :  { %v1191_v32 = vadd.f32 %v1190_v31, %v1099_v29  ;;  %v15283_v34 = vpop.f32.mrb[7].mxu1 }
 0x133   :  { %v1271_v35 = vadd.f32 %v1270_v62, %v1191_v32 }
 0x138   :  { %v1347_v37 = vpop.f32.mrb[8].mxu1 }
 0x139   :  { %v1348_v38 = vadd.f32 %v1347_v37, %v1271_v35  ;;  %v15305_v40 = vpop.f32.mrb[9].mxu1 }
 0x13b   :  { %v1431_v41 = vadd.f32 %v1430_v19, %v1348_v38 }
 0x140   :  { %v1505_v43 = vpop.f32.mrb[10].mxu1 }
 0x141   :  { %v1506_v44 = vadd.f32 %v1505_v43, %v1431_v41  ;;  %v15327_v47 = vpop.f32.mrb[11].mxu1 }
 0x143   :  { %v1509_v48 = vadd.f32 %v1506_v44, %v985_v20 }
 0x145   :  { %17389 = vtanh.f32 %v1509_v48 }
 0x14f   :  { %v17390_v49 = vpop.eup %17389 }
 0x150   :  { %1515 = vrot.lane.b32.xlu0 %v17390_v49, %s17529_s9  ;;  %v1511_v50 = vmul.f32 0.5, %v17390_v49 }
 0x152   :  { %v1512_v52 = vadd.f32 0.5, %v1511_v50 }
 0x154   :  { %v1513_v56 = vmul.f32 0.0, %v1512_v52 }
 0x1c2   :  { %v1516_v53 = vpop.permute.xlu0 %1515 }
 0x1c3   :  { %v1518_v55 = vmul.f32 %v1516_v53, %v1512_v52 }
 0x1c5   :  { %1520 = vrot.lane.b32.xlu0 %v1518_v55, %s17529_s9 }
 0x237   :  { %v1521_v57 = vpop.permute.xlu0 %1520 }
 0x238   :  { %v17741_v58 = vadd.f32 %v1521_v57, %v1513_v56 }
 0x23a   :  { %17391 = vtanh.f32 %v17741_v58 }
 0x244   :  { %v17392_v59 = vpop.eup %17391 }
 0x245   :  { %1526 = vrot.lane.b32.xlu1 %v17392_v59, %s17529_s9 }
 0x2b7   :  { %v1527_v60 = vpop.permute.xlu1 %1526 }
 0x2b8   :  { %v17745_v61 = vmul.f32 %v1527_v60, %v1512_v52 }
 0x2ba   :  { %1532 = vrot.lane.b32.xlu1 %v17745_v61, %s17530_s10 }
 0x32c   :  { %v1533_v62 = vpop.permute.xlu1 %1532 }
 0x32d   :  { %v1534_v63 = vsel %vm1020_vm4, %v1533_v62, 0 }
 0x32e   :  { %v1605_v1 = vand.u32 4294901760, %v1534_v63 }
 0x330   :  { %v1606_v2 = vsub.f32 %v1534_v63, %v1605_v1  ;;  %15348 = vmatmul.mubr.f32.vlgmr.msra.gmra.mrb[12].mxu1 %v1605_v1 }
 0x331   :  { %16644 = vmatpush3.bf16.msra.mxu1 %v17655_v42  ;;  %15369 = vmatprep.mubr.msk.f32.mxu1 %vm17527_vm0, %v17526_v0 }
 0x332   :  { %v1607_v3 = vand.u32 4294901760, %v1606_v2  ;;  %16645 = vmatprep.subr.bf16.mxu1 %v17528_v28 }
 0x334   :  { %v1608_v4 = vsub.f32 %v1606_v2, %v1607_v3 }
 0x335   :  { %16647 = vmatpush3.bf16.msra.mxu1 %v17665_v46 }
 0x336   :  { %v1609_v5 = vand.u32 4294901760, %v1608_v4  ;;  %16654 = vmatprep.subr.bf16.mxu1 %v17528_v28 }
 0x338   :  { %15370 = vmatmul.mubr.f32.vlgmr.msra.gmra.mrb[14].mxu1 %v1607_v3  ;;  %15337 = vmatmul.mubr.f32.vlgmr.msra.gmra.mrb[6].mxu0 %v1609_v5 }
 0x339   :  { %16638 = vmatpush3.bf16.msra.mxu0 %v17637_v33  ;;  %16656 = vmatpush3.bf16.msra.mxu1 %v17655_v42 }
 0x33a   :  { %16639 = vmatprep.subr.bf16.mxu0 %v17528_v28  ;;  %16657 = vmatprep.subr.bf16.mxu1 %v17528_v28 }
 0x33b   :  { %15358 = vmatprep.mubr.msk.f32.mxu0 %vm17527_vm0, %v17526_v0  ;;  %15391 = vmatprep.mubr.msk.f32.mxu1 %vm17527_vm0, %v17526_v0 }
 0x33d   :  { %16641 = vmatpush3.bf16.msra.mxu0 %v17641_v36  ;;  %16659 = vmatpush3.bf16.msra.mxu1 %v17665_v46 }
 0x33e   :  { %16648 = vmatprep.subr.bf16.mxu0 %v17528_v28  ;;  %16666 = vmatprep.subr.bf16.mxu1 %v17528_v28 }
 0x340   :  { %15359 = vmatmul.mubr.f32.vlgmr.msra.gmra.mrb[8].mxu0 %v1606_v2  ;;  %15392 = vmatmul.mubr.f32.vlgmr.msra.gmra.mrb[16].mxu1 %v1605_v1 }
 0x341   :  { %16650 = vmatpush3.bf16.msra.mxu0 %v17652_v39  ;;  %15380 = vmatprep.mubr.msk.f32.mxu0 %vm17527_vm0, %v17526_v0 }
 0x342   :  { %16651 = vmatprep.subr.bf16.mxu0 %v17528_v28  ;;  %16668 = vmatpush3.bf16.msra.mxu1 %v17674_v51 }
 0x343   :  { %16669 = vmatprep.subr.bf16.mxu1 %v17528_v28  ;;  %15413 = vmatprep.mubr.msk.f32.mxu1 %vm17527_vm0, %v17526_v0 }
 0x345   :  { %16653 = vmatpush3.bf16.msra.mxu0 %v17659_v45 }
 0x346   :  { %16671 = vmatpush3.bf16.msra.mxu1 %v17684_v54  ;;  %16660 = vmatprep.subr.bf16.mxu0 %v17528_v28 }
 0x347   :  { %16678 = vmatprep.subr.bf16.mxu1 %v17528_v28 }
 0x348   :  { %15381 = vmatmul.mubr.f32.vlgmr.msra.gmra.mrb[10].mxu0 %v1605_v1 }
 0x349   :  { %16662 = vmatpush3.bf16.msra.mxu0 %v17655_v42  ;;  %15402 = vmatprep.mubr.msk.f32.mxu0 %vm17527_vm0, %v17526_v0 }
 0x34a   :  { %16663 = vmatprep.subr.bf16.mxu0 %v17528_v28 }
 0x34d   :  { %16665 = vmatpush3.bf16.msra.mxu0 %v17665_v46 }
 0x34e   :  { %16672 = vmatprep.subr.bf16.mxu0 %v17528_v28 }
 0x403   :  { %v1702_v6 = vpop.f32.mrb[12].mxu1 }
 0x404   :  { %v15349_v7 = vpop.f32.mrb[13].mxu1 }
 0x40b   :  { %v1859_v8 = vpop.f32.mrb[14].mxu1  ;;  %v1611_v9 = vpop.f32.mrb[6].mxu0 }
 0x40c   :  { %v1703_v10 = vadd.f32 %v1702_v6, %v1611_v9  ;;  %v15371_v11 = vpop.f32.mrb[15].mxu1  ;;  %v15338_v13 = vpop.f32.mrb[7].mxu0 }
 0x413   :  { %v1782_v14 = vpop.f32.mrb[8].mxu0  ;;  %v2017_v15 = vpop.f32.mrb[16].mxu1 }
 0x414   :  { %v1783_v16 = vadd.f32 %v1782_v14, %v1703_v10  ;;  %v15360_v17 = vpop.f32.mrb[9].mxu0  ;;  %v15393_v18 = vpop.f32.mrb[17].mxu1 }
 0x416   :  { %v1860_v19 = vadd.f32 %v1859_v8, %v1783_v16 }
 0x41b   :  { %v1942_v20 = vpop.f32.mrb[10].mxu0 }
 0x41c   :  { %v1943_v23 = vadd.f32 %v1942_v20, %v1860_v19  ;;  %v15382_v29 = vpop.f32.mrb[11].mxu0 }
 0x41e   :  { %v2018_v30 = vadd.f32 %v2017_v15, %v1943_v23 }
 0x420   :  { %v2021_v31 = vadd.f32 %v2018_v30, %v17718_v12  ;;  %v1530_v12 = vmax.f32 %v17745_v61, 0.0 }
 0x422   :  { %17393 = vtanh.f32 %v2021_v31  ;;  %v5149_v49 = vrot.slane %v1530_v12, 1 }
 0x42c   :  { %v17394_v32 = vpop.eup %17393 }
 0x42d   :  { %2027 = vrot.lane.b32.xlu0 %v17394_v32, %s17529_s9  ;;  %v2023_v34 = vmul.f32 0.5, %v17394_v32 }
 0x42f   :  { %v2024_v35 = vadd.f32 0.5, %v2023_v34 }
 0x431   :  { %v2025_v40 = vmul.f32 %v2024_v35, %v17741_v58 }
 0x49f   :  { %v2028_v37 = vpop.permute.xlu0 %2027 }
 0x4a0   :  { %v2030_v38 = vmul.f32 %v2028_v37, %v2024_v35 }
 0x4a2   :  { %2032 = vrot.lane.b32.xlu1 %v2030_v38, %s17529_s9 }
 0x514   :  { %v2033_v41 = vpop.permute.xlu1 %2032 }
 0x515   :  { %v17790_v43 = vadd.f32 %v2033_v41, %v2025_v40 }
 0x517   :  { %17395 = vtanh.f32 %v17790_v43 }
 0x521   :  { %v17396_v44 = vpop.eup %17395 }
 0x522   :  { %2038 = vrot.lane.b32.xlu0 %v17396_v44, %s17529_s9 }
 0x594   :  { %v2039_v47 = vpop.permute.xlu0 %2038 }
 0x595   :  { %v2041_v48 = vmul.f32 %v2039_v47, %v2024_v35 }
 0x597   :  { %v2042_v50 = vmax.f32 %v2041_v48, 0.0  ;;  %2044 = vrot.lane.b32.xlu1 %v2041_v48, %s17530_s10 }
 0x599   :  { %v5116_v52 = vrot.slane %v2042_v50, 7  ;;  %v17797_v53 = vsel %vm984_vm3, %v5149_v49, %v2042_v50 }
 0x59b   :  { %v17800_v55 = vsel %vm984_vm3, %v1530_v12, %v5116_v52 }
 0x609   :  { %v2045_v56 = vpop.permute.xlu1 %2044 }
 0x60a   :  { %v2046_v57 = vsel %vm1020_vm4, %v2045_v56, 0 }
 0x60b   :  { %v2117_v58 = vand.u32 4294901760, %v2046_v57 }
 0x60d   :  { %v2118_v59 = vsub.f32 %v2046_v57, %v2117_v58  ;;  %15414 = vmatmul.mubr.f32.vlgmr.msra.gmra.mrb[18].mxu1 %v2117_v58 }
 0x60e   :  { %16680 = vmatpush3.bf16.msra.mxu1 %v17655_v42  ;;  %15435 = vmatprep.mubr.msk.f32.mxu1 %vm17527_vm0, %v17526_v0 }
 0x60f   :  { %v2119_v60 = vand.u32 4294901760, %v2118_v59  ;;  %16681 = vmatprep.subr.bf16.mxu1 %v17528_v28 }
 0x611   :  { %v2120_v61 = vsub.f32 %v2118_v59, %v2119_v60 }
 0x612   :  { %16683 = vmatpush3.bf16.msra.mxu1 %v17665_v46 }
 0x613   :  { %v2121_v62 = vand.u32 4294901760, %v2120_v61  ;;  %16690 = vmatprep.subr.bf16.mxu1 %v17528_v28 }
 0x615   :  { %15436 = vmatmul.mubr.f32.vlgmr.msra.gmra.mrb[20].mxu1 %v2119_v60  ;;  %15403 = vmatmul.mubr.f32.vlgmr.msra.gmra.mrb[12].mxu0 %v2121_v62 }
 0x616   :  { %16674 = vmatpush3.bf16.msra.mxu0 %v17637_v33  ;;  %16692 = vmatpush3.bf16.msra.mxu1 %v17655_v42 }
 0x617   :  { %16675 = vmatprep.subr.bf16.mxu0 %v17528_v28  ;;  %16693 = vmatprep.subr.bf16.mxu1 %v17528_v28 }
 0x618   :  { %15424 = vmatprep.mubr.msk.f32.mxu0 %vm17527_vm0, %v17526_v0  ;;  %15457 = vmatprep.mubr.msk.f32.mxu1 %vm17527_vm0, %v17526_v0 }
 0x61a   :  { %16677 = vmatpush3.bf16.msra.mxu0 %v17641_v36  ;;  %16695 = vmatpush3.bf16.msra.mxu1 %v17665_v46 }
 0x61b   :  { %16684 = vmatprep.subr.bf16.mxu0 %v17528_v28  ;;  %16702 = vmatprep.subr.bf16.mxu1 %v17528_v28 }
 0x61d   :  { %15425 = vmatmul.mubr.f32.vlgmr.msra.gmra.mrb[14].mxu0 %v2118_v59  ;;  %15458 = vmatmul.mubr.f32.vlgmr.msra.gmra.mrb[22].mxu1 %v2117_v58 }
 0x61e   :  { %16686 = vmatpush3.bf16.msra.mxu0 %v17652_v39  ;;  %15446 = vmatprep.mubr.msk.f32.mxu0 %vm17527_vm0, %v17526_v0 }
 0x61f   :  { %16687 = vmatprep.subr.bf16.mxu0 %v17528_v28  ;;  %16704 = vmatpush3.bf16.msra.mxu1 %v17674_v51 }
 0x620   :  { %16705 = vmatprep.subr.bf16.mxu1 %v17528_v28  ;;  %15479 = vmatprep.mubr.msk.f32.mxu1 %vm17527_vm0, %v17526_v0 }
 0x622   :  { %16689 = vmatpush3.bf16.msra.mxu0 %v17659_v45 }
 0x623   :  { %16707 = vmatpush3.bf16.msra.mxu1 %v17684_v54  ;;  %16696 = vmatprep.subr.bf16.mxu0 %v17528_v28 }
 0x624   :  { %16714 = vmatprep.subr.bf16.mxu1 %v17528_v28 }
 0x625   :  { %15447 = vmatmul.mubr.f32.vlgmr.msra.gmra.mrb[16].mxu0 %v2117_v58 }
 0x626   :  { %16698 = vmatpush3.bf16.msra.mxu0 %v17655_v42  ;;  %15468 = vmatprep.mubr.msk.f32.mxu0 %vm17527_vm0, %v17526_v0 }
 0x627   :  { %16699 = vmatprep.subr.bf16.mxu0 %v17528_v28 }
 0x62a   :  { %16701 = vmatpush3.bf16.msra.mxu0 %v17665_v46 }
 0x62b   :  { %16708 = vmatprep.subr.bf16.mxu0 %v17528_v28 }
 0x6e0   :  { %v2214_v63 = vpop.f32.mrb[18].mxu1 }
 0x6e1   :  { %v15415_v1 = vpop.f32.mrb[19].mxu1 }
 0x6e8   :  { %v2371_v2 = vpop.f32.mrb[20].mxu1  ;;  %v2123_v3 = vpop.f32.mrb[12].mxu0 }
 0x6e9   :  { %v2215_v4 = vadd.f32 %v2214_v63, %v2123_v3  ;;  %v15437_v5 = vpop.f32.mrb[21].mxu1  ;;  %v15404_v6 = vpop.f32.mrb[13].mxu0 }
 0x6f0   :  { %v2294_v7 = vpop.f32.mrb[14].mxu0  ;;  %v2529_v8 = vpop.f32.mrb[22].mxu1 }
 0x6f1   :  { %v2295_v9 = vadd.f32 %v2294_v7, %v2215_v4  ;;  %v15426_v10 = vpop.f32.mrb[15].mxu0  ;;  %v15459_v11 = vpop.f32.mrb[23].mxu1 }
 0x6f3   :  { %v2372_v13 = vadd.f32 %v2371_v2, %v2295_v9 }
 0x6f8   :  { %v2454_v14 = vpop.f32.mrb[16].mxu0 }
 0x6f9   :  { %v2455_v15 = vadd.f32 %v2454_v14, %v2372_v13  ;;  %v15448_v16 = vpop.f32.mrb[17].mxu0 }
 0x6fb   :  { %v2530_v17 = vadd.f32 %v2529_v8, %v2455_v15 }
 0x6fd   :  { %v2533_v18 = vadd.f32 %v2530_v17, %v17722_v21 }
 0x6ff   :  { %17397 = vtanh.f32 %v2533_v18 }
 0x709   :  { %v17398_v19 = vpop.eup %17397 }
 0x70a   :  { %2539 = vrot.lane.b32.xlu0 %v17398_v19, %s17529_s9  ;;  %v2535_v20 = vmul.f32 0.5, %v17398_v19 }
 0x70c   :  { %v2536_v23 = vadd.f32 0.5, %v2535_v20 }
 0x70e   :  { %v2537_v31 = vmul.f32 %v2536_v23, %v17790_v43 }
 0x77c   :  { %v2540_v29 = vpop.permute.xlu0 %2539 }
 0x77d   :  { %v2542_v30 = vmul.f32 %v2540_v29, %v2536_v23 }
 0x77f   :  { %2544 = vrot.lane.b32.xlu1 %v2542_v30, %s17529_s9 }
 0x7f1   :  { %v2545_v32 = vpop.permute.xlu1 %2544 }
 0x7f2   :  { %v17843_v34 = vadd.f32 %v2545_v32, %v2537_v31 }
 0x7f4   :  { %17399 = vtanh.f32 %v17843_v34 }
 0x7fe   :  { %v17400_v35 = vpop.eup %17399 }
 0x7ff   :  { %2550 = vrot.lane.b32.xlu0 %v17400_v35, %s17529_s9 }
 0x871   :  { %v2551_v21 = vpop.permute.xlu0 %2550 }
 0x872   :  { %v2553_v37 = vmul.f32 %v2551_v21, %v2536_v23 }
 0x874   :  { %v2554_v38 = vmax.f32 %v2553_v37, 0.0  ;;  %2556 = vrot.lane.b32.xlu1 %v2553_v37, %s17530_s10 }
 0x876   :  { %v5119_v40 = vrot.slane %v2554_v38, 6  ;;  %v5151_v41 = vrot.slane %v2554_v38, 7 }
 0x878   :  { %v17849_v44 = vsel %vm5137_vm5, %v17800_v55, %v5119_v40  ;;  %v17852_v43 = vsel %vm5137_vm5, %v17797_v53, %v5151_v41 }
 0x8e6   :  { %v2557_v12 = vpop.permute.xlu1 %2556 }
 0x8e7   :  { %v2558_v47 = vsel %vm1020_vm4, %v2557_v12, 0 }
 0x8e8   :  { %v2629_v48 = vand.u32 4294901760, %v2558_v47 }
 0x8ea   :  { %v2630_v49 = vsub.f32 %v2558_v47, %v2629_v48  ;;  %15480 = vmatmul.mubr.f32.vlgmr.msra.gmra.mrb[24].mxu1 %v2629_v48 }
 0x8eb   :  { %16716 = vmatpush3.bf16.msra.mxu1 %v17655_v42  ;;  %15501 = vmatprep.mubr.msk.f32.mxu1 %vm17527_vm0, %v17526_v0 }
 0x8ec   :  { %v2631_v50 = vand.u32 4294901760, %v2630_v49  ;;  %16717 = vmatprep.subr.bf16.mxu1 %v17528_v28 }
 0x8ee   :  { %v2632_v52 = vsub.f32 %v2630_v49, %v2631_v50 }
 0x8ef   :  { %16719 = vmatpush3.bf16.msra.mxu1 %v17665_v46 }
 0x8f0   :  { %v2633_v55 = vand.u32 4294901760, %v2632_v52  ;;  %16726 = vmatprep.subr.bf16.mxu1 %v17528_v28 }
 0x8f2   :  { %15502 = vmatmul.mubr.f32.vlgmr.msra.gmra.mrb[26].mxu1 %v2631_v50  ;;  %15469 = vmatmul.mubr.f32.vlgmr.msra.gmra.mrb[18].mxu0 %v2633_v55 }
 0x8f3   :  { %16710 = vmatpush3.bf16.msra.mxu0 %v17637_v33  ;;  %16728 = vmatpush3.bf16.msra.mxu1 %v17655_v42 }
 0x8f4   :  { %16711 = vmatprep.subr.bf16.mxu0 %v17528_v28  ;;  %16729 = vmatprep.subr.bf16.mxu1 %v17528_v28 }
 0x8f5   :  { %15490 = vmatprep.mubr.msk.f32.mxu0 %vm17527_vm0, %v17526_v0  ;;  %15523 = vmatprep.mubr.msk.f32.mxu1 %vm17527_vm0, %v17526_v0 }
 0x8f7   :  { %16713 = vmatpush3.bf16.msra.mxu0 %v17641_v36  ;;  %16731 = vmatpush3.bf16.msra.mxu1 %v17665_v46 }
 0x8f8   :  { %16720 = vmatprep.subr.bf16.mxu0 %v17528_v28  ;;  %16738 = vmatprep.subr.bf16.mxu1 %v17528_v28 }
 0x8fa   :  { %15491 = vmatmul.mubr.f32.vlgmr.msra.gmra.mrb[20].mxu0 %v2630_v49  ;;  %15524 = vmatmul.mubr.f32.vlgmr.msra.gmra.mrb[28].mxu1 %v2629_v48 }
 0x8fb   :  { %16722 = vmatpush3.bf16.msra.mxu0 %v17652_v39  ;;  %15512 = vmatprep.mubr.msk.f32.mxu0 %vm17527_vm0, %v17526_v0 }
 0x8fc   :  { %16723 = vmatprep.subr.bf16.mxu0 %v17528_v28  ;;  %16740 = vmatpush3.bf16.msra.mxu1 %v17674_v51 }
 0x8fd   :  { %16741 = vmatprep.subr.bf16.mxu1 %v17528_v28  ;;  %15545 = vmatprep.mubr.msk.f32.mxu1 %vm17527_vm0, %v17526_v0 }
 0x8ff   :  { %16725 = vmatpush3.bf16.msra.mxu0 %v17659_v45 }
 0x900   :  { %16743 = vmatpush3.bf16.msra.mxu1 %v17684_v54  ;;  %16732 = vmatprep.subr.bf16.mxu0 %v17528_v28 }
 0x901   :  { %16750 = vmatprep.subr.bf16.mxu1 %v17528_v28 }
 0x902   :  { %15513 = vmatmul.mubr.f32.vlgmr.msra.gmra.mrb[22].mxu0 %v2629_v48 }
 0x903   :  { %16734 = vmatpush3.bf16.msra.mxu0 %v17655_v42  ;;  %15534 = vmatprep.mubr.msk.f32.mxu0 %vm17527_vm0, %v17526_v0 }
 0x904   :  { %16735 = vmatprep.subr.bf16.mxu0 %v17528_v28 }
 0x907   :  { %16737 = vmatpush3.bf16.msra.mxu0 %v17665_v46 }
 0x908   :  { %16744 = vmatprep.subr.bf16.mxu0 %v17528_v28 }
 0x9bd   :  { %v2726_v53 = vpop.f32.mrb[24].mxu1 }
 0x9be   :  { %v15481_v56 = vpop.f32.mrb[25].mxu1 }
 0x9c5   :  { %v2883_v57 = vpop.f32.mrb[26].mxu1  ;;  %v2635_v58 = vpop.f32.mrb[18].mxu0 }
 0x9c6   :  { %v2727_v59 = vadd.f32 %v2726_v53, %v2635_v58  ;;  %v15503_v60 = vpop.f32.mrb[27].mxu1  ;;  %v15470_v61 = vpop.f32.mrb[19].mxu0 }
 0x9cd   :  { %v2806_v62 = vpop.f32.mrb[20].mxu0  ;;  %v3041_v63 = vpop.f32.mrb[28].mxu1 }
 0x9ce   :  { %v2807_v1 = vadd.f32 %v2806_v62, %v2727_v59  ;;  %v15492_v2 = vpop.f32.mrb[21].mxu0  ;;  %v15525_v3 = vpop.f32.mrb[29].mxu1 }
 0x9d0   :  { %v2884_v4 = vadd.f32 %v2883_v57, %v2807_v1 }
 0x9d5   :  { %v2966_v5 = vpop.f32.mrb[22].mxu0 }
 0x9d6   :  { %v2967_v6 = vadd.f32 %v2966_v5, %v2884_v4  ;;  %v15514_v7 = vpop.f32.mrb[23].mxu0 }
 0x9d8   :  { %v3042_v8 = vadd.f32 %v3041_v63, %v2967_v6 }
 0x9da   :  { %v3045_v9 = vadd.f32 %v3042_v8, %v17725_v22 }
 0x9dc   :  { %17401 = vtanh.f32 %v3045_v9 }
 0x9e6   :  { %v17402_v10 = vpop.eup %17401 }
 0x9e7   :  { %3051 = vrot.lane.b32.xlu0 %v17402_v10, %s17529_s9  ;;  %v3047_v11 = vmul.f32 0.5, %v17402_v10 }
 0x9e9   :  { %v3048_v13 = vadd.f32 0.5, %v3047_v11 }
 0x9eb   :  { %v3049_v16 = vmul.f32 %v3048_v13, %v17843_v34 }
 0xa59   :  { %v3052_v14 = vpop.permute.xlu0 %3051 }
 0xa5a   :  { %v3054_v15 = vmul.f32 %v3052_v14, %v3048_v13 }
 0xa5c   :  { %3056 = vrot.lane.b32.xlu1 %v3054_v15, %s17529_s9 }
 0xace   :  { %v3057_v17 = vpop.permute.xlu1 %3056 }
 0xacf   :  { %v17895_v18 = vadd.f32 %v3057_v17, %v3049_v16 }
 0xad1   :  { %17403 = vtanh.f32 %v17895_v18 }
 0xadb   :  { %v17404_v19 = vpop.eup %17403 }
 0xadc   :  { %3062 = vrot.lane.b32.xlu0 %v17404_v19, %s17529_s9 }
 0xb4e   :  { %v3063_v22 = vpop.permute.xlu0 %3062 }
 0xb4f   :  { %v3065_v20 = vmul.f32 %v3063_v22, %v3048_v13 }
 0xb51   :  { %v3066_v23 = vmax.f32 %v3065_v20, 0.0  ;;  %3068 = vrot.lane.b32.xlu1 %v3065_v20, %s17530_s10 }
 0xb53   :  { %v5122_v29 = vrot.slane %v3066_v23, 5  ;;  %v5153_v30 = vrot.slane %v3066_v23, 6 }
 0xb55   :  { %v17901_v31 = vsel %vm5139_vm6, %v17849_v44, %v5122_v29  ;;  %v17904_v32 = vsel %vm5139_vm6, %v17852_v43, %v5153_v30 }
 0xbc3   :  { %v3069_v34 = vpop.permute.xlu1 %3068 }
 0xbc4   :  { %v3070_v35 = vsel %vm1020_vm4, %v3069_v34, 0 }
 0xbc5   :  { %v3141_v21 = vand.u32 4294901760, %v3070_v35 }
 0xbc7   :  { %v3142_v37 = vsub.f32 %v3070_v35, %v3141_v21  ;;  %15546 = vmatmul.mubr.f32.vlgmr.msra.gmra.mrb[30].mxu1 %v3141_v21 }
 0xbc8   :  { %16752 = vmatpush3.bf16.msra.mxu1 %v17655_v42  ;;  %15567 = vmatprep.mubr.msk.f32.mxu1 %vm17527_vm0, %v17526_v0 }
 0xbc9   :  { %v3143_v38 = vand.u32 4294901760, %v3142_v37  ;;  %16753 = vmatprep.subr.bf16.mxu1 %v17528_v28 }
 0xbcb   :  { %v3144_v40 = vsub.f32 %v3142_v37, %v3143_v38 }
 0xbcc   :  { %16755 = vmatpush3.bf16.msra.mxu1 %v17665_v46 }
 0xbcd   :  { %v3145_v41 = vand.u32 4294901760, %v3144_v40  ;;  %16762 = vmatprep.subr.bf16.mxu1 %v17528_v28 }
 0xbcf   :  { %15568 = vmatmul.mubr.f32.vlgmr.msra.gmra.mrb[32].mxu1 %v3143_v38  ;;  %15535 = vmatmul.mubr.f32.vlgmr.msra.gmra.mrb[24].mxu0 %v3145_v41 }
 0xbd0   :  { %16746 = vmatpush3.bf16.msra.mxu0 %v17637_v33  ;;  %16764 = vmatpush3.bf16.msra.mxu1 %v17655_v42 }
 0xbd1   :  { %16747 = vmatprep.subr.bf16.mxu0 %v17528_v28  ;;  %16765 = vmatprep.subr.bf16.mxu1 %v17528_v28 }
 0xbd2   :  { %15556 = vmatprep.mubr.msk.f32.mxu0 %vm17527_vm0, %v17526_v0  ;;  %15589 = vmatprep.mubr.msk.f32.mxu1 %vm17527_vm0, %v17526_v0 }
 0xbd4   :  { %16749 = vmatpush3.bf16.msra.mxu0 %v17641_v36  ;;  %16767 = vmatpush3.bf16.msra.mxu1 %v17665_v46 }
 0xbd5   :  { %16756 = vmatprep.subr.bf16.mxu0 %v17528_v28  ;;  %16774 = vmatprep.subr.bf16.mxu1 %v17528_v28 }
 0xbd7   :  { %15557 = vmatmul.mubr.f32.vlgmr.msra.gmra.mrb[26].mxu0 %v3142_v37  ;;  %15590 = vmatmul.mubr.f32.vlgmr.msra.gmra.mrb[34].mxu1 %v3141_v21 }
 0xbd8   :  { %16758 = vmatpush3.bf16.msra.mxu0 %v17652_v39  ;;  %15578 = vmatprep.mubr.msk.f32.mxu0 %vm17527_vm0, %v17526_v0 }
 0xbd9   :  { %16759 = vmatprep.subr.bf16.mxu0 %v17528_v28  ;;  %16776 = vmatpush3.bf16.msra.mxu1 %v17674_v51 }
 0xbda   :  { %16777 = vmatprep.subr.bf16.mxu1 %v17528_v28  ;;  %15611 = vmatprep.mubr.msk.f32.mxu1 %vm17527_vm0, %v17526_v0 }
 0xbdc   :  { %16761 = vmatpush3.bf16.msra.mxu0 %v17659_v45 }
 0xbdd   :  { %16779 = vmatpush3.bf16.msra.mxu1 %v17684_v54  ;;  %16768 = vmatprep.subr.bf16.mxu0 %v17528_v28 }
 0xbde   :  { %16786 = vmatprep.subr.bf16.mxu1 %v17528_v28 }
 0xbdf   :  { %15579 = vmatmul.mubr.f32.vlgmr.msra.gmra.mrb[28].mxu0 %v3141_v21 }
 0xbe0   :  { %16770 = vmatpush3.bf16.msra.mxu0 %v17655_v42  ;;  %15600 = vmatprep.mubr.msk.f32.mxu0 %vm17527_vm0, %v17526_v0 }
 0xbe1   :  { %16771 = vmatprep.subr.bf16.mxu0 %v17528_v28 }
 0xbe4   :  { %16773 = vmatpush3.bf16.msra.mxu0 %v17665_v46 }
 0xbe5   :  { %16780 = vmatprep.subr.bf16.mxu0 %v17528_v28 }
 0xc9a   :  { %v3238_v44 = vpop.f32.mrb[30].mxu1 }
 0xc9b   :  { %v15547_v43 = vpop.f32.mrb[31].mxu1 }
 0xca2   :  { %v3395_v12 = vpop.f32.mrb[32].mxu1  ;;  %v3147_v47 = vpop.f32.mrb[24].mxu0 }
 0xca3   :  { %v3239_v48 = vadd.f32 %v3238_v44, %v3147_v47  ;;  %v15569_v49 = vpop.f32.mrb[33].mxu1  ;;  %v15536_v50 = vpop.f32.mrb[25].mxu0 }
 0xcaa   :  { %v3318_v52 = vpop.f32.mrb[26].mxu0  ;;  %v3553_v55 = vpop.f32.mrb[34].mxu1 }
 0xcab   :  { %v3319_v53 = vadd.f32 %v3318_v52, %v3239_v48  ;;  %v15558_v56 = vpop.f32.mrb[27].mxu0  ;;  %v15591_v57 = vpop.f32.mrb[35].mxu1 }
 0xcad   :  { %v3396_v58 = vadd.f32 %v3395_v12, %v3319_v53 }
 0xcb2   :  { %v3478_v59 = vpop.f32.mrb[28].mxu0 }
 0xcb3   :  { %v3479_v60 = vadd.f32 %v3478_v59, %v3396_v58  ;;  %v15580_v61 = vpop.f32.mrb[29].mxu0 }
 0xcb5   :  { %v3554_v62 = vadd.f32 %v3553_v55, %v3479_v60 }
 0xcb7   :  { %v3557_v63 = vadd.f32 %v3554_v62, %v17728_v24 }
 0xcb9   :  { %17405 = vtanh.f32 %v3557_v63 }
 0xcc3   :  { %v17406_v1 = vpop.eup %17405 }
 0xcc4   :  { %3563 = vrot.lane.b32.xlu0 %v17406_v1, %s17529_s9  ;;  %v3559_v2 = vmul.f32 0.5, %v17406_v1 }
 0xcc6   :  { %v3560_v3 = vadd.f32 0.5, %v3559_v2 }
 0xcc8   :  { %v3561_v6 = vmul.f32 %v3560_v3, %v17895_v18 }
 0xd36   :  { %v3564_v4 = vpop.permute.xlu0 %3563 }
 0xd37   :  { %v3566_v5 = vmul.f32 %v3564_v4, %v3560_v3 }
 0xd39   :  { %3568 = vrot.lane.b32.xlu1 %v3566_v5, %s17529_s9 }
 0xdab   :  { %v3569_v7 = vpop.permute.xlu1 %3568 }
 0xdac   :  { %v17947_v8 = vadd.f32 %v3569_v7, %v3561_v6 }
 0xdae   :  { %17407 = vtanh.f32 %v17947_v8 }
 0xdb8   :  { %v17408_v9 = vpop.eup %17407 }
 0xdb9   :  { %3574 = vrot.lane.b32.xlu0 %v17408_v9, %s17529_s9 }
 0xe2b   :  { %v3575_v24 = vpop.permute.xlu0 %3574 }
 0xe2c   :  { %v3577_v10 = vmul.f32 %v3575_v24, %v3560_v3 }
 0xe2e   :  { %v3578_v11 = vmax.f32 %v3577_v10, 0.0  ;;  %3580 = vrot.lane.b32.xlu1 %v3577_v10, %s17530_s10 }
 0xe30   :  { %v5125_v13 = vrot.slane %v3578_v11, 4  ;;  %v5155_v14 = vrot.slane %v3578_v11, 5 }
 0xe32   :  { %v17953_v15 = vsel %vm5141_vm7, %v17904_v32, %v5155_v14  ;;  %v17956_v16 = vsel %vm5141_vm7, %v17901_v31, %v5125_v13 }
 0xea0   :  { %v3581_v17 = vpop.permute.xlu1 %3580 }
 0xea1   :  { %v3582_v18 = vsel %vm1020_vm4, %v3581_v17, 0 }
 0xea2   :  { %v3653_v19 = vand.u32 4294901760, %v3582_v18 }
 0xea4   :  { %v3654_v22 = vsub.f32 %v3582_v18, %v3653_v19  ;;  %15612 = vmatmul.mubr.f32.vlgmr.msra.gmra.mrb[36].mxu1 %v3653_v19 }
 0xea5   :  { %16788 = vmatpush3.bf16.msra.mxu1 %v17655_v42  ;;  %15633 = vmatprep.mubr.msk.f32.mxu1 %vm17527_vm0, %v17526_v0 }
 0xea6   :  { %v3655_v20 = vand.u32 4294901760, %v3654_v22  ;;  %16789 = vmatprep.subr.bf16.mxu1 %v17528_v28 }
 0xea8   :  { %v3656_v23 = vsub.f32 %v3654_v22, %v3655_v20 }
 0xea9   :  { %16791 = vmatpush3.bf16.msra.mxu1 %v17665_v46 }
 0xeaa   :  { %v3657_v29 = vand.u32 4294901760, %v3656_v23  ;;  %16798 = vmatprep.subr.bf16.mxu1 %v17528_v28 }
 0xeac   :  { %15634 = vmatmul.mubr.f32.vlgmr.msra.gmra.mrb[38].mxu1 %v3655_v20  ;;  %15601 = vmatmul.mubr.f32.vlgmr.msra.gmra.mrb[30].mxu0 %v3657_v29 }
 0xead   :  { %16782 = vmatpush3.bf16.msra.mxu0 %v17637_v33  ;;  %16800 = vmatpush3.bf16.msra.mxu1 %v17655_v42 }
 0xeae   :  { %16783 = vmatprep.subr.bf16.mxu0 %v17528_v28  ;;  %16801 = vmatprep.subr.bf16.mxu1 %v17528_v28 }
 0xeaf   :  { %15622 = vmatprep.mubr.msk.f32.mxu0 %vm17527_vm0, %v17526_v0  ;;  %15655 = vmatprep.mubr.msk.f32.mxu1 %vm17527_vm0, %v17526_v0 }
 0xeb1   :  { %16785 = vmatpush3.bf16.msra.mxu0 %v17641_v36  ;;  %16803 = vmatpush3.bf16.msra.mxu1 %v17665_v46 }
 0xeb2   :  { %16792 = vmatprep.subr.bf16.mxu0 %v17528_v28  ;;  %16810 = vmatprep.subr.bf16.mxu1 %v17528_v28 }
 0xeb4   :  { %15623 = vmatmul.mubr.f32.vlgmr.msra.gmra.mrb[32].mxu0 %v3654_v22  ;;  %15656 = vmatmul.mubr.f32.vlgmr.msra.gmra.mrb[40].mxu1 %v3653_v19 }
 0xeb5   :  { %16794 = vmatpush3.bf16.msra.mxu0 %v17652_v39  ;;  %15644 = vmatprep.mubr.msk.f32.mxu0 %vm17527_vm0, %v17526_v0 }
 0xeb6   :  { %16795 = vmatprep.subr.bf16.mxu0 %v17528_v28  ;;  %16812 = vmatpush3.bf16.msra.mxu1 %v17674_v51 }
 0xeb7   :  { %16813 = vmatprep.subr.bf16.mxu1 %v17528_v28  ;;  %15677 = vmatprep.mubr.msk.f32.mxu1 %vm17527_vm0, %v17526_v0 }
 0xeb9   :  { %16797 = vmatpush3.bf16.msra.mxu0 %v17659_v45 }
 0xeba   :  { %16815 = vmatpush3.bf16.msra.mxu1 %v17684_v54  ;;  %16804 = vmatprep.subr.bf16.mxu0 %v17528_v28 }
 0xebb   :  { %16822 = vmatprep.subr.bf16.mxu1 %v17528_v28 }
 0xebc   :  { %15645 = vmatmul.mubr.f32.vlgmr.msra.gmra.mrb[34].mxu0 %v3653_v19 }
 0xebd   :  { %16806 = vmatpush3.bf16.msra.mxu0 %v17655_v42  ;;  %15666 = vmatprep.mubr.msk.f32.mxu0 %vm17527_vm0, %v17526_v0 }
 0xebe   :  { %16807 = vmatprep.subr.bf16.mxu0 %v17528_v28 }
 0xec1   :  { %16809 = vmatpush3.bf16.msra.mxu0 %v17665_v46 }
 0xec2   :  { %16816 = vmatprep.subr.bf16.mxu0 %v17528_v28 }
 0xf77   :  { %v3750_v30 = vpop.f32.mrb[36].mxu1 }
 0xf78   :  { %v15613_v31 = vpop.f32.mrb[37].mxu1 }
 0xf7f   :  { %v3907_v32 = vpop.f32.mrb[38].mxu1  ;;  %v3659_v34 = vpop.f32.mrb[30].mxu0 }
 0xf80   :  { %v3751_v35 = vadd.f32 %v3750_v30, %v3659_v34  ;;  %v15635_v21 = vpop.f32.mrb[39].mxu1  ;;  %v15602_v37 = vpop.f32.mrb[31].mxu0 }
 0xf87   :  { %v3830_v38 = vpop.f32.mrb[32].mxu0  ;;  %v4065_v40 = vpop.f32.mrb[40].mxu1 }
 0xf88   :  { %v3831_v41 = vadd.f32 %v3830_v38, %v3751_v35  ;;  %v15624_v44 = vpop.f32.mrb[33].mxu0  ;;  %v15657_v43 = vpop.f32.mrb[41].mxu1 }
 0xf8a   :  { %v3908_v12 = vadd.f32 %v3907_v32, %v3831_v41 }
 0xf8f   :  { %v3990_v47 = vpop.f32.mrb[34].mxu0 }
 0xf90   :  { %v3991_v48 = vadd.f32 %v3990_v47, %v3908_v12  ;;  %v15646_v49 = vpop.f32.mrb[35].mxu0 }
 0xf92   :  { %v4066_v50 = vadd.f32 %v4065_v40, %v3991_v48 }
 0xf94   :  { %v4069_v52 = vadd.f32 %v4066_v50, %v17731_v25 }
 0xf96   :  { %17409 = vtanh.f32 %v4069_v52 }
 0xfa0   :  { %v17410_v55 = vpop.eup %17409 }
 0xfa1   :  { %4075 = vrot.lane.b32.xlu0 %v17410_v55, %s17529_s9  ;;  %v4071_v53 = vmul.f32 0.5, %v17410_v55 }
 0xfa3   :  { %v4072_v56 = vadd.f32 0.5, %v4071_v53 }
 0xfa5   :  { %v4073_v59 = vmul.f32 %v4072_v56, %v17947_v8 }
0x1013   :  { %v4076_v57 = vpop.permute.xlu0 %4075 }
0x1014   :  { %v4078_v58 = vmul.f32 %v4076_v57, %v4072_v56 }
0x1016   :  { %4080 = vrot.lane.b32.xlu1 %v4078_v58, %s17529_s9 }
0x1088   :  { %v4081_v60 = vpop.permute.xlu1 %4080 }
0x1089   :  { %v17999_v61 = vadd.f32 %v4081_v60, %v4073_v59 }
0x108b   :  { %17411 = vtanh.f32 %v17999_v61 }
0x1095   :  { %v17412_v62 = vpop.eup %17411 }
0x1096   :  { %4086 = vrot.lane.b32.xlu0 %v17412_v62, %s17529_s9 }
0x1108   :  { %v4087_v25 = vpop.permute.xlu0 %4086 }
0x1109   :  { %v4089_v63 = vmul.f32 %v4087_v25, %v4072_v56 }
0x110b   :  { %v4090_v1 = vmax.f32 %v4089_v63, 0.0  ;;  %4092 = vrot.lane.b32.xlu1 %v4089_v63, %s17530_s10 }
0x110d   :  { %v5128_v2 = vrot.slane %v4090_v1, 3  ;;  %v5157_v3 = vrot.slane %v4090_v1, 4 }
0x110f   :  { %v18005_v4 = vsel %vm5143_vm8, %v17953_v15, %v5157_v3  ;;  %v18008_v5 = vsel %vm5143_vm8, %v17956_v16, %v5128_v2 }
0x117d   :  { %v4093_v6 = vpop.permute.xlu1 %4092 }
0x117e   :  { %v4094_v7 = vsel %vm1020_vm4, %v4093_v6, 0 }
0x117f   :  { %v4165_v8 = vand.u32 4294901760, %v4094_v7 }
0x1181   :  { %v4166_v9 = vsub.f32 %v4094_v7, %v4165_v8  ;;  %15678 = vmatmul.mubr.f32.vlgmr.msra.gmra.mrb[42].mxu1 %v4165_v8 }
0x1182   :  { %16824 = vmatpush3.bf16.msra.mxu1 %v17655_v42  ;;  %15699 = vmatprep.mubr.msk.f32.mxu1 %vm17527_vm0, %v17526_v0 }
0x1183   :  { %v4167_v24 = vand.u32 4294901760, %v4166_v9  ;;  %16825 = vmatprep.subr.bf16.mxu1 %v17528_v28 }
0x1185   :  { %v4168_v10 = vsub.f32 %v4166_v9, %v4167_v24 }
0x1186   :  { %16827 = vmatpush3.bf16.msra.mxu1 %v17665_v46 }
0x1187   :  { %v4169_v11 = vand.u32 4294901760, %v4168_v10  ;;  %16834 = vmatprep.subr.bf16.mxu1 %v17528_v28 }
0x1189   :  { %15700 = vmatmul.mubr.f32.vlgmr.msra.gmra.mrb[44].mxu1 %v4167_v24  ;;  %15667 = vmatmul.mubr.f32.vlgmr.msra.gmra.mrb[36].mxu0 %v4169_v11 }
0x118a   :  { %16818 = vmatpush3.bf16.msra.mxu0 %v17637_v33  ;;  %16836 = vmatpush3.bf16.msra.mxu1 %v17655_v42 }
0x118b   :  { %16819 = vmatprep.subr.bf16.mxu0 %v17528_v28  ;;  %16837 = vmatprep.subr.bf16.mxu1 %v17528_v28 }
0x118c   :  { %15688 = vmatprep.mubr.msk.f32.mxu0 %vm17527_vm0, %v17526_v0  ;;  %15721 = vmatprep.mubr.msk.f32.mxu1 %vm17527_vm0, %v17526_v0 }
0x118e   :  { %16821 = vmatpush3.bf16.msra.mxu0 %v17641_v36  ;;  %16839 = vmatpush3.bf16.msra.mxu1 %v17665_v46 }
0x118f   :  { %16828 = vmatprep.subr.bf16.mxu0 %v17528_v28  ;;  %16846 = vmatprep.subr.bf16.mxu1 %v17528_v28 }
0x1191   :  { %15689 = vmatmul.mubr.f32.vlgmr.msra.gmra.mrb[38].mxu0 %v4166_v9  ;;  %15722 = vmatmul.mubr.f32.vlgmr.msra.gmra.mrb[46].mxu1 %v4165_v8 }
0x1192   :  { %16830 = vmatpush3.bf16.msra.mxu0 %v17652_v39  ;;  %15710 = vmatprep.mubr.msk.f32.mxu0 %vm17527_vm0, %v17526_v0 }
0x1193   :  { %16831 = vmatprep.subr.bf16.mxu0 %v17528_v28  ;;  %16848 = vmatpush3.bf16.msra.mxu1 %v17674_v51 }
0x1194   :  { %16849 = vmatprep.subr.bf16.mxu1 %v17528_v28  ;;  %15743 = vmatprep.mubr.msk.f32.mxu1 %vm17527_vm0, %v17526_v0 }
0x1196   :  { %16833 = vmatpush3.bf16.msra.mxu0 %v17659_v45 }
0x1197   :  { %16851 = vmatpush3.bf16.msra.mxu1 %v17684_v54  ;;  %16840 = vmatprep.subr.bf16.mxu0 %v17528_v28 }
0x1198   :  { %16858 = vmatprep.subr.bf16.mxu1 %v17528_v28 }
0x1199   :  { %15711 = vmatmul.mubr.f32.vlgmr.msra.gmra.mrb[40].mxu0 %v4165_v8 }
0x119a   :  { %16842 = vmatpush3.bf16.msra.mxu0 %v17655_v42  ;;  %15732 = vmatprep.mubr.msk.f32.mxu0 %vm17527_vm0, %v17526_v0 }
0x119b   :  { %16843 = vmatprep.subr.bf16.mxu0 %v17528_v28 }
0x119e   :  { %16845 = vmatpush3.bf16.msra.mxu0 %v17665_v46 }
0x119f   :  { %16852 = vmatprep.subr.bf16.mxu0 %v17528_v28 }
0x1254   :  { %v4262_v51 = vpop.f32.mrb[42].mxu1 }
0x1255   :  { %v15679_v13 = vpop.f32.mrb[43].mxu1 }
0x125c   :  { %v4419_v14 = vpop.f32.mrb[44].mxu1  ;;  %v4171_v54 = vpop.f32.mrb[36].mxu0 }
0x125d   :  { %v4263_v15 = vadd.f32 %v4262_v51, %v4171_v54  ;;  %v15701_v16 = vpop.f32.mrb[45].mxu1  ;;  %v15668_v17 = vpop.f32.mrb[37].mxu0 }
0x1264   :  { %v4342_v18 = vpop.f32.mrb[38].mxu0  ;;  %v4577_v19 = vpop.f32.mrb[46].mxu1 }
0x1265   :  { %v4343_v22 = vadd.f32 %v4342_v18, %v4263_v15  ;;  %v15690_v20 = vpop.f32.mrb[39].mxu0  ;;  %v15723_v23 = vpop.f32.mrb[47].mxu1  ;;  %v52_v18 = vld [vmem:[#allocation2 + $0x28] sm:$0xff] }
0x1267   :  { %v4420_v29 = vadd.f32 %v4419_v14, %v4343_v22 }
0x126c   :  { %v4502_v30 = vpop.f32.mrb[40].mxu0 }
0x126d   :  { %v4503_v31 = vadd.f32 %v4502_v30, %v4420_v29  ;;  %v15712_v32 = vpop.f32.mrb[41].mxu0  ;;  %v54_v30 = vld [vmem:[#allocation2 + $0x98] sm:$0xff] }
0x126e   :  { %v5188_v32 = vand.u32 4294901760, %v54_v30 }
0x126f   :  { %v4578_v34 = vadd.f32 %v4577_v19, %v4503_v31  ;;  %v5182_v19 = vand.u32 4294901760, %v52_v18  ;;  %v55_v31 = vld [vmem:[#allocation2 + $0xd0] sm:$0xff] }
0x1271   :  { %v4581_v35 = vadd.f32 %v4578_v34, %v17734_v26  ;;  %v5262_v23 = vsub.f32 %v52_v18, %v5182_v19  ;;  %v5191_v34 = vand.u32 4294901760, %v55_v31  ;;  %v18171_v18 = vld [vmem:[#allocation2 + $0x80] sm:$0xff] }
0x1273   :  { %17413 = vtanh.f32 %v4581_v35  ;;  %v5263_v35 = vand.u32 4294901760, %v5262_v23 }
0x127d   :  { %v17414_v21 = vpop.eup %17413 }
0x127e   :  { %4587 = vrot.lane.b32.xlu0 %v17414_v21, %s17529_s9  ;;  %v4583_v37 = vmul.f32 0.5, %v17414_v21 }
0x1280   :  { %v4584_v38 = vadd.f32 0.5, %v4583_v37 }
0x1282   :  { %v4585_v44 = vmul.f32 %v4584_v38, %v17999_v61 }
0x12f0   :  { %v4588_v40 = vpop.permute.xlu0 %4587 }
0x12f1   :  { %v4590_v41 = vmul.f32 %v4588_v40, %v4584_v38  ;;  %v5264_v40 = vsub.f32 %v5262_v23, %v5263_v35 }
0x12f3   :  { %4592 = vrot.lane.b32.xlu1 %v4590_v41, %s17529_s9 }
0x1365   :  { %v4593_v43 = vpop.permute.xlu1 %4592 }
0x1366   :  { %v18051_v12 = vadd.f32 %v4593_v43, %v4585_v44  ;;  %v5276_v43 = vsub.f32 %v54_v30, %v5188_v32  ;;  %v6164_v30 = vand.u32 4294901760, %v18171_v18 }
0x1368   :  { %17415 = vtanh.f32 %v18051_v12 }
0x1372   :  { %v17416_v47 = vpop.eup %17415 }
0x1373   :  { %4598 = vrot.lane.b32.xlu0 %v17416_v47, %s17529_s9  ;;  %v5265_v47 = vand.u32 4294901760, %v5264_v40 }
0x13e5   :  { %v4599_v26 = vpop.permute.xlu0 %4598 }
0x13e6   :  { %v4601_v48 = vmul.f32 %v4599_v26, %v4584_v38  ;;  %v18104_v38 = vpack.c.bf16 %v5191_v34, %v5188_v32  ;;  %v18186_v32 = vld [vmem:[#allocation2 + $0xb0] sm:$0xff] }
0x13e8   :  { %v4602_v49 = vmax.f32 %v4601_v48, 0.0  ;;  %4604 = vrot.lane.b32.xlu1 %v4601_v48, %s17530_s10 }
0x13ea   :  { %v5131_v50 = vrot.slane %v4602_v49, 2  ;;  %v5159_v52 = vrot.slane %v4602_v49, 3  ;;  %v5277_v49 = vand.u32 4294901760, %v5276_v43 }
0x13ec   :  { %v18058_v55 = vsel %vm80_vm1, %v18005_v4, %v5159_v52  ;;  %v18062_v53 = vsel %vm80_vm1, %v18008_v5, %v5131_v50 }
0x145a   :  { %v4605_v56 = vpop.permute.xlu1 %4604 }
0x145b   :  { %v4606_v57 = vsel %vm1020_vm4, %v4605_v56, 0 }
0x145c   :  { %v4677_v58 = vand.u32 4294901760, %v4606_v57 }
0x145e   :  { %v4678_v59 = vsub.f32 %v4606_v57, %v4677_v58  ;;  %15744 = vmatmul.mubr.f32.vlgmr.msra.gmra.mrb[48].mxu1 %v4677_v58 }
0x145f   :  { %16860 = vmatpush3.bf16.msra.mxu1 %v17655_v42  ;;  %15765 = vmatprep.mubr.msk.f32.mxu1 %vm17527_vm0, %v17526_v0 }
0x1460   :  { %v4679_v60 = vand.u32 4294901760, %v4678_v59  ;;  %16861 = vmatprep.subr.bf16.mxu1 %v17528_v28 }
0x1462   :  { %v4680_v61 = vsub.f32 %v4678_v59, %v4679_v60 }
0x1463   :  { %16863 = vmatpush3.bf16.msra.mxu1 %v17665_v46 }
0x1464   :  { %v4681_v62 = vand.u32 4294901760, %v4680_v61  ;;  %16870 = vmatprep.subr.bf16.mxu1 %v17528_v28 }
0x1466   :  { %15766 = vmatmul.mubr.f32.vlgmr.msra.gmra.mrb[50].mxu1 %v4679_v60  ;;  %15733 = vmatmul.mubr.f32.vlgmr.msra.gmra.mrb[42].mxu0 %v4681_v62 }
0x1467   :  { %16854 = vmatpush3.bf16.msra.mxu0 %v17637_v33  ;;  %16872 = vmatpush3.bf16.msra.mxu1 %v17655_v42 }
0x1468   :  { %16855 = vmatprep.subr.bf16.mxu0 %v17528_v28  ;;  %16873 = vmatprep.subr.bf16.mxu1 %v17528_v28 }
0x1469   :  { %15754 = vmatprep.mubr.msk.f32.mxu0 %vm17527_vm0, %v17526_v0  ;;  %15787 = vmatprep.mubr.msk.f32.mxu1 %vm17527_vm0, %v17526_v0 }
0x146b   :  { %16857 = vmatpush3.bf16.msra.mxu0 %v17641_v36  ;;  %16875 = vmatpush3.bf16.msra.mxu1 %v17665_v46 }
0x146c   :  { %16864 = vmatprep.subr.bf16.mxu0 %v17528_v28  ;;  %16912 = vmatprep.subr.bf16.mxu1 %v17528_v28 }
0x146e   :  { %15755 = vmatmul.mubr.f32.vlgmr.msra.gmra.mrb[44].mxu0 %v4678_v59  ;;  %15788 = vmatmul.mubr.f32.vlgmr.msra.gmra.mrb[52].mxu1 %v4677_v58 }
0x146f   :  { %16866 = vmatpush3.bf16.msra.mxu0 %v17652_v39  ;;  %15776 = vmatprep.mubr.msk.f32.mxu0 %vm17527_vm0, %v17526_v0 }
0x1470   :  { %16867 = vmatprep.subr.bf16.mxu0 %v17528_v28  ;;  %15864 = vmatprep.mubr.msk.f32.mxu1 %vm17527_vm0, %v17526_v0 }
0x1473   :  { %16869 = vmatpush3.bf16.msra.mxu0 %v17659_v45 }
0x1474   :  { %16876 = vmatprep.subr.bf16.mxu0 %v17528_v28 }
0x1476   :  { %15777 = vmatmul.mubr.f32.vlgmr.msra.gmra.mrb[46].mxu0 %v4677_v58  ;;  %v5278_v58 = vsub.f32 %v5276_v43, %v5277_v49 }
0x1477   :  { %15798 = vmatprep.mubr.msk.f32.mxu0 %vm17527_vm0, %v17526_v0 }
0x1478   :  { %v5279_v62 = vand.u32 4294901760, %v5278_v58 }
0x1531   :  { %v4774_v33 = vpop.f32.mrb[48].mxu1 }
0x1532   :  { %v15745_v36 = vpop.f32.mrb[49].mxu1 }
0x1539   :  { %v4931_v42 = vpop.f32.mrb[50].mxu1  ;;  %v4683_v39 = vpop.f32.mrb[42].mxu0 }
0x153a   :  { %v4775_v46 = vadd.f32 %v4774_v33, %v4683_v39  ;;  %v15767_v25 = vpop.f32.mrb[51].mxu1  ;;  %v15734_v63 = vpop.f32.mrb[43].mxu0 }
0x1541   :  { %v4854_v1 = vpop.f32.mrb[44].mxu0  ;;  %v5089_v2 = vpop.f32.mrb[52].mxu1 }
0x1542   :  { %v4855_v3 = vadd.f32 %v4854_v1, %v4775_v46  ;;  %v15756_v4 = vpop.f32.mrb[45].mxu0  ;;  %v15789_v5 = vpop.f32.mrb[53].mxu1 }
0x1544   :  { %v4932_v6 = vadd.f32 %v4931_v42, %v4855_v3 }
0x1549   :  { %v5014_v45 = vpop.f32.mrb[46].mxu0 }
0x154a   :  { %v5015_v7 = vadd.f32 %v5014_v45, %v4932_v6  ;;  %v15778_v8 = vpop.f32.mrb[47].mxu0 }
0x154c   :  { %v5090_v9 = vadd.f32 %v5089_v2, %v5015_v7 }
0x154e   :  { %v5093_v24 = vadd.f32 %v5090_v9, %v17737_v27  ;;  %v53_v27 = vld [vmem:[#allocation2 + $0x60] sm:$0xff] }
0x154f   :  { %v5185_v22 = vand.u32 4294901760, %v53_v27 }
0x1550   :  { %17417 = vtanh.f32 %v5093_v24 }
0x1551   :  { %v18098_v20 = vpack.c.bf16 %v5185_v22, %v5182_v19  ;;  %v5269_v29 = vsub.f32 %v53_v27, %v5185_v22  ;;  %v18173_v27 = vld [vmem:[#allocation2 + $0xb8] sm:$0xff] }
0x1553   :  { %16878 = vmatpush3.bf16.msra.mxu0 %v18098_v20  ;;  %16914 = vmatpush3.bf16.msra.mxu1 %v18098_v20  ;;  %v5270_v21 = vand.u32 4294901760, %v5269_v29  ;;  %v16889_v42 = vpack.c.bf16 %v5269_v29, %v5262_v23 }
0x1554   :  { %16879 = vmatprep.subr.bf16.mxu0 %v17528_v28  ;;  %16915 = vmatprep.subr.bf16.mxu1 %v17528_v28 }
0x1555   :  { %v5271_v41 = vsub.f32 %v5269_v29, %v5270_v21  ;;  %v18120_v46 = vpack.c.bf16 %v5270_v21, %v5263_v35  ;;  %v18180_v29 = vld [vmem:[#allocation2 + $0x78] sm:$0xff]  ;;  %v18190_v35 = vld [vmem:[#allocation2 + $0xc0] sm:$0xff] }
0x1557   :  { %16881 = vmatpush3.bf16.msra.mxu0 %v18104_v38  ;;  %16917 = vmatpush3.bf16.msra.mxu1 %v18104_v38  ;;  %v5272_v26 = vand.u32 4294901760, %v5271_v41  ;;  %v6166_v41 = vand.u32 4294901760, %v18180_v29 }
0x1558   :  { %16882 = vmatprep.subr.bf16.mxu0 %v17528_v28  ;;  %16918 = vmatprep.subr.bf16.mxu1 %v17528_v28 }
0x1559   :  { %v16883_v52 = vpack.c.bf16 %v5272_v26, %v5265_v47  ;;  %v6170_v47 = vand.u32 4294901760, %v18186_v32 }
0x155a   :  { %v17418_v10 = vpop.eup %17417 }
0x155b   :  { %5099 = vrot.lane.b32.xlu0 %v17418_v10, %s17529_s9  ;;  %v5095_v11 = vmul.f32 0.5, %v17418_v10  ;;  %v37_v10 = vld [vmem:[#allocation2 + $0x10] sm:$0xff] }
0x155d   :  { %v5096_v51 = vadd.f32 0.5, %v5095_v11  ;;  %v39_v11 = vld [vmem:[#allocation2 + $0x48] sm:$0xff] }
0x155f   :  { %v5097_v54 = vmul.f32 %v5096_v51, %v18051_v12  ;;  %v5283_v12 = vsub.f32 %v55_v31, %v5191_v34  ;;  %v6168_v31 = vand.u32 4294901760, %v18173_v27  ;;  %v18188_v34 = vld [vmem:[#allocation2 + $0x88] sm:$0xff] }
0x1560   :  { %v6706_v26 = vand.u32 4294901760, %v18188_v34 }
0x1561   :  { %v5284_v50 = vand.u32 4294901760, %v5283_v12  ;;  %v16892_v39 = vpack.c.bf16 %v5283_v12, %v5276_v43 }
0x1563   :  { %v5285_v59 = vsub.f32 %v5283_v12, %v5284_v50  ;;  %v18122_v25 = vpack.c.bf16 %v5284_v50, %v5277_v49 }
0x1565   :  { %v5286_v33 = vand.u32 4294901760, %v5285_v59 }
0x1567   :  { %v16886_v36 = vpack.c.bf16 %v5286_v33, %v5279_v62 }
0x15cd   :  { %v5100_v13 = vpop.permute.xlu0 %5099 }
0x15ce   :  { %v5102_v14 = vmul.f32 %v5100_v13, %v5096_v51  ;;  %v18162_v13 = vld [vmem:[#allocation2 + $0x40] sm:$0xff] }
0x15cf   :  { %v6162_v19 = vand.u32 4294901760, %v18162_v13 }
0x15d0   :  { %5104 = vrot.lane.b32.xlu1 %v5102_v14, %s17529_s9  ;;  %v18164_v14 = vld [vmem:[#allocation2 + $0x18] sm:$0xff] }
0x15d1   :  { %v6700_v22 = vand.u32 4294901760, %v18164_v14 }
0x15d3   :  { %v18208_v43 = vsub.f32 %v18164_v14, %v6700_v22  ;;  %v18296_v14 = vpack.c.bf16 %v6170_v47, %v6166_v41 }
0x15d5   :  { %v6781_v62 = vand.u32 4294901760, %v18208_v43 }
0x1642   :  { %v5105_v15 = vpop.permute.xlu1 %5104 }
0x1643   :  { %v5107_v16 = vadd.f32 %v5105_v15, %v5097_v54  ;;  %v18166_v54 = vld [vmem:[#allocation2 + $0x50] sm:$0xff]  ;;  %v6156_v15 = vand.u32 4294901760, %v37_v10 }
0x1644   :  { %v6703_v23 = vand.u32 4294901760, %v18166_v54 }
0x1645   :  { %17419 = vtanh.f32 %v5107_v16  ;;  %v6160_v16 = vand.u32 4294901760, %v39_v11  ;;  %v18192_v21 = vsub.f32 %v37_v10, %v6156_v15 }
0x1646   :  { %v18211_v12 = vsub.f32 %v18166_v54, %v6703_v23 }
0x1647   :  { %v6242_v49 = vand.u32 4294901760, %v18192_v21 }
0x1648   :  { %v6788_v33 = vand.u32 4294901760, %v18211_v12 }
0x164f   :  { %v17420_v17 = vpop.eup %17419 }
0x1650   :  { %5110 = vrot.lane.b32.xlu0 %v17420_v17, %s17529_s9 }
0x16c2   :  { %v5111_v37 = vpop.permute.xlu0 %5110 }
0x16c3   :  { %v5113_v44 = vmul.f32 %v5111_v37, %v5096_v51  ;;  %v18158_v51 = vld [vmem:[#allocation2 + $0x8] sm:$0xff]  ;;  %v18194_v37 = vsub.f32 %v39_v11, %v6160_v16 }
0x16c4   :  { %v6158_v17 = vand.u32 4294901760, %v18158_v51 }
0x16c5   :  { %v5114_v48 = vmax.f32 %v5113_v44, 0.0  ;;  %v18205_v44 = vsub.f32 %v18162_v13, %v6162_v19  ;;  %v6254_v50 = vand.u32 4294901760, %v18194_v37 }
0x16c6   :  { %v18201_v40 = vsub.f32 %v18158_v51, %v6158_v17 }
0x16c7   :  { %v5134_v56 = vrot.slane %v5114_v48, 1  ;;  %v5161_v57 = vrot.slane %v5114_v48, 2  ;;  %v6709_v48 = vand.u32 4294901760, %v18190_v35  ;;  %v6260_v59 = vand.u32 4294901760, %v18205_v44 }
0x16c8   :  { %v6248_v58 = vand.u32 4294901760, %v18201_v40 }
0x16c9   :  { %v18111_v60 = vsel %vm5146_vm9, %v18058_v55, %v5161_v57  ;;  %v18114_v61 = vsel %vm5146_vm9, %v18062_v53, %v5134_v56  ;;  %v18226_v56 = vsub.f32 %v18173_v27, %v6168_v31  ;;  %v18228_v57 = vpack.c.bf16 %v6160_v16, %v6156_v15 }
0x16ca   :  { %5667 = vrot.lane.b32.xlu0 %v18111_v60, %s17530_s10  ;;  %5177 = vrot.lane.b32.xlu1 %v18114_v61, %s17530_s10  ;;  %v18298_v54 = vpack.c.bf16 %v6709_v48, %v6706_v26 }
0x173c   :  { %v5668_v55 = vpop.permute.xlu0 %5667  ;;  %v5178_v63 = vpop.permute.xlu1 %5177 }
0x173d   :  { %v5669_v53 = vsel %vm1020_vm4, %v5668_v55, 0  ;;  %v5179_v1 = vsel %vm1020_vm4, %v5178_v63, 0  ;;  %v6278_v63 = vand.u32 4294901760, %v18226_v56 }
0x173e   :  { %v18126_v2 = vand.u32 4294901760, %v5669_v53  ;;  %v18128_v3 = vand.u32 4294901760, %v5179_v1 }
0x1740   :  { %v5741_v4 = vsub.f32 %v5669_v53, %v18126_v2  ;;  %v5251_v5 = vsub.f32 %v5179_v1, %v18128_v3  ;;  %v18264_v53 = vpack.c.bf16 %v6162_v19, %v6158_v17  ;;  %v18266_v1 = vpack.c.bf16 %v6703_v23, %v6700_v22 }
0x1742   :  { %v5742_v6 = vand.u32 4294901760, %v5741_v4  ;;  %v5252_v45 = vand.u32 4294901760, %v5251_v5 }
0x1744   :  { %v5743_v7 = vsub.f32 %v5741_v4, %v5742_v6  ;;  %v5253_v8 = vsub.f32 %v5251_v5, %v5252_v45 }
0x1746   :  { %v5744_v9 = vand.u32 4294901760, %v5743_v7  ;;  %v5254_v24 = vand.u32 4294901760, %v5253_v8  ;;  %v18283_v8 = vpack.c.bf16 %v6168_v31, %v6164_v30 }
0x1748   :  { %15799 = vmatmul.mubr.f32.vlgmr.msra.gmra.mrb[48].mxu0 %v5254_v24  ;;  %15865 = vmatmul.mubr.f32.vlgmr.msra.gmra.mrb[54].mxu1 %v5744_v9 }
0x1749   :  { %16884 = vmatpush3.bf16.msra.mxu0 %v16883_v52  ;;  %16920 = vmatpush3.bf16.msra.mxu1 %v16883_v52  ;;  %v18223_v52 = vsub.f32 %v18171_v18, %v6164_v30 }
0x174a   :  { %16885 = vmatprep.subr.bf16.mxu0 %v17528_v28  ;;  %16921 = vmatprep.subr.bf16.mxu1 %v17528_v28 }
0x174b   :  { %15809 = vmatprep.mubr.msk.f32.mxu0 %vm17527_vm0, %v17526_v0  ;;  %15875 = vmatprep.mubr.msk.f32.mxu1 %vm17527_vm0, %v17526_v0  ;;  %v6266_v55 = vand.u32 4294901760, %v18223_v52 }
0x174d   :  { %16887 = vmatpush3.bf16.msra.mxu0 %v16886_v36  ;;  %16923 = vmatpush3.bf16.msra.mxu1 %v16886_v36  ;;  %v18237_v36 = vsub.f32 %v18180_v29, %v6166_v41  ;;  %v6267_v13 = vsub.f32 %v18223_v52, %v6266_v55 }
0x174e   :  { %16888 = vmatprep.subr.bf16.mxu0 %v17528_v28  ;;  %16924 = vmatprep.subr.bf16.mxu1 %v17528_v28 }
0x174f   :  { %v6272_v7 = vand.u32 4294901760, %v18237_v36  ;;  %v6268_v23 = vand.u32 4294901760, %v6267_v13 }
0x1750   :  { %15810 = vmatmul.mubr.f32.vlgmr.msra.gmra.mrb[48].mxu0 %v18128_v3  ;;  %15876 = vmatmul.mubr.f32.vlgmr.msra.gmra.mrb[54].mxu1 %v18126_v2 }
0x1751   :  { %16890 = vmatpush3.bf16.msra.mxu0 %v16889_v42  ;;  %16926 = vmatpush3.bf16.msra.mxu1 %v16889_v42  ;;  %v18242_v42 = vsub.f32 %v18186_v32, %v6170_v47  ;;  %v6273_v27 = vsub.f32 %v18237_v36, %v6272_v7 }
0x1752   :  { %16891 = vmatprep.subr.bf16.mxu0 %v17528_v28  ;;  %16927 = vmatprep.subr.bf16.mxu1 %v17528_v28 }
0x1753   :  { %15820 = vmatprep.mubr.msk.f32.mxu0 %vm17527_vm0, %v17526_v0  ;;  %15886 = vmatprep.mubr.msk.f32.mxu1 %vm17527_vm0, %v17526_v0  ;;  %v6284_v9 = vand.u32 4294901760, %v18242_v42  ;;  %v6274_v32 = vand.u32 4294901760, %v6273_v27 }
0x1755   :  { %16893 = vmatpush3.bf16.msra.mxu0 %v16892_v39  ;;  %16929 = vmatpush3.bf16.msra.mxu1 %v16892_v39  ;;  %v18245_v39 = vsub.f32 %v18188_v34, %v6706_v26  ;;  %v6285_v19 = vsub.f32 %v18242_v42, %v6284_v9 }
0x1756   :  { %16894 = vmatprep.subr.bf16.mxu0 %v17528_v28  ;;  %16930 = vmatprep.subr.bf16.mxu1 %v17528_v28 }
0x1757   :  { %v6795_v24 = vand.u32 4294901760, %v18245_v39  ;;  %v6286_v34 = vand.u32 4294901760, %v6285_v19 }
0x1758   :  { %15821 = vmatmul.mubr.f32.vlgmr.msra.gmra.mrb[48].mxu0 %v5251_v5  ;;  %15887 = vmatmul.mubr.f32.vlgmr.msra.gmra.mrb[54].mxu1 %v5741_v4  ;;  %v6249_v4 = vsub.f32 %v18201_v40, %v6248_v58  ;;  %v6261_v5 = vsub.f32 %v18205_v44, %v6260_v59 }
0x1759   :  { %16896 = vmatpush3.bf16.msra.mxu0 %v18098_v20  ;;  %16932 = vmatpush3.bf16.msra.mxu1 %v18098_v20  ;;  %v18337_v26 = vpack.c.bf16 %v6286_v34, %v6274_v32 }
0x175a   :  { %16897 = vmatprep.subr.bf16.mxu0 %v17528_v28  ;;  %16933 = vmatprep.subr.bf16.mxu1 %v17528_v28  ;;  %v6250_v15 = vand.u32 4294901760, %v6249_v4  ;;  %v6262_v16 = vand.u32 4294901760, %v6261_v5  ;;  %v18358_v4 = vpack.c.bf16 %v18211_v12, %v18208_v43  ;;  %v18364_v5 = vpack.c.bf16 %v18226_v56, %v18223_v52 }
0x175b   :  { %15831 = vmatprep.mubr.msk.f32.mxu0 %vm17527_vm0, %v17526_v0  ;;  %15897 = vmatprep.mubr.msk.f32.mxu1 %vm17527_vm0, %v17526_v0 }
0x175c   :  { %v18323_v30 = vpack.c.bf16 %v6262_v16, %v6250_v15  ;;  %v51_v15 = vld [vmem:[#allocation2 + $0xc8] sm:$0xff] }
0x175d   :  { %16899 = vmatpush3.bf16.msra.mxu0 %v18104_v38  ;;  %16935 = vmatpush3.bf16.msra.mxu1 %v18104_v38 }
0x175e   :  { %16900 = vmatprep.subr.bf16.mxu0 %v17528_v28  ;;  %16936 = vmatprep.subr.bf16.mxu1 %v17528_v28 }
0x1760   :  { %15832 = vmatmul.mubr.f32.vlgmr.msra.gmra.mrb[48].mxu0 %v5252_v45  ;;  %15898 = vmatmul.mubr.f32.vlgmr.msra.gmra.mrb[54].mxu1 %v5742_v6  ;;  %v6782_v6 = vsub.f32 %v18208_v43, %v6781_v62  ;;  %v6789_v45 = vsub.f32 %v18211_v12, %v6788_v33  ;;  %v14585_v43 = vld [vmem:[%s19171_s2 + $0x2] ss:$0 sm:$0xff] }
0x1761   :  { %16902 = vmatpush3.bf16.msra.mxu0 %v18120_v46  ;;  %16938 = vmatpush3.bf16.msra.mxu1 %v18120_v46  ;;  %v18248_v46 = vsub.f32 %v18190_v35, %v6709_v48 }
0x1762   :  { %16903 = vmatprep.subr.bf16.mxu0 %v17528_v28  ;;  %16939 = vmatprep.subr.bf16.mxu1 %v17528_v28  ;;  %v6783_v17 = vand.u32 4294901760, %v6782_v6  ;;  %v6790_v18 = vand.u32 4294901760, %v6789_v45  ;;  %v18372_v6 = vpack.c.bf16 %v18242_v42, %v18237_v36 }
0x1763   :  { %15842 = vmatprep.mubr.msk.f32.mxu0 %vm17527_vm0, %v17526_v0  ;;  %15908 = vmatprep.mubr.msk.f32.mxu1 %vm17527_vm0, %v17526_v0  ;;  %v6802_v10 = vand.u32 4294901760, %v18248_v46  ;;  %v18376_v45 = vpack.c.bf16 %v18248_v46, %v18245_v39 }
0x1764   :  { %v18325_v31 = vpack.c.bf16 %v6790_v18, %v6783_v17  ;;  %v7230_v17 = vand.u32 4294901760, %v51_v15 }
0x1765   :  { %16905 = vmatpush3.bf16.msra.mxu0 %v18122_v25  ;;  %16941 = vmatpush3.bf16.msra.mxu1 %v18122_v25  ;;  %v6243_v25 = vsub.f32 %v18192_v21, %v6242_v49 }
0x1766   :  { %16906 = vmatprep.subr.bf16.mxu0 %v17528_v28  ;;  %16942 = vmatprep.subr.bf16.mxu1 %v17528_v28 }
0x1767   :  { %v6244_v11 = vand.u32 4294901760, %v6243_v25  ;;  %v18345_v25 = vpack.c.bf16 %v18194_v37, %v18192_v21  ;;  %v18414_v21 = vpack.c.bf16 %v6788_v33, %v6781_v62 }
0x1768   :  { %15843 = vmatmul.mubr.f32.vlgmr.msra.gmra.mrb[48].mxu0 %v18128_v3  ;;  %15909 = vmatmul.mubr.f32.vlgmr.msra.gmra.mrb[54].mxu1 %v18126_v2 }
0x1769   :  { %16908 = vmatpush3.bf16.msra.mxu0 %v18098_v20  ;;  %16944 = vmatpush3.bf16.msra.mxu1 %v18098_v20  ;;  %v6255_v20 = vsub.f32 %v18194_v37, %v6254_v50  ;;  %v18422_v37 = vpack.c.bf16 %v6278_v63, %v6266_v55 }
0x176a   :  { %16909 = vmatprep.subr.bf16.mxu0 %v17528_v28  ;;  %16945 = vmatprep.subr.bf16.mxu1 %v17528_v28 }
0x176b   :  { %15853 = vmatprep.mubr.msk.f32.mxu0 %vm17527_vm0, %v17526_v0  ;;  %15919 = vmatprep.mubr.msk.f32.mxu1 %vm17527_vm0, %v17526_v0  ;;  %v6256_v51 = vand.u32 4294901760, %v6255_v20  ;;  %v18354_v20 = vpack.c.bf16 %v18205_v44, %v18201_v40  ;;  %v18432_v40 = vpack.c.bf16 %v6284_v9, %v6272_v7  ;;  %v18438_v44 = vpack.c.bf16 %v6802_v10, %v6795_v24  ;;  %v48_v9 = vld [vmem:[#allocation2 + $0x20] sm:$0xff] }
0x176c   :  { %v7221_v13 = vand.u32 4294901760, %v48_v9 }
0x176d   :  { %16911 = vmatpush3.bf16.msra.mxu0 %v18104_v38  ;;  %16947 = vmatpush3.bf16.msra.mxu1 %v18104_v38  ;;  %v6279_v38 = vsub.f32 %v18226_v56, %v6278_v63  ;;  %v18318_v22 = vpack.c.bf16 %v6256_v51, %v6244_v11  ;;  %v18397_v11 = vpack.c.bf16 %v6254_v50, %v6242_v49 }
0x176e   :  { %16949 = vmatprep.subr.bf16.mxu0 %v18228_v57  ;;  %16996 = vmatprep.subr.bf16.mxu1 %v17528_v28  ;;  %v18408_v51 = vpack.c.bf16 %v6260_v59, %v6248_v58  ;;  %v18482_v18 = vsub.f32 %v48_v9, %v7221_v13 }
0x176f   :  { %v6280_v29 = vand.u32 4294901760, %v6279_v38 }
0x1770   :  { %15854 = vmatmul.mubr.f32.vlgmr.msra.gmra.mrb[48].mxu0 %v18128_v3  ;;  %15920 = vmatmul.mubr.f32.vlgmr.msra.gmra.mrb[54].mxu1 %v18126_v2  ;;  %v6796_v3 = vsub.f32 %v18245_v39, %v6795_v24  ;;  %v6803_v2 = vsub.f32 %v18248_v46, %v6802_v10  ;;  %v18478_v46 = vld [vmem:[%s19171_s2 + $0x3] ss:$0 sm:$0xff]  ;;  %v50_v10 = vld [vmem:[#allocation2 + $0x90] sm:$0xff] }
0x1771   :  { %16951 = vmatpush1.bf16.msra.mxu0 %v18264_v53  ;;  %16998 = vmatpush3.bf16.msra.mxu1 %v18266_v1  ;;  %v18331_v47 = vpack.c.bf16 %v6280_v29, %v6268_v23  ;;  %v49_v24 = vld [vmem:[#allocation2 + $0x58] sm:$0xff]  ;;  %v7227_v16 = vand.u32 4294901760, %v50_v10 }
0x1772   :  { %16953 = vmatprep.subr.bf16.mxu0 %v18283_v8  ;;  %16999 = vmatprep.subr.bf16.mxu1 %v17528_v28  ;;  %v6797_v35 = vand.u32 4294901760, %v6796_v3  ;;  %v6804_v41 = vand.u32 4294901760, %v6803_v2  ;;  %v7224_v38 = vand.u32 4294901760, %v49_v24  ;;  %v18488_v3 = vsub.f32 %v51_v15, %v7230_v17 }
0x1773   :  { %6228 = vmatprep.mubr.f32.mxu0 %v17526_v0  ;;  %15930 = vmatprep.mubr.msk.f32.mxu1 %vm17527_vm0, %v17526_v0  ;;  %v18486_v19 = vsub.f32 %v50_v10, %v7227_v16  ;;  %v7302_v2 = vand.u32 4294901760, %v18482_v18 }
0x1774   :  { %v18339_v48 = vpack.c.bf16 %v6804_v41, %v6797_v35  ;;  %v18484_v27 = vsub.f32 %v49_v24, %v7224_v38  ;;  %v7323_v32 = vand.u32 4294901760, %v18488_v3 }
0x1775   :  { %16955 = vmatpush1.bf16.msra.mxu0 %v18296_v14  ;;  %17001 = vmatpush3.bf16.msra.mxu1 %v18298_v54  ;;  %v7316_v29 = vand.u32 4294901760, %v18486_v19  ;;  %v7303_v34 = vsub.f32 %v18482_v18, %v7302_v2 }
0x1776   :  { %16957 = vmatprep.subr.bf16.mxu0 %v18318_v22  ;;  %17002 = vmatprep.subr.bf16.mxu1 %v17528_v28  ;;  %v7309_v23 = vand.u32 4294901760, %v18484_v27 }
0x1777   :  { %v7317_v41 = vsub.f32 %v18486_v19, %v7316_v29 }
0x1778   :  { %6234 = vmatmul.mubr.f32.vlgmr.msra.gmra.mrb[50].mxu0 %v17526_v0  ;;  %15931 = vmatmul.mubr.f32.vlgmr.msra.gmra.mrb[56].mxu1 %v17526_v0  ;;  %v7310_v35 = vsub.f32 %v18484_v27, %v7309_v23 }
0x1779   :  { %16959 = vmatpush1.bf16.msra.mxu0 %v18323_v30  ;;  %17004 = vmatpush3.bf16.msra.mxu1 %v18325_v31 }
0x177a   :  { %16961 = vmatprep.subr.bf16.mxu0 %v18331_v47  ;;  %17005 = vmatprep.subr.bf16.mxu1 %v17528_v28 }
0x177b   :  { %6344 = vmatprep.mubr.f32.mxu0 %v17526_v0  ;;  %15941 = vmatprep.mubr.msk.f32.mxu1 %vm17527_vm0, %v17526_v0 }
0x177d   :  { %16963 = vmatpush1.bf16.msra.mxu0 %v18337_v26  ;;  %17007 = vmatpush3.bf16.msra.mxu1 %v18339_v48 }
0x177e   :  { %16965 = vmatprep.subr.bf16.mxu0 %v18345_v25  ;;  %17008 = vmatprep.subr.bf16.mxu1 %v17528_v28 }
0x1780   :  { %6346 = vmatmul.mubr.f32.vlgmr.msra.gmra.mrb[50].mxu0 %v17526_v0  ;;  %15942 = vmatmul.mubr.f32.vlgmr.msra.gmra.mrb[56].mxu1 %v17526_v0 }
0x1781   :  { %16967 = vmatpush1.bf16.msra.mxu0 %v18354_v20  ;;  %17010 = vmatpush3.bf16.msra.mxu1 %v18358_v4 }
0x1782   :  { %16969 = vmatprep.subr.bf16.mxu0 %v18364_v5  ;;  %17011 = vmatprep.subr.bf16.mxu1 %v17528_v28 }
0x1783   :  { %6432 = vmatprep.mubr.f32.mxu0 %v17526_v0  ;;  %15952 = vmatprep.mubr.msk.f32.mxu1 %vm17527_vm0, %v17526_v0 }
0x1785   :  { %16971 = vmatpush1.bf16.msra.mxu0 %v18372_v6  ;;  %17013 = vmatpush3.bf16.msra.mxu1 %v18376_v45 }
0x1786   :  { %16973 = vmatprep.subr.bf16.mxu0 %v18228_v57  ;;  %17014 = vmatprep.subr.bf16.mxu1 %v17528_v28 }
0x1788   :  { %6435 = vmatmul.mubr.f32.vlgmr.msra.gmra.mrb[50].mxu0 %v17526_v0  ;;  %15953 = vmatmul.mubr.f32.vlgmr.msra.gmra.mrb[56].mxu1 %v17526_v0 }
0x1789   :  { %16975 = vmatpush1.bf16.msra.mxu0 %v18264_v53  ;;  %17016 = vmatpush3.bf16.msra.mxu1 %v18266_v1 }
0x178a   :  { %16977 = vmatprep.subr.bf16.mxu0 %v18283_v8  ;;  %17017 = vmatprep.subr.bf16.mxu1 %v17528_v28 }
0x178b   :  { %6513 = vmatprep.mubr.f32.mxu0 %v17526_v0  ;;  %15963 = vmatprep.mubr.msk.f32.mxu1 %vm17527_vm0, %v17526_v0 }
0x178d   :  { %16979 = vmatpush1.bf16.msra.mxu0 %v18296_v14  ;;  %17019 = vmatpush3.bf16.msra.mxu1 %v18298_v54 }
0x178e   :  { %16981 = vmatprep.subr.bf16.mxu0 %v18397_v11  ;;  %17020 = vmatprep.subr.bf16.mxu1 %v17528_v28 }
0x1790   :  { %6517 = vmatmul.mubr.f32.vlgmr.msra.gmra.mrb[50].mxu0 %v17526_v0  ;;  %15964 = vmatmul.mubr.f32.vlgmr.msra.gmra.mrb[56].mxu1 %v17526_v0 }
0x1791   :  { %16983 = vmatpush1.bf16.msra.mxu0 %v18408_v51  ;;  %17022 = vmatpush3.bf16.msra.mxu1 %v18414_v21 }
0x1792   :  { %16985 = vmatprep.subr.bf16.mxu0 %v18422_v37  ;;  %17023 = vmatprep.subr.bf16.mxu1 %v17528_v28 }
0x1793   :  { %6611 = vmatprep.mubr.f32.mxu0 %v17526_v0  ;;  %15974 = vmatprep.mubr.msk.f32.mxu1 %vm17527_vm0, %v17526_v0 }
0x1795   :  { %16987 = vmatpush1.bf16.msra.mxu0 %v18432_v40  ;;  %17025 = vmatpush3.bf16.msra.mxu1 %v18438_v44 }
0x1796   :  { %16989 = vmatprep.subr.bf16.mxu0 %v18228_v57  ;;  %17026 = vmatprep.subr.bf16.mxu1 %v17528_v28 }
0x1798   :  { %6613 = vmatmul.mubr.f32.vlgmr.msra.gmra.mrb[50].mxu0 %v17526_v0  ;;  %15975 = vmatmul.mubr.f32.vlgmr.msra.gmra.mrb[56].mxu1 %v17526_v0 }
0x1799   :  { %16991 = vmatpush1.bf16.msra.mxu0 %v18264_v53  ;;  %17028 = vmatpush3.bf16.msra.mxu1 %v18266_v1 }
0x179a   :  { %16993 = vmatprep.subr.bf16.mxu0 %v18283_v8  ;;  %17029 = vmatprep.subr.bf16.mxu1 %v17528_v28 }
0x179b   :  { %6691 = vmatprep.mubr.f32.mxu0 %v17526_v0  ;;  %15985 = vmatprep.mubr.msk.f32.mxu1 %vm17527_vm0, %v17526_v0 }
0x179d   :  { %16995 = vmatpush1.bf16.msra.mxu0 %v18296_v14  ;;  %17031 = vmatpush3.bf16.msra.mxu1 %v18298_v54 }
0x179e   :  { %17038 = vmatprep.subr.bf16.mxu1 %v17528_v28  ;;  %17032 = vmatprep.subr.bf16.mxu0 %v17528_v28 }
0x17a0   :  { %6693 = vmatmul.mubr.f32.vlgmr.msra.gmra.mrb[50].mxu0 %v17526_v0  ;;  %15986 = vmatmul.mubr.f32.vlgmr.msra.gmra.mrb[56].mxu1 %v17526_v0 }
0x17a1   :  { %16007 = vmatprep.mubr.msk.f32.mxu1 %vm17527_vm0, %v17526_v0  ;;  %15996 = vmatprep.mubr.msk.f32.mxu0 %vm17527_vm0, %v17526_v0 }
0x1843   :  { %v5662_v12 = vpop.f32.mrb[48].mxu0  ;;  %v6152_v49 = vpop.f32.mrb[54].mxu1 }
0x1844   :  { %v18471_v50 = vadd.f32 %v14585_v43, %v6152_v49  ;;  %v15855_v52 = vpop.f32.mrb[49].mxu0  ;;  %v15921_v56 = vpop.f32.mrb[55].mxu1  ;;  %v17263_v62 = vadd.f32 %v14585_v43, %v5662_v12  ;;  %v7324_v43 = vsub.f32 %v18488_v3, %v7323_v32  ;;  %v7304_v12 = vand.u32 4294901760, %v7303_v34 }
0x1845   :  { %v7311_v49 = vand.u32 4294901760, %v7310_v35  ;;  %v7318_v52 = vand.u32 4294901760, %v7317_v41 }
0x1846   :  { %v7325_v56 = vand.u32 4294901760, %v7324_v43 }
0x1873   :  { %v6694_v58 = vpop.f32.mrb[50].mxu0  ;;  %v7180_v59 = vpop.f32.mrb[56].mxu1 }
0x1874   :  { %v7184_v33 = vadd.f32 %v7180_v59, %v6694_v58  ;;  %v18473_v36 = vpop.f32.mrb[51].mxu0  ;;  %v15987_v42 = vpop.f32.mrb[57].mxu1  ;;  %v18506_v58 = vpack.c.bf16 %v7311_v49, %v7304_v12  ;;  %v18509_v59 = vpack.c.bf16 %v7325_v56, %v7318_v52  ;;  %v18514_v49 = vpack.c.bf16 %v7224_v38, %v7221_v13 }
0x1875   :  { %v18518_v52 = vpack.c.bf16 %v7230_v17, %v7227_v16 }
0x1876   :  { %v7185_v39 = vadd.f32 %v17263_v62, %v7184_v33  ;;  %17040 = vmatpush3.bf16.msra.mxu1 %v18506_v58  ;;  %17034 = vmatpush3.bf16.msra.mxu0 %v18514_v49 }
0x1877   :  { %17041 = vmatprep.subr.bf16.mxu1 %v17528_v28  ;;  %17035 = vmatprep.subr.bf16.mxu0 %v17528_v28 }
0x1878   :  { %17421 = vtanh.f32 %v7185_v39 }
0x187a   :  { %17043 = vmatpush3.bf16.msra.mxu1 %v18509_v59  ;;  %17037 = vmatpush3.bf16.msra.mxu0 %v18518_v52 }
0x187b   :  { %17050 = vmatprep.subr.bf16.mxu1 %v17528_v28  ;;  %17044 = vmatprep.subr.bf16.mxu0 %v17528_v28 }
0x1882   :  { %v17422_v55 = vpop.eup %17421 }
0x1883   :  { %v7193_v63 = vmul.f32 %v17422_v55, %v18478_v46 }
0x1885   :  { %v7194_v7 = vsel %vm1020_vm4, %v7193_v63, 0.0 }
0x1886   :  { %7195 = vadd.xlane.f32.xlu1 %v7194_v7 }
0x1913   :  { %v7196_v62 = vpop.xlane.xlu1 %7195 }
0x1914   :  { %v7197_v33 = vrot.slane %v7196_v62, 4 }
0x1916   :  { %v7198_v42 = vmax.f32 %v7196_v62, %v7197_v33 }
0x1918   :  { %v7199_v39 = vrot.slane %v7198_v42, 2 }
0x191a   :  { %v7200_v55 = vmax.f32 %v7198_v42, %v7199_v39 }
0x191c   :  { %v7201_v63 = vrot.slane %v7200_v55, 1 }
0x191e   :  { %v7202_v7 = vmax.f32 %v7200_v55, %v7201_v63  ;;  %v18539_v63 = vpack.c.bf16 %v18488_v3, %v18486_v19 }
0x1920   :  { %v7203_v9 = vsub.f32 %v7196_v62, %v7202_v7  ;;  %v18553_v7 = vpack.c.bf16 %v7309_v23, %v7302_v2 }
0x1922   :  { %v7204_v24 = vmul.f32 1.442695, %v7203_v9  ;;  %v18562_v9 = vpack.c.bf16 %v7323_v32, %v7316_v29 }
0x1924   :  { %17423 = vpow2.f32 %v7204_v24 }
0x192e   :  { %v17424_v10 = vpop.eup %17423 }
0x192f   :  { %v7206_v15 = vrot.slane %v17424_v10, 4 }
0x1931   :  { %v7207_v34 = vadd.f32 %v17424_v10, %v7206_v15 }
0x1933   :  { %v7208_v35 = vrot.slane %v7207_v34, 2 }
0x1935   :  { %v7209_v41 = vadd.f32 %v7208_v35, %v7207_v34 }
0x1937   :  { %v7210_v43 = vrot.slane %v7209_v41, 1 }
0x1939   :  { %v7211_v12 = vadd.f32 %v7210_v43, %v7209_v41 }
0x193b   :  { %17425 = vrcp.f32 %v7211_v12 }
0x1945   :  { %v17426_v56 = vpop.eup %17425 }
0x1946   :  { %v7213_v62 = vmul.f32 %v17426_v56, %v17424_v10 }
0x1948   :  { %v7214_v33 = vmul.f32 %v7213_v62, %v18114_v61  ;;  %v18532_v61 = vpack.c.bf16 %v18484_v27, %v18482_v18 }
0x194a   :  { %7216 = vrot.lane.b32.xlu0 %v7214_v33, %s17530_s10 }
0x19bc   :  { %v7217_v42 = vpop.permute.xlu0 %7216 }
0x19bd   :  { %v7218_v13 = vsel %vm1020_vm4, %v7217_v42, 0 }
0x19be   :  { %v7289_v38 = vand.u32 4294901760, %v7218_v13 }
0x19c0   :  { %v7290_v39 = vsub.f32 %v7218_v13, %v7289_v38  ;;  %16008 = vmatmul.mubr.f32.vlgmr.msra.gmra.mrb[58].mxu1 %v7289_v38 }
0x19c1   :  { %17052 = vmatpush3.bf16.msra.mxu1 %v18514_v49  ;;  %16029 = vmatprep.mubr.msk.f32.mxu1 %vm17527_vm0, %v17526_v0 }
0x19c2   :  { %v7291_v16 = vand.u32 4294901760, %v7290_v39  ;;  %17053 = vmatprep.subr.bf16.mxu1 %v17528_v28 }
0x19c4   :  { %v7292_v17 = vsub.f32 %v7290_v39, %v7291_v16 }
0x19c5   :  { %17055 = vmatpush3.bf16.msra.mxu1 %v18518_v52 }
0x19c6   :  { %v7293_v55 = vand.u32 4294901760, %v7292_v17  ;;  %17062 = vmatprep.subr.bf16.mxu1 %v17528_v28 }
0x19c8   :  { %16030 = vmatmul.mubr.f32.vlgmr.msra.gmra.mrb[60].mxu1 %v7291_v16  ;;  %15997 = vmatmul.mubr.f32.vlgmr.msra.gmra.mrb[52].mxu0 %v7293_v55 }
0x19c9   :  { %17046 = vmatpush3.bf16.msra.mxu0 %v18532_v61  ;;  %17064 = vmatpush3.bf16.msra.mxu1 %v18514_v49 }
0x19ca   :  { %17047 = vmatprep.subr.bf16.mxu0 %v17528_v28  ;;  %17065 = vmatprep.subr.bf16.mxu1 %v17528_v28 }
0x19cb   :  { %16018 = vmatprep.mubr.msk.f32.mxu0 %vm17527_vm0, %v17526_v0  ;;  %16051 = vmatprep.mubr.msk.f32.mxu1 %vm17527_vm0, %v17526_v0 }
0x19cd   :  { %17049 = vmatpush3.bf16.msra.mxu0 %v18539_v63  ;;  %17067 = vmatpush3.bf16.msra.mxu1 %v18518_v52 }
0x19ce   :  { %17056 = vmatprep.subr.bf16.mxu0 %v17528_v28  ;;  %17116 = vmatprep.subr.bf16.mxu1 %v17528_v28 }
0x19d0   :  { %16019 = vmatmul.mubr.f32.vlgmr.msra.gmra.mrb[54].mxu0 %v7290_v39  ;;  %16052 = vmatmul.mubr.f32.vlgmr.msra.gmra.mrb[62].mxu1 %v7289_v38 }
0x19d1   :  { %17058 = vmatpush3.bf16.msra.mxu0 %v18553_v7  ;;  %16040 = vmatprep.mubr.msk.f32.mxu0 %vm17527_vm0, %v17526_v0 }
0x19d2   :  { %17059 = vmatprep.subr.bf16.mxu0 %v17528_v28  ;;  %17118 = vmatpush3.bf16.msra.mxu1 %v18266_v1 }
0x19d3   :  { %17119 = vmatprep.subr.bf16.mxu1 %v17528_v28  ;;  %16062 = vmatprep.mubr.msk.f32.mxu1 %vm17527_vm0, %v17526_v0 }
0x19d5   :  { %17061 = vmatpush3.bf16.msra.mxu0 %v18562_v9 }
0x19d6   :  { %17069 = vmatprep.subr.bf16.mxu0 %v18228_v57  ;;  %17121 = vmatpush3.bf16.msra.mxu1 %v18298_v54 }
0x19d7   :  { %17122 = vmatprep.subr.bf16.mxu1 %v17528_v28 }
0x19d8   :  { %16041 = vmatmul.mubr.f32.vlgmr.msra.gmra.mrb[56].mxu0 %v7289_v38 }
0x19d9   :  { %17071 = vmatpush1.bf16.msra.mxu0 %v18264_v53  ;;  %7809 = vmatprep.mubr.f32.mxu0 %v17526_v0 }
0x19da   :  { %17073 = vmatprep.subr.bf16.mxu0 %v18283_v8 }
0x19dd   :  { %17075 = vmatpush1.bf16.msra.mxu0 %v18296_v14 }
0x19de   :  { %17077 = vmatprep.subr.bf16.mxu0 %v18318_v22  ;;  %v18584_v22 = vld [vmem:[%s19171_s2 + $0x1] ss:$0 sm:$0xff] }
0x1a93   :  { %v7386_v18 = vpop.f32.mrb[58].mxu1 }
0x1a94   :  { %v16009_v27 = vpop.f32.mrb[59].mxu1 }
0x1a9b   :  { %v7543_v19 = vpop.f32.mrb[60].mxu1  ;;  %v7295_v3 = vpop.f32.mrb[52].mxu0 }
0x1a9c   :  { %v7296_v2 = vadd.f32 %v7295_v3, %v18473_v36  ;;  %v16031_v23 = vpop.f32.mrb[61].mxu1  ;;  %v15998_v29 = vpop.f32.mrb[53].mxu0 }
0x1a9e   :  { %v7387_v32 = vadd.f32 %v7386_v18, %v7296_v2 }
0x1aa3   :  { %v7466_v24 = vpop.f32.mrb[54].mxu0  ;;  %v7701_v10 = vpop.f32.mrb[62].mxu1 }
0x1aa4   :  { %v7467_v15 = vadd.f32 %v7466_v24, %v7387_v32  ;;  %v16020_v34 = vpop.f32.mrb[55].mxu0  ;;  %v16053_v35 = vpop.f32.mrb[63].mxu1 }
0x1aa6   :  { %v7544_v41 = vadd.f32 %v7543_v19, %v7467_v15 }
0x1aab   :  { %v7626_v43 = vpop.f32.mrb[56].mxu0 }
0x1aac   :  { %v7627_v12 = vadd.f32 %v7626_v43, %v7544_v41  ;;  %v16042_v56 = vpop.f32.mrb[57].mxu0 }
0x1aae   :  { %v7702_v62 = vadd.f32 %v7701_v10, %v7627_v12 }
0x1ab0   :  { %v7711_v36 = vadd.f32 %v18584_v22, %v7702_v62 }
0x1ab2   :  { %17427 = vtanh.f32 %v7711_v36 }
0x1abc   :  { %v17428_v33 = vpop.eup %17427 }
0x1abd   :  { %7717 = vrot.lane.b32.xlu0 %v17428_v33, %s17529_s9  ;;  %v7713_v42 = vmul.f32 0.5, %v17428_v33 }
0x1abf   :  { %v7714_v13 = vadd.f32 0.5, %v7713_v42 }
0x1ac1   :  { %v7715_v16 = vmul.f32 0.0, %v7714_v13 }
0x1b2f   :  { %v7718_v38 = vpop.permute.xlu0 %7717 }
0x1b30   :  { %v7720_v39 = vmul.f32 %v7718_v38, %v7714_v13 }
0x1b32   :  { %7722 = vrot.lane.b32.xlu0 %v7720_v39, %s17529_s9 }
0x1ba4   :  { %v7723_v17 = vpop.permute.xlu0 %7722 }
0x1ba5   :  { %v18589_v55 = vadd.f32 %v7723_v17, %v7715_v16  ;;  %v56_v16 = vld [vmem:[#allocation2 + $0x30] sm:$0xff]  ;;  %v57_v17 = vld [vmem:[#allocation2 + $0x68] sm:$0xff] }
0x1ba7   :  { %17429 = vtanh.f32 %v18589_v55 }
0x1bb1   :  { %v17430_v18 = vpop.eup %17429 }
0x1bb2   :  { %7728 = vrot.lane.b32.xlu0 %v17430_v18, %s17529_s9  ;;  %v9313_v18 = vand.u32 4294901760, %v56_v16 }
0x1c24   :  { %v7729_v27 = vpop.permute.xlu0 %7728 }
0x1c25   :  { %v7731_v19 = vmul.f32 %v7729_v27, %v7714_v13  ;;  %v9316_v27 = vand.u32 4294901760, %v57_v17 }
0x1c27   :  { %7733 = vrot.lane.b32.xlu0 %v7731_v19, %s17530_s10  ;;  %v58_v19 = vld [vmem:[#allocation2 + $0xa0] sm:$0xff] }
0x1c2b   :  { %8281 = vrot.lane.b32.xlu0 %v18589_v55, %s17531_s17 }
0x1c99   :  { %v7734_v3 = vpop.permute.xlu0 %7733 }
0x1c9a   :  { %v7735_v2 = vsel %vm1020_vm4, %v7734_v3, 0  ;;  %v59_v3 = vld [vmem:[#allocation2 + $0xd8] sm:$0xff] }
0x1c9b   :  { %v18596_v23 = vand.u32 4294901760, %v7735_v2 }
0x1c9d   :  { %v18599_v29 = vsub.f32 %v7735_v2, %v18596_v23  ;;  %v8282_v32 = vpop.permute.xlu0 %8281  ;;  %v9393_v2 = vsub.f32 %v56_v16, %v9313_v18 }
0x1c9e   :  { %v8283_v24 = vsel %vm1020_vm4, %v8282_v32, 0  ;;  %v9400_v32 = vsub.f32 %v57_v17, %v9316_v27 }
0x1c9f   :  { %v18603_v10 = vand.u32 4294901760, %v18599_v29  ;;  %v18605_v15 = vand.u32 4294901760, %v8283_v24 }
0x1ca1   :  { %v8355_v34 = vsub.f32 %v8283_v24, %v18605_v15  ;;  %v7813_v35 = vsub.f32 %v18599_v29, %v18603_v10  ;;  %v18714_v24 = vpack.c.bf16 %v9316_v27, %v9313_v18 }
0x1ca3   :  { %v8356_v41 = vand.u32 4294901760, %v8355_v34  ;;  %v18610_v43 = vand.u32 4294901760, %v7813_v35 }
0x1ca5   :  { %v8357_v12 = vsub.f32 %v8355_v34, %v8356_v41  ;;  %7815 = vmatmul.mubr.f32.vlgmr.msra.gmra.mrb[58].mxu0 %v18610_v43 }
0x1ca6   :  { %17079 = vmatpush1.bf16.msra.mxu0 %v18323_v30  ;;  %7925 = vmatprep.mubr.f32.mxu0 %v17526_v0 }
0x1ca7   :  { %v8358_v56 = vand.u32 4294901760, %v8357_v12  ;;  %17081 = vmatprep.subr.bf16.mxu0 %v18331_v47 }
0x1ca9   :  { %16063 = vmatmul.mubr.f32.vlgmr.msra.gmra.mrb[64].mxu1 %v8358_v56 }
0x1caa   :  { %17083 = vmatpush1.bf16.msra.mxu0 %v18337_v26  ;;  %17124 = vmatpush3.bf16.msra.mxu1 %v18325_v31 }
0x1cab   :  { %17085 = vmatprep.subr.bf16.mxu0 %v18345_v25  ;;  %17125 = vmatprep.subr.bf16.mxu1 %v17528_v28 }
0x1cac   :  { %16073 = vmatprep.mubr.msk.f32.mxu1 %vm17527_vm0, %v17526_v0 }
0x1cad   :  { %7927 = vmatmul.mubr.f32.vlgmr.msra.gmra.mrb[58].mxu0 %v18596_v23 }
0x1cae   :  { %17087 = vmatpush1.bf16.msra.mxu0 %v18354_v20  ;;  %17127 = vmatpush3.bf16.msra.mxu1 %v18339_v48 }
0x1caf   :  { %17089 = vmatprep.subr.bf16.mxu0 %v18364_v5  ;;  %17128 = vmatprep.subr.bf16.mxu1 %v17528_v28 }
0x1cb0   :  { %8013 = vmatprep.mubr.f32.mxu0 %v17526_v0 }
0x1cb1   :  { %16074 = vmatmul.mubr.f32.vlgmr.msra.gmra.mrb[64].mxu1 %v18605_v15 }
0x1cb2   :  { %17091 = vmatpush1.bf16.msra.mxu0 %v18372_v6  ;;  %17130 = vmatpush3.bf16.msra.mxu1 %v18358_v4 }
0x1cb3   :  { %17093 = vmatprep.subr.bf16.mxu0 %v18228_v57  ;;  %17131 = vmatprep.subr.bf16.mxu1 %v17528_v28 }
0x1cb4   :  { %16084 = vmatprep.mubr.msk.f32.mxu1 %vm17527_vm0, %v17526_v0 }
0x1cb5   :  { %8016 = vmatmul.mubr.f32.vlgmr.msra.gmra.mrb[58].mxu0 %v18599_v29 }
0x1cb6   :  { %17095 = vmatpush1.bf16.msra.mxu0 %v18264_v53  ;;  %17133 = vmatpush3.bf16.msra.mxu1 %v18376_v45 }
0x1cb7   :  { %17097 = vmatprep.subr.bf16.mxu0 %v18283_v8  ;;  %17134 = vmatprep.subr.bf16.mxu1 %v17528_v28 }
0x1cb8   :  { %8094 = vmatprep.mubr.f32.mxu0 %v17526_v0 }
0x1cb9   :  { %16085 = vmatmul.mubr.f32.vlgmr.msra.gmra.mrb[64].mxu1 %v8355_v34 }
0x1cba   :  { %17099 = vmatpush1.bf16.msra.mxu0 %v18296_v14  ;;  %17136 = vmatpush3.bf16.msra.mxu1 %v18266_v1 }
0x1cbb   :  { %17101 = vmatprep.subr.bf16.mxu0 %v18397_v11  ;;  %17137 = vmatprep.subr.bf16.mxu1 %v17528_v28 }
0x1cbc   :  { %16095 = vmatprep.mubr.msk.f32.mxu1 %vm17527_vm0, %v17526_v0 }
0x1cbd   :  { %8098 = vmatmul.mubr.f32.vlgmr.msra.gmra.mrb[58].mxu0 %v18603_v10 }
0x1cbe   :  { %17103 = vmatpush1.bf16.msra.mxu0 %v18408_v51  ;;  %17139 = vmatpush3.bf16.msra.mxu1 %v18298_v54 }
0x1cbf   :  { %17105 = vmatprep.subr.bf16.mxu0 %v18422_v37  ;;  %17140 = vmatprep.subr.bf16.mxu1 %v17528_v28 }
0x1cc0   :  { %8192 = vmatprep.mubr.f32.mxu0 %v17526_v0 }
0x1cc1   :  { %16096 = vmatmul.mubr.f32.vlgmr.msra.gmra.mrb[64].mxu1 %v8356_v41 }
0x1cc2   :  { %17107 = vmatpush1.bf16.msra.mxu0 %v18432_v40  ;;  %17142 = vmatpush3.bf16.msra.mxu1 %v18414_v21 }
0x1cc3   :  { %17109 = vmatprep.subr.bf16.mxu0 %v18228_v57  ;;  %17143 = vmatprep.subr.bf16.mxu1 %v17528_v28 }
0x1cc4   :  { %16106 = vmatprep.mubr.msk.f32.mxu1 %vm17527_vm0, %v17526_v0 }
0x1cc5   :  { %8194 = vmatmul.mubr.f32.vlgmr.msra.gmra.mrb[58].mxu0 %v18596_v23 }
0x1cc6   :  { %17111 = vmatpush1.bf16.msra.mxu0 %v18264_v53  ;;  %17145 = vmatpush3.bf16.msra.mxu1 %v18438_v44 }
0x1cc7   :  { %17113 = vmatprep.subr.bf16.mxu0 %v18283_v8  ;;  %17146 = vmatprep.subr.bf16.mxu1 %v17528_v28 }
0x1cc8   :  { %8272 = vmatprep.mubr.f32.mxu0 %v17526_v0 }
0x1cc9   :  { %16107 = vmatmul.mubr.f32.vlgmr.msra.gmra.mrb[64].mxu1 %v18605_v15 }
0x1cca   :  { %17115 = vmatpush1.bf16.msra.mxu0 %v18296_v14  ;;  %17148 = vmatpush3.bf16.msra.mxu1 %v18266_v1 }
0x1ccb   :  { %17149 = vmatprep.subr.bf16.mxu1 %v17528_v28  ;;  %16117 = vmatprep.mubr.msk.f32.mxu1 %vm17527_vm0, %v17526_v0 }
0x1ccc   :  { %17152 = vmatprep.subr.bf16.mxu0 %v17528_v28 }
0x1ccd   :  { %8274 = vmatmul.mubr.f32.vlgmr.msra.gmra.mrb[58].mxu0 %v18596_v23 }
0x1cce   :  { %17151 = vmatpush3.bf16.msra.mxu1 %v18298_v54  ;;  %17154 = vmatpush3.bf16.msra.mxu0 %v18514_v49 }
0x1ccf   :  { %17158 = vmatprep.subr.bf16.mxu1 %v17528_v28  ;;  %17155 = vmatprep.subr.bf16.mxu0 %v17528_v28 }
0x1cd0   :  { %16128 = vmatprep.mubr.msk.f32.mxu0 %vm17527_vm0, %v17526_v0 }
0x1cd1   :  { %16118 = vmatmul.mubr.f32.vlgmr.msra.gmra.mrb[64].mxu1 %v18605_v15  ;;  %v9401_v15 = vand.u32 4294901760, %v9400_v32 }
0x1cd2   :  { %17160 = vmatpush3.bf16.msra.mxu1 %v18506_v58  ;;  %16139 = vmatprep.mubr.msk.f32.mxu1 %vm17527_vm0, %v17526_v0 }
0x1cd3   :  { %17161 = vmatprep.subr.bf16.mxu1 %v17528_v28  ;;  %17157 = vmatpush3.bf16.msra.mxu0 %v18518_v52  ;;  %v9402_v41 = vsub.f32 %v9400_v32, %v9401_v15 }
0x1cd4   :  { %17164 = vmatprep.subr.bf16.mxu0 %v17528_v28 }
0x1cd6   :  { %17163 = vmatpush3.bf16.msra.mxu1 %v18509_v59 }
0x1cd7   :  { %17170 = vmatprep.subr.bf16.mxu1 %v17528_v28 }
0x1da0   :  { %v8275_v57 = vpop.f32.mrb[58].mxu0 }
0x1da1   :  { %v18688_v53 = vpop.f32.mrb[59].mxu0 }
0x1da4   :  { %v8766_v1 = vpop.f32.mrb[64].mxu1 }
0x1da5   :  { %v8770_v8 = vadd.f32 %v8766_v1, %v8275_v57  ;;  %v16119_v14 = vpop.f32.mrb[65].mxu1  ;;  %v9403_v1 = vand.u32 4294901760, %v9402_v41 }
0x1da7   :  { %v8771_v54 = vadd.f32 %v18471_v50, %v8770_v8 }
0x1da9   :  { %17431 = vtanh.f32 %v8771_v54 }
0x1db3   :  { %v17432_v30 = vpop.eup %17431 }
0x1db4   :  { %v8773_v31 = vmul.f32 %v17432_v30, %v18478_v46 }
0x1db6   :  { %v8774_v47 = vsel %vm1020_vm4, %v8773_v31, 0.0 }
0x1db7   :  { %8775 = vadd.xlane.f32.xlu0 %v8774_v47  ;;  %v18746_v47 = vpack.c.bf16 %v9400_v32, %v9393_v2 }
0x1e44   :  { %v8776_v26 = vpop.xlane.xlu0 %8775 }
0x1e45   :  { %v8777_v48 = vrot.slane %v8776_v26, 4 }
0x1e47   :  { %v8778_v25 = vmax.f32 %v8776_v26, %v8777_v48 }
0x1e49   :  { %v8779_v20 = vrot.slane %v8778_v25, 2 }
0x1e4b   :  { %v8780_v4 = vmax.f32 %v8778_v25, %v8779_v20 }
0x1e4d   :  { %v8781_v5 = vrot.slane %v8780_v4, 1 }
0x1e4f   :  { %v8782_v6 = vmax.f32 %v8780_v4, %v8781_v5 }
0x1e51   :  { %v8783_v45 = vsub.f32 %v8776_v26, %v8782_v6 }
0x1e53   :  { %v8784_v11 = vmul.f32 1.442695, %v8783_v45 }
0x1e55   :  { %17433 = vpow2.f32 %v8784_v11 }
0x1e5f   :  { %v17434_v51 = vpop.eup %17433 }
0x1e60   :  { %v8786_v21 = vrot.slane %v17434_v51, 4 }
0x1e62   :  { %v8787_v37 = vadd.f32 %v17434_v51, %v8786_v21 }
0x1e64   :  { %v8788_v40 = vrot.slane %v8787_v37, 2 }
0x1e66   :  { %v8789_v44 = vadd.f32 %v8788_v40, %v8787_v37 }
0x1e68   :  { %v8790_v50 = vrot.slane %v8789_v44, 1 }
0x1e6a   :  { %v8791_v46 = vadd.f32 %v8790_v50, %v8789_v44 }
0x1e6c   :  { %17435 = vrcp.f32 %v8791_v46 }
0x1e76   :  { %v17436_v58 = vpop.eup %17435 }
0x1e77   :  { %v8793_v59 = vmul.f32 %v17436_v58, %v17434_v51 }
0x1e79   :  { %v8794_v62 = vmul.f32 %v8793_v59, %v18111_v60 }
0x1e7b   :  { %8796 = vrot.lane.b32.xlu1 %v8794_v62, %s17530_s10 }
0x1eed   :  { %v8797_v36 = vpop.permute.xlu1 %8796 }
0x1eee   :  { %v8798_v33 = vsel %vm1020_vm4, %v8797_v36, 0 }
0x1eef   :  { %v8869_v42 = vand.u32 4294901760, %v8798_v33 }
0x1ef1   :  { %v8870_v13 = vsub.f32 %v8798_v33, %v8869_v42  ;;  %16140 = vmatmul.mubr.f32.vlgmr.msra.gmra.mrb[66].mxu1 %v8869_v42 }
0x1ef2   :  { %17172 = vmatpush3.bf16.msra.mxu1 %v18514_v49  ;;  %16161 = vmatprep.mubr.msk.f32.mxu1 %vm17527_vm0, %v17526_v0 }
0x1ef3   :  { %v8871_v38 = vand.u32 4294901760, %v8870_v13  ;;  %17173 = vmatprep.subr.bf16.mxu1 %v17528_v28 }
0x1ef5   :  { %v8872_v39 = vsub.f32 %v8870_v13, %v8871_v38 }
0x1ef6   :  { %17175 = vmatpush3.bf16.msra.mxu1 %v18518_v52 }
0x1ef7   :  { %v8873_v60 = vand.u32 4294901760, %v8872_v39  ;;  %17182 = vmatprep.subr.bf16.mxu1 %v17528_v28 }
0x1ef9   :  { %16162 = vmatmul.mubr.f32.vlgmr.msra.gmra.mrb[68].mxu1 %v8871_v38  ;;  %16129 = vmatmul.mubr.f32.vlgmr.msra.gmra.mrb[60].mxu0 %v8873_v60 }
0x1efa   :  { %17166 = vmatpush3.bf16.msra.mxu0 %v18532_v61  ;;  %17184 = vmatpush3.bf16.msra.mxu1 %v18514_v49  ;;  %v9319_v61 = vand.u32 4294901760, %v58_v19  ;;  %v9322_v49 = vand.u32 4294901760, %v59_v3 }
0x1efb   :  { %17167 = vmatprep.subr.bf16.mxu0 %v17528_v28  ;;  %17185 = vmatprep.subr.bf16.mxu1 %v17528_v28 }
0x1efc   :  { %16150 = vmatprep.mubr.msk.f32.mxu0 %vm17527_vm0, %v17526_v0  ;;  %16183 = vmatprep.mubr.msk.f32.mxu1 %vm17527_vm0, %v17526_v0  ;;  %v9414_v34 = vsub.f32 %v59_v3, %v9322_v49  ;;  %v18724_v35 = vpack.c.bf16 %v9322_v49, %v9319_v61 }
0x1efe   :  { %17169 = vmatpush3.bf16.msra.mxu0 %v18539_v63  ;;  %17187 = vmatpush3.bf16.msra.mxu1 %v18518_v52  ;;  %v9394_v63 = vand.u32 4294901760, %v9393_v2  ;;  %v9407_v52 = vsub.f32 %v58_v19, %v9319_v61  ;;  %v9415_v56 = vand.u32 4294901760, %v9414_v34 }
0x1eff   :  { %17176 = vmatprep.subr.bf16.mxu0 %v17528_v28  ;;  %17224 = vmatprep.subr.bf16.mxu1 %v17528_v28 }
0x1f00   :  { %v9408_v12 = vand.u32 4294901760, %v9407_v52  ;;  %v18764_v26 = vpack.c.bf16 %v9401_v15, %v9394_v63 }
0x1f01   :  { %16151 = vmatmul.mubr.f32.vlgmr.msra.gmra.mrb[62].mxu0 %v8870_v13  ;;  %16184 = vmatmul.mubr.f32.vlgmr.msra.gmra.mrb[70].mxu1 %v8869_v42 }
0x1f02   :  { %17178 = vmatpush3.bf16.msra.mxu0 %v18553_v7  ;;  %16172 = vmatprep.mubr.msk.f32.mxu0 %vm17527_vm0, %v17526_v0  ;;  %v9395_v7 = vsub.f32 %v9393_v2, %v9394_v63  ;;  %v9409_v8 = vsub.f32 %v9407_v52, %v9408_v12  ;;  %v18769_v48 = vpack.c.bf16 %v9415_v56, %v9408_v12 }
0x1f03   :  { %17179 = vmatprep.subr.bf16.mxu0 %v17528_v28  ;;  %17226 = vmatpush3.bf16.msra.mxu1 %v18714_v24 }
0x1f04   :  { %17227 = vmatprep.subr.bf16.mxu1 %v17528_v28  ;;  %16260 = vmatprep.mubr.msk.f32.mxu1 %vm17527_vm0, %v17526_v0  ;;  %v9396_v57 = vand.u32 4294901760, %v9395_v7  ;;  %v9410_v54 = vand.u32 4294901760, %v9409_v8 }
0x1f06   :  { %17181 = vmatpush3.bf16.msra.mxu0 %v18562_v9  ;;  %v9416_v9 = vsub.f32 %v9414_v34, %v9415_v56  ;;  %v18735_v14 = vpack.c.bf16 %v9403_v1, %v9396_v57 }
0x1f07   :  { %17188 = vmatprep.subr.bf16.mxu0 %v17528_v28  ;;  %17229 = vmatpush3.bf16.msra.mxu1 %v18724_v35 }
0x1f08   :  { %17230 = vmatprep.subr.bf16.mxu1 %v17528_v28  ;;  %v9417_v30 = vand.u32 4294901760, %v9416_v9 }
0x1f09   :  { %16173 = vmatmul.mubr.f32.vlgmr.msra.gmra.mrb[64].mxu0 %v8869_v42 }
0x1f0a   :  { %17190 = vmatpush3.bf16.msra.mxu0 %v18714_v24  ;;  %16194 = vmatprep.mubr.msk.f32.mxu0 %vm17527_vm0, %v17526_v0  ;;  %v18740_v31 = vpack.c.bf16 %v9417_v30, %v9410_v54 }
0x1f0b   :  { %17191 = vmatprep.subr.bf16.mxu0 %v17528_v28 }
0x1f0e   :  { %17193 = vmatpush3.bf16.msra.mxu0 %v18724_v35 }
0x1f0f   :  { %17194 = vmatprep.subr.bf16.mxu0 %v17528_v28 }
0x1f11   :  { %16195 = vmatmul.mubr.f32.vlgmr.msra.gmra.mrb[66].mxu0 %v18610_v43  ;;  %v18751_v43 = vpack.c.bf16 %v9414_v34, %v9407_v52 }
0x1f12   :  { %17196 = vmatpush3.bf16.msra.mxu0 %v18735_v14  ;;  %16205 = vmatprep.mubr.msk.f32.mxu0 %vm17527_vm0, %v17526_v0 }
0x1f13   :  { %17197 = vmatprep.subr.bf16.mxu0 %v17528_v28 }
0x1f16   :  { %17199 = vmatpush3.bf16.msra.mxu0 %v18740_v31 }
0x1f17   :  { %17200 = vmatprep.subr.bf16.mxu0 %v17528_v28 }
0x1f19   :  { %16206 = vmatmul.mubr.f32.vlgmr.msra.gmra.mrb[66].mxu0 %v18596_v23 }
0x1f1a   :  { %17202 = vmatpush3.bf16.msra.mxu0 %v18746_v47  ;;  %16216 = vmatprep.mubr.msk.f32.mxu0 %vm17527_vm0, %v17526_v0 }
0x1f1b   :  { %17203 = vmatprep.subr.bf16.mxu0 %v17528_v28 }
0x1f1e   :  { %17205 = vmatpush3.bf16.msra.mxu0 %v18751_v43 }
0x1f1f   :  { %17206 = vmatprep.subr.bf16.mxu0 %v17528_v28 }
0x1f21   :  { %16217 = vmatmul.mubr.f32.vlgmr.msra.gmra.mrb[66].mxu0 %v18599_v29  ;;  %v67_v29 = vld [vmem:[%s19172_s3 + $0x8] sm:$0x3f] }
0x1f22   :  { %17208 = vmatpush3.bf16.msra.mxu0 %v18714_v24  ;;  %16227 = vmatprep.mubr.msk.f32.mxu0 %vm17527_vm0, %v17526_v0 }
0x1f23   :  { %17209 = vmatprep.subr.bf16.mxu0 %v17528_v28 }
0x1f26   :  { %17211 = vmatpush3.bf16.msra.mxu0 %v18724_v35 }
0x1f27   :  { %17212 = vmatprep.subr.bf16.mxu0 %v17528_v28 }
0x1f29   :  { %16228 = vmatmul.mubr.f32.vlgmr.msra.gmra.mrb[66].mxu0 %v18603_v10  ;;  %v10328_v10 = vsel %vm80_vm1, %v67_v29, 0 }
0x1f2a   :  { %17214 = vmatpush3.bf16.msra.mxu0 %v18764_v26  ;;  %16238 = vmatprep.mubr.msk.f32.mxu0 %vm17527_vm0, %v17526_v0  ;;  %v18787_v25 = vand.u32 4294901760, %v10328_v10 }
0x1f2b   :  { %17215 = vmatprep.subr.bf16.mxu0 %v17528_v28 }
0x1f2c   :  { %v18795_v20 = vsub.f32 %v10328_v10, %v18787_v25 }
0x1f2e   :  { %17217 = vmatpush3.bf16.msra.mxu0 %v18769_v48  ;;  %v18815_v49 = vand.u32 4294901760, %v18795_v20 }
0x1f2f   :  { %17218 = vmatprep.subr.bf16.mxu0 %v17528_v28 }
0x1f30   :  { %v10410_v7 = vsub.f32 %v18795_v20, %v18815_v49 }
0x1f31   :  { %16239 = vmatmul.mubr.f32.vlgmr.msra.gmra.mrb[66].mxu0 %v18596_v23 }
0x1f32   :  { %17220 = vmatpush3.bf16.msra.mxu0 %v18714_v24  ;;  %16249 = vmatprep.mubr.msk.f32.mxu0 %vm17527_vm0, %v17526_v0  ;;  %v18856_v41 = vand.u32 4294901760, %v10410_v7 }
0x1f33   :  { %17221 = vmatprep.subr.bf16.mxu0 %v17528_v28 }
0x1f36   :  { %17223 = vmatpush3.bf16.msra.mxu0 %v18724_v35 }
0x1f37   :  { %16318 = vmatprep.subr.mxu0 %v17526_v0 }
0x1f39   :  { %16250 = vmatmul.mubr.f32.vlgmr.msra.gmra.mrb[66].mxu0 %v18596_v23 }
0x1f3a   :  { %16319 = vmatpush3.msra.mxu0 %v18787_v25  ;;  %16320 = vmatprep.mubr.msk.f32.mxu0 %vm17527_vm0, %v17526_v0 }
0x1f3b   :  { %16328 = vmatprep.subr.mxu0 %v17526_v0 }
0x1f3d   :  { %16321 = vmatmul.mubr.f32.vlgmr.msra.gmra.mrb[68].mxu0 %v17526_v0 }
0x1f3e   :  { %16329 = vmatpush3.msra.mxu0 %v18795_v20  ;;  %16330 = vmatprep.mubr.msk.f32.mxu0 %vm17527_vm0, %v17526_v0 }
0x1f3f   :  { %16338 = vmatprep.subr.mxu0 %v17526_v0 }
0x1f41   :  { %16331 = vmatmul.mubr.f32.vlgmr.msra.gmra.mrb[70].mxu0 %v17526_v0 }
0x1f42   :  { %16340 = vmatprep.mubr.msk.f32.mxu0 %vm17527_vm0, %v17526_v0  ;;  %16339 = vmatpush3.msra.mxu0 %v18815_v49 }
0x1f43   :  { %16348 = vmatprep.subr.mxu0 %v17526_v0 }
0x1f45   :  { %16341 = vmatmul.mubr.f32.vlgmr.msra.gmra.mrb[72].mxu0 %v17526_v0 }
0x1f46   :  { %16349 = vmatpush3.msra.mxu0 %v18787_v25  ;;  %16350 = vmatprep.mubr.msk.f32.mxu0 %vm17527_vm0, %v17526_v0 }
0x1f47   :  { %16358 = vmatprep.subr.mxu0 %v17526_v0 }
0x1fc4   :  { %v8966_v23 = vpop.f32.mrb[66].mxu1 }
0x1fc5   :  { %v16141_v4 = vpop.f32.mrb[67].mxu1 }
0x1fcc   :  { %v9123_v5 = vpop.f32.mrb[68].mxu1  ;;  %v8875_v6 = vpop.f32.mrb[60].mxu0 }
0x1fcd   :  { %v8876_v45 = vadd.f32 %v8875_v6, %v18688_v53  ;;  %v16163_v11 = vpop.f32.mrb[69].mxu1  ;;  %v16130_v51 = vpop.f32.mrb[61].mxu0 }
0x1fcf   :  { %v8967_v21 = vadd.f32 %v8966_v23, %v8876_v45 }
0x1fd4   :  { %v9046_v37 = vpop.f32.mrb[62].mxu0  ;;  %v9281_v40 = vpop.f32.mrb[70].mxu1 }
0x1fd5   :  { %v9047_v44 = vadd.f32 %v9046_v37, %v8967_v21  ;;  %v16152_v50 = vpop.f32.mrb[63].mxu0  ;;  %v16185_v46 = vpop.f32.mrb[71].mxu1 }
0x1fd7   :  { %v9124_v58 = vadd.f32 %v9123_v5, %v9047_v44 }
0x1fdc   :  { %v9206_v59 = vpop.f32.mrb[64].mxu0 }
0x1fdd   :  { %v9207_v62 = vadd.f32 %v9206_v59, %v9124_v58  ;;  %v16174_v36 = vpop.f32.mrb[65].mxu0 }
0x1fdf   :  { %v9282_v33 = vadd.f32 %v9281_v40, %v9207_v62 }
0x1fe1   :  { %v9285_v42 = vadd.f32 %v18584_v22, %v9282_v33 }
0x1fe3   :  { %17437 = vtanh.f32 %v9285_v42 }
0x1fed   :  { %v17438_v13 = vpop.eup %17437 }
0x1fee   :  { %9291 = vrot.lane.b32.xlu1 %v17438_v13, %s17529_s9  ;;  %v9287_v39 = vmul.f32 0.5, %v17438_v13 }
0x1ff0   :  { %v9288_v60 = vadd.f32 0.5, %v9287_v39 }
0x1ff2   :  { %v9289_v18 = vmul.f32 %v9288_v60, %v18589_v55 }
0x200c   :  { %v18808_v53 = vpop.f32.mrb[66].mxu0 }
0x200d   :  { %v16251_v38 = vpop.f32.mrb[67].mxu0 }
0x2060   :  { %v9292_v16 = vpop.permute.xlu1 %9291 }
0x2061   :  { %v9294_v17 = vmul.f32 %v9292_v16, %v9288_v60 }
0x2063   :  { %9296 = vrot.lane.b32.xlu1 %v9294_v17, %s17529_s9 }
0x20d5   :  { %v9297_v27 = vpop.permute.xlu1 %9296 }
0x20d6   :  { %v9299_v19 = vadd.f32 %v9297_v27, %v9289_v18 }
0x20d8   :  { %17439 = vtanh.f32 %v9299_v19 }
0x20e2   :  { %v17440_v3 = vpop.eup %17439 }
0x20e3   :  { %9302 = vrot.lane.b32.xlu0 %v17440_v3, %s17529_s9 }
0x2155   :  { %v9303_v22 = vpop.permute.xlu0 %9302 }
0x2156   :  { %v9305_v61 = vmul.f32 %v9303_v22, %v9288_v60 }
0x2158   :  { %9798 = vrot.lane.b32.xlu1 %v9305_v61, %s17530_s10 }
0x21ca   :  { %v9799_v55 = vpop.permute.xlu1 %9798 }
0x21cb   :  { %v9800_v2 = vsel %vm1020_vm4, %v9799_v55, 0 }
0x21cc   :  { %v9871_v32 = vand.u32 4294901760, %v9800_v2 }
0x21ce   :  { %v9872_v63 = vsub.f32 %v9800_v2, %v9871_v32 }
0x21d0   :  { %v9873_v15 = vand.u32 4294901760, %v9872_v63 }
0x21d2   :  { %v9874_v52 = vsub.f32 %v9872_v63, %v9873_v15 }
0x21d4   :  { %v9875_v34 = vand.u32 4294901760, %v9874_v52 }
0x21d6   :  { %16261 = vmatmul.mubr.f32.vlgmr.msra.gmra.mrb[72].mxu1 %v9875_v34 }
0x21d7   :  { %17232 = vmatpush3.bf16.msra.mxu1 %v18735_v14  ;;  %16271 = vmatprep.mubr.msk.f32.mxu1 %vm17527_vm0, %v17526_v0  ;;  %v14588_v14 = vld [vmem:[%s19171_s2 + $0x4] ss:$0 sm:$0xff] }
0x21d8   :  { %17233 = vmatprep.subr.bf16.mxu1 %v17528_v28  ;;  %v18885_v23 = vadd.f32 %v14588_v14, %v18808_v53 }
0x21db   :  { %17235 = vmatpush3.bf16.msra.mxu1 %v18740_v31 }
0x21dc   :  { %17236 = vmatprep.subr.bf16.mxu1 %v17528_v28 }
0x21de   :  { %16272 = vmatmul.mubr.f32.vlgmr.msra.gmra.mrb[72].mxu1 %v9871_v32 }
0x21df   :  { %17238 = vmatpush3.bf16.msra.mxu1 %v18746_v47  ;;  %16282 = vmatprep.mubr.msk.f32.mxu1 %vm17527_vm0, %v17526_v0 }
0x21e0   :  { %17239 = vmatprep.subr.bf16.mxu1 %v17528_v28 }
0x21e3   :  { %17241 = vmatpush3.bf16.msra.mxu1 %v18751_v43 }
0x21e4   :  { %17242 = vmatprep.subr.bf16.mxu1 %v17528_v28 }
0x21e6   :  { %16283 = vmatmul.mubr.f32.vlgmr.msra.gmra.mrb[72].mxu1 %v9872_v63 }
0x21e7   :  { %17244 = vmatpush3.bf16.msra.mxu1 %v18714_v24  ;;  %16293 = vmatprep.mubr.msk.f32.mxu1 %vm17527_vm0, %v17526_v0 }
0x21e8   :  { %17245 = vmatprep.subr.bf16.mxu1 %v17528_v28 }
0x21eb   :  { %17247 = vmatpush3.bf16.msra.mxu1 %v18724_v35 }
0x21ec   :  { %17248 = vmatprep.subr.bf16.mxu1 %v17528_v28 }
0x21ee   :  { %16294 = vmatmul.mubr.f32.vlgmr.msra.gmra.mrb[72].mxu1 %v9873_v15 }
0x21ef   :  { %17250 = vmatpush3.bf16.msra.mxu1 %v18764_v26  ;;  %16304 = vmatprep.mubr.msk.f32.mxu1 %vm17527_vm0, %v17526_v0 }
0x21f0   :  { %17251 = vmatprep.subr.bf16.mxu1 %v17528_v28 }
0x21f3   :  { %17253 = vmatpush3.bf16.msra.mxu1 %v18769_v48 }
0x21f4   :  { %17254 = vmatprep.subr.bf16.mxu1 %v17528_v28 }
0x21f6   :  { %16305 = vmatmul.mubr.f32.vlgmr.msra.gmra.mrb[72].mxu1 %v9871_v32 }
0x21f7   :  { %17256 = vmatpush3.bf16.msra.mxu1 %v18714_v24  ;;  %16315 = vmatprep.mubr.msk.f32.mxu1 %vm17527_vm0, %v17526_v0 }
0x21f8   :  { %17257 = vmatprep.subr.bf16.mxu1 %v17528_v28  ;;  %v10402_v28 = vpop.f32.mrb[68].mxu0 }
0x21f9   :  { %v16322_v24 = vpop.f32.mrb[69].mxu0 }
0x21fb   :  { %17259 = vmatpush3.bf16.msra.mxu1 %v18724_v35  ;;  %v10552_v35 = vpop.f32.mrb[70].mxu0 }
0x21fc   :  { %16323 = vmatprep.subr.mxu1 %v17526_v0  ;;  %v16332_v12 = vpop.f32.mrb[71].mxu0 }
0x21fd   :  { %v10700_v56 = vpop.f32.mrb[72].mxu0 }
0x21fe   :  { %16316 = vmatmul.mubr.f32.vlgmr.msra.gmra.mrb[72].mxu1 %v9871_v32  ;;  %v16342_v57 = vpop.f32.mrb[73].mxu0 }
0x21ff   :  { %16324 = vmatpush3.msra.mxu1 %v18856_v41  ;;  %16325 = vmatprep.mubr.msk.f32.mxu1 %vm17527_vm0, %v17526_v0 }
0x2200   :  { %16333 = vmatprep.subr.mxu1 %v17526_v0 }
0x2202   :  { %16326 = vmatmul.mubr.f32.vlgmr.msra.gmra.mrb[74].mxu1 %v17526_v0 }
0x2203   :  { %16334 = vmatpush3.msra.mxu1 %v18787_v25  ;;  %16335 = vmatprep.mubr.msk.f32.mxu1 %vm17527_vm0, %v17526_v0 }
0x2204   :  { %16343 = vmatprep.subr.mxu1 %v17526_v0 }
0x2206   :  { %16336 = vmatmul.mubr.f32.vlgmr.msra.gmra.mrb[76].mxu1 %v17526_v0 }
0x2207   :  { %16344 = vmatpush3.msra.mxu1 %v18787_v25  ;;  %16345 = vmatprep.mubr.msk.f32.mxu1 %vm17527_vm0, %v17526_v0 }
0x2208   :  { %16353 = vmatprep.subr.mxu1 %v17526_v0 }
0x220a   :  { %16346 = vmatmul.mubr.f32.vlgmr.msra.gmra.mrb[78].mxu1 %v17526_v0 }
0x220b   :  { %16354 = vmatpush3.msra.mxu1 %v18856_v41  ;;  %16355 = vmatprep.mubr.msk.f32.mxu1 %vm17527_vm0, %v17526_v0 }
0x220c   :  { %16363 = vmatprep.subr.mxu1 %v17526_v0 }
0x22d1   :  { %v10283_v1 = vpop.f32.mrb[72].mxu1 }
0x22d2   :  { %v16317_v8 = vpop.f32.mrb[73].mxu1  ;;  %v18881_v31 = vadd.f32 %v14588_v14, %v10283_v1 }
0x22d4   :  { %v10288_v29 = vrot.slane %v18881_v31, 7 }
0x22d5   :  { %v10478_v9 = vpop.f32.mrb[74].mxu1 }
0x22d6   :  { %v10479_v54 = vadd.f32 %v10478_v9, %v10402_v28  ;;  %v16327_v30 = vpop.f32.mrb[75].mxu1  ;;  %v10290_v45 = vsel %vm984_vm3, %v18885_v23, %v10288_v29  ;;  %v10292_v28 = vrot.slane %v18885_v23, 1 }
0x22d8   :  { %v10553_v47 = vadd.f32 %v10552_v35, %v10479_v54  ;;  %v10294_v35 = vsel %vm984_vm3, %v10292_v28, %v18881_v31 }
0x22d9   :  { %v10626_v43 = vpop.f32.mrb[76].mxu1 }
0x22da   :  { %v10627_v26 = vadd.f32 %v10626_v43, %v10553_v47  ;;  %v16337_v48 = vpop.f32.mrb[77].mxu1 }
0x22dc   :  { %v10701_v10 = vadd.f32 %v10700_v56, %v10627_v26 }
0x22dd   :  { %v10772_v4 = vpop.f32.mrb[78].mxu1 }
0x22de   :  { %v10773_v5 = vadd.f32 %v10772_v4, %v10701_v10  ;;  %v16347_v6 = vpop.f32.mrb[79].mxu1 }
0x22e0   :  { %v10776_v11 = vadd.f32 %v10773_v5, %v10290_v45 }
0x22e2   :  { %17441 = vtanh.f32 %v10776_v11 }
0x22ec   :  { %v17442_v51 = vpop.eup %17441 }
0x22ed   :  { %10782 = vrot.lane.b32.xlu1 %v17442_v51, %s17532_s22  ;;  %v10778_v21 = vmul.f32 0.5, %v17442_v51 }
0x22ef   :  { %v10779_v37 = vadd.f32 0.5, %v10778_v21 }
0x22f1   :  { %v10780_v50 = vmul.f32 0.0, %v10779_v37 }
0x235f   :  { %v10783_v40 = vpop.permute.xlu1 %10782 }
0x2360   :  { %v10785_v44 = vmul.f32 %v10783_v40, %v10779_v37 }
0x2362   :  { %10787 = vrot.lane.b32.xlu1 %v10785_v44, %s17533_s23 }
0x23d4   :  { %v10788_v46 = vpop.permute.xlu1 %10787 }
0x23d5   :  { %v18891_v58 = vadd.f32 %v10788_v46, %v10780_v50 }
0x23d7   :  { %17443 = vtanh.f32 %v18891_v58 }
0x23e1   :  { %v17444_v59 = vpop.eup %17443 }
0x23e2   :  { %10793 = vrot.lane.b32.xlu1 %v17444_v59, %s17533_s23 }
0x2454   :  { %v10794_v62 = vpop.permute.xlu1 %10793 }
0x2455   :  { %v10796_v36 = vmul.f32 %v10794_v62, %v10779_v37 }
0x2457   :  { %10798 = vrot.lane.b32.xlu1 %v10796_v36, %s17534_s24 }
0x24c9   :  { %v10799_v33 = vpop.permute.xlu1 %10798 }
0x24ca   :  { %v10800_v42 = vsel %vm76_vm2, %v10799_v33, 0 }
0x24cb   :  { %v10868_v13 = vand.u32 4294901760, %v10800_v42 }
0x24cd   :  { %v10869_v53 = vsub.f32 %v10800_v42, %v10868_v13  ;;  %16356 = vmatmul.mubr.f32.vlgmr.msra.gmra.mrb[80].mxu1 %v10868_v13  ;;  %v10297_v42 = vrot.slane %v18881_v31, 1 }
0x24ce   :  { %16364 = vmatpush3.msra.mxu1 %v18787_v25  ;;  %16365 = vmatprep.mubr.msk.f32.mxu1 %vm17527_vm0, %v17526_v0 }
0x24cf   :  { %v10870_v38 = vand.u32 4294901760, %v10869_v53  ;;  %16373 = vmatprep.subr.mxu1 %v17526_v0 }
0x24d1   :  { %v10871_v39 = vsub.f32 %v10869_v53, %v10870_v38  ;;  %16366 = vmatmul.mubr.f32.vlgmr.msra.gmra.mrb[82].mxu1 %v10870_v38 }
0x24d2   :  { %16374 = vmatpush3.msra.mxu1 %v18787_v25  ;;  %16375 = vmatprep.mubr.msk.f32.mxu1 %vm17527_vm0, %v17526_v0 }
0x24d3   :  { %v10872_v60 = vand.u32 4294901760, %v10871_v39  ;;  %16383 = vmatprep.subr.mxu1 %v17526_v0  ;;  %v10295_v39 = vrot.slane %v18885_v23, 2 }
0x24d5   :  { %16351 = vmatmul.mubr.f32.vlgmr.msra.gmra.mrb[74].mxu0 %v10872_v60  ;;  %16376 = vmatmul.mubr.f32.vlgmr.msra.gmra.mrb[84].mxu1 %v10868_v13 }
0x24d6   :  { %16359 = vmatpush3.msra.mxu0 %v18795_v20  ;;  %16360 = vmatprep.mubr.msk.f32.mxu0 %vm17527_vm0, %v17526_v0 }
0x24d7   :  { %16368 = vmatprep.subr.mxu0 %v17526_v0  ;;  %16384 = vmatpush3.msra.mxu1 %v18856_v41 }
0x24d8   :  { %16385 = vmatprep.mubr.msk.f32.mxu1 %vm17527_vm0, %v17526_v0  ;;  %16393 = vmatprep.subr.mxu1 %v17526_v0 }
0x24d9   :  { %16361 = vmatmul.mubr.f32.vlgmr.msra.gmra.mrb[76].mxu0 %v10869_v53 }
0x24da   :  { %16369 = vmatpush3.msra.mxu0 %v18815_v49  ;;  %16370 = vmatprep.mubr.msk.f32.mxu0 %vm17527_vm0, %v17526_v0 }
0x24db   :  { %16378 = vmatprep.subr.mxu0 %v17526_v0 }
0x24dd   :  { %16371 = vmatmul.mubr.f32.vlgmr.msra.gmra.mrb[78].mxu0 %v10868_v13 }
0x24de   :  { %16379 = vmatpush3.msra.mxu0 %v18787_v25  ;;  %16380 = vmatprep.mubr.msk.f32.mxu0 %vm17527_vm0, %v17526_v0 }
0x24df   :  { %16388 = vmatprep.subr.mxu0 %v17526_v0 }
0x25a0   :  { %v10950_v16 = vpop.f32.mrb[80].mxu1 }
0x25a1   :  { %v16357_v17 = vpop.f32.mrb[81].mxu1 }
0x25a4   :  { %v11098_v18 = vpop.f32.mrb[82].mxu1 }
0x25a5   :  { %v16367_v27 = vpop.f32.mrb[83].mxu1 }
0x25a8   :  { %v10874_v19 = vpop.f32.mrb[74].mxu0  ;;  %v11244_v3 = vpop.f32.mrb[84].mxu1 }
0x25a9   :  { %v10951_v22 = vadd.f32 %v10950_v16, %v10874_v19  ;;  %v16352_v61 = vpop.f32.mrb[75].mxu0  ;;  %v16377_v55 = vpop.f32.mrb[85].mxu1  ;;  %v10299_v16 = vsel %vm984_vm3, %v10295_v39, %v10297_v42 }
0x25ac   :  { %v11024_v2 = vpop.f32.mrb[76].mxu0 }
0x25ad   :  { %v11025_v32 = vadd.f32 %v11024_v2, %v10951_v22  ;;  %v16362_v63 = vpop.f32.mrb[77].mxu0 }
0x25af   :  { %v11099_v15 = vadd.f32 %v11098_v18, %v11025_v32 }
0x25b0   :  { %v11172_v52 = vpop.f32.mrb[78].mxu0 }
0x25b1   :  { %v11173_v34 = vadd.f32 %v11172_v52, %v11099_v15  ;;  %v16372_v7 = vpop.f32.mrb[79].mxu0 }
0x25b3   :  { %v11245_v24 = vadd.f32 %v11244_v3, %v11173_v34 }
0x25b5   :  { %v11248_v12 = vadd.f32 %v11245_v24, %v10294_v35 }
0x25b7   :  { %17445 = vtanh.f32 %v11248_v12 }
0x25c1   :  { %v17446_v56 = vpop.eup %17445 }
0x25c2   :  { %11254 = vrot.lane.b32.xlu0 %v17446_v56, %s17532_s22  ;;  %v11250_v57 = vmul.f32 0.5, %v17446_v56 }
0x25c4   :  { %v11251_v1 = vadd.f32 0.5, %v11250_v57 }
0x25c6   :  { %v11252_v14 = vmul.f32 %v11251_v1, %v18891_v58 }
0x2634   :  { %v11255_v8 = vpop.permute.xlu0 %11254 }
0x2635   :  { %v11257_v9 = vmul.f32 %v11255_v8, %v11251_v1 }
0x2637   :  { %11259 = vrot.lane.b32.xlu1 %v11257_v9, %s17533_s23 }
0x26a9   :  { %v11260_v54 = vpop.permute.xlu1 %11259 }
0x26aa   :  { %v18927_v30 = vadd.f32 %v11260_v54, %v11252_v14 }
0x26ac   :  { %17447 = vtanh.f32 %v18927_v30 }
0x26b6   :  { %v17448_v47 = vpop.eup %17447 }
0x26b7   :  { %11265 = vrot.lane.b32.xlu0 %v17448_v47, %s17533_s23 }
0x2729   :  { %v11266_v43 = vpop.permute.xlu0 %11265 }
0x272a   :  { %v11268_v26 = vmul.f32 %v11266_v43, %v11251_v1 }
0x272c   :  { %11270 = vrot.lane.b32.xlu1 %v11268_v26, %s17534_s24 }
0x279e   :  { %v11271_v48 = vpop.permute.xlu1 %11270 }
0x279f   :  { %v11272_v29 = vsel %vm76_vm2, %v11271_v48, 0 }
0x27a0   :  { %v11340_v10 = vand.u32 4294901760, %v11272_v29 }
0x27a2   :  { %v11341_v4 = vsub.f32 %v11272_v29, %v11340_v10  ;;  %16386 = vmatmul.mubr.f32.vlgmr.msra.gmra.mrb[86].mxu1 %v11340_v10 }
0x27a3   :  { %16394 = vmatpush3.msra.mxu1 %v18787_v25  ;;  %16395 = vmatprep.mubr.msk.f32.mxu1 %vm17527_vm0, %v17526_v0 }
0x27a4   :  { %v11342_v5 = vand.u32 4294901760, %v11341_v4  ;;  %16403 = vmatprep.subr.mxu1 %v17526_v0 }
0x27a6   :  { %v11343_v6 = vsub.f32 %v11341_v4, %v11342_v5  ;;  %16396 = vmatmul.mubr.f32.vlgmr.msra.gmra.mrb[88].mxu1 %v11342_v5 }
0x27a7   :  { %16404 = vmatpush3.msra.mxu1 %v18787_v25  ;;  %16405 = vmatprep.mubr.msk.f32.mxu1 %vm17527_vm0, %v17526_v0 }
0x27a8   :  { %v11344_v45 = vand.u32 4294901760, %v11343_v6  ;;  %16413 = vmatprep.subr.mxu1 %v17526_v0 }
0x27aa   :  { %16381 = vmatmul.mubr.f32.vlgmr.msra.gmra.mrb[80].mxu0 %v11344_v45  ;;  %16406 = vmatmul.mubr.f32.vlgmr.msra.gmra.mrb[90].mxu1 %v11340_v10  ;;  %v10300_v45 = vrot.slane %v18885_v23, 3 }
0x27ab   :  { %16389 = vmatpush3.msra.mxu0 %v18795_v20  ;;  %16390 = vmatprep.mubr.msk.f32.mxu0 %vm17527_vm0, %v17526_v0 }
0x27ac   :  { %16398 = vmatprep.subr.mxu0 %v17526_v0  ;;  %16414 = vmatpush3.msra.mxu1 %v18856_v41 }
0x27ad   :  { %16415 = vmatprep.mubr.msk.f32.mxu1 %vm17527_vm0, %v17526_v0  ;;  %16423 = vmatprep.subr.mxu1 %v17526_v0 }
0x27ae   :  { %16391 = vmatmul.mubr.f32.vlgmr.msra.gmra.mrb[82].mxu0 %v11341_v4 }
0x27af   :  { %16399 = vmatpush3.msra.mxu0 %v18815_v49  ;;  %16400 = vmatprep.mubr.msk.f32.mxu0 %vm17527_vm0, %v17526_v0 }
0x27b0   :  { %16408 = vmatprep.subr.mxu0 %v17526_v0 }
0x27b2   :  { %16401 = vmatmul.mubr.f32.vlgmr.msra.gmra.mrb[84].mxu0 %v11340_v10  ;;  %v10302_v10 = vrot.slane %v18881_v31, 2 }
0x27b3   :  { %16409 = vmatpush3.msra.mxu0 %v18787_v25  ;;  %16410 = vmatprep.mubr.msk.f32.mxu0 %vm17527_vm0, %v17526_v0 }
0x27b4   :  { %16418 = vmatprep.subr.mxu0 %v17526_v0 }
0x2875   :  { %v11422_v11 = vpop.f32.mrb[86].mxu1 }
0x2876   :  { %v16387_v51 = vpop.f32.mrb[87].mxu1 }
0x2877   :  { %v10304_v51 = vsel %vm984_vm3, %v10300_v45, %v10302_v10 }
0x2879   :  { %v11570_v21 = vpop.f32.mrb[88].mxu1 }
0x287a   :  { %v16397_v37 = vpop.f32.mrb[89].mxu1 }
0x287d   :  { %v11346_v40 = vpop.f32.mrb[80].mxu0  ;;  %v11716_v44 = vpop.f32.mrb[90].mxu1 }
0x287e   :  { %v11423_v50 = vadd.f32 %v11422_v11, %v11346_v40  ;;  %v16382_v46 = vpop.f32.mrb[81].mxu0  ;;  %v16407_v58 = vpop.f32.mrb[91].mxu1 }
0x2881   :  { %v11496_v59 = vpop.f32.mrb[82].mxu0 }
0x2882   :  { %v11497_v62 = vadd.f32 %v11496_v59, %v11423_v50  ;;  %v16392_v36 = vpop.f32.mrb[83].mxu0 }
0x2884   :  { %v11571_v33 = vadd.f32 %v11570_v21, %v11497_v62 }
0x2885   :  { %v11644_v13 = vpop.f32.mrb[84].mxu0 }
0x2886   :  { %v11645_v53 = vadd.f32 %v11644_v13, %v11571_v33  ;;  %v16402_v38 = vpop.f32.mrb[85].mxu0 }
0x2888   :  { %v11717_v60 = vadd.f32 %v11716_v44, %v11645_v53 }
0x288a   :  { %v11720_v17 = vadd.f32 %v11717_v60, %v10299_v16 }
0x288c   :  { %17449 = vtanh.f32 %v11720_v17 }
0x2896   :  { %v17450_v18 = vpop.eup %17449 }
0x2897   :  { %11726 = vrot.lane.b32.xlu0 %v17450_v18, %s17532_s22  ;;  %v11722_v27 = vmul.f32 0.5, %v17450_v18 }
0x2899   :  { %v11723_v19 = vadd.f32 0.5, %v11722_v27 }
0x289b   :  { %v11724_v61 = vmul.f32 %v11723_v19, %v18927_v30 }
0x2909   :  { %v11727_v3 = vpop.permute.xlu0 %11726 }
0x290a   :  { %v11729_v22 = vmul.f32 %v11727_v3, %v11723_v19 }
0x290c   :  { %11731 = vrot.lane.b32.xlu1 %v11729_v22, %s17533_s23 }
0x297e   :  { %v11732_v55 = vpop.permute.xlu1 %11731 }
0x297f   :  { %v18963_v2 = vadd.f32 %v11732_v55, %v11724_v61 }
0x2981   :  { %17451 = vtanh.f32 %v18963_v2 }
0x298b   :  { %v17452_v32 = vpop.eup %17451 }
0x298c   :  { %11737 = vrot.lane.b32.xlu0 %v17452_v32, %s17533_s23 }
0x29fe   :  { %v11738_v63 = vpop.permute.xlu0 %11737 }
0x29ff   :  { %v11740_v15 = vmul.f32 %v11738_v63, %v11723_v19 }
0x2a01   :  { %11742 = vrot.lane.b32.xlu1 %v11740_v15, %s17534_s24 }
0x2a73   :  { %v11743_v52 = vpop.permute.xlu1 %11742 }
0x2a74   :  { %v11744_v34 = vsel %vm76_vm2, %v11743_v52, 0 }
0x2a75   :  { %v11812_v7 = vand.u32 4294901760, %v11744_v34 }
0x2a77   :  { %v11813_v28 = vsub.f32 %v11744_v34, %v11812_v7  ;;  %16416 = vmatmul.mubr.f32.vlgmr.msra.gmra.mrb[92].mxu1 %v11812_v7 }
0x2a78   :  { %16424 = vmatpush3.msra.mxu1 %v18787_v25  ;;  %16425 = vmatprep.mubr.msk.f32.mxu1 %vm17527_vm0, %v17526_v0 }
0x2a79   :  { %v11814_v24 = vand.u32 4294901760, %v11813_v28  ;;  %16433 = vmatprep.subr.mxu1 %v17526_v0 }
0x2a7b   :  { %v11815_v35 = vsub.f32 %v11813_v28, %v11814_v24  ;;  %16426 = vmatmul.mubr.f32.vlgmr.msra.gmra.mrb[94].mxu1 %v11814_v24 }
0x2a7c   :  { %16434 = vmatpush3.msra.mxu1 %v18787_v25  ;;  %16435 = vmatprep.mubr.msk.f32.mxu1 %vm17527_vm0, %v17526_v0 }
0x2a7d   :  { %v11816_v12 = vand.u32 4294901760, %v11815_v35  ;;  %16443 = vmatprep.subr.mxu1 %v17526_v0 }
0x2a7f   :  { %16411 = vmatmul.mubr.f32.vlgmr.msra.gmra.mrb[86].mxu0 %v11816_v12  ;;  %16436 = vmatmul.mubr.f32.vlgmr.msra.gmra.mrb[96].mxu1 %v11812_v7  ;;  %v10305_v12 = vrot.slane %v18885_v23, 4 }
0x2a80   :  { %16419 = vmatpush3.msra.mxu0 %v18795_v20  ;;  %16420 = vmatprep.mubr.msk.f32.mxu0 %vm17527_vm0, %v17526_v0 }
0x2a81   :  { %16428 = vmatprep.subr.mxu0 %v17526_v0  ;;  %16444 = vmatpush3.msra.mxu1 %v18856_v41 }
0x2a82   :  { %16445 = vmatprep.mubr.msk.f32.mxu1 %vm17527_vm0, %v17526_v0  ;;  %16453 = vmatprep.subr.mxu1 %v17526_v0 }
0x2a83   :  { %16421 = vmatmul.mubr.f32.vlgmr.msra.gmra.mrb[88].mxu0 %v11813_v28 }
0x2a84   :  { %16429 = vmatpush3.msra.mxu0 %v18815_v49  ;;  %16430 = vmatprep.mubr.msk.f32.mxu0 %vm17527_vm0, %v17526_v0 }
0x2a85   :  { %16438 = vmatprep.subr.mxu0 %v17526_v0 }
0x2a87   :  { %16431 = vmatmul.mubr.f32.vlgmr.msra.gmra.mrb[90].mxu0 %v11812_v7  ;;  %v10307_v7 = vrot.slane %v18881_v31, 3 }
0x2a88   :  { %16439 = vmatpush3.msra.mxu0 %v18787_v25  ;;  %16440 = vmatprep.mubr.msk.f32.mxu0 %vm17527_vm0, %v17526_v0 }
0x2a89   :  { %16448 = vmatprep.subr.mxu0 %v17526_v0 }
0x2b4a   :  { %v11894_v56 = vpop.f32.mrb[92].mxu1 }
0x2b4b   :  { %v16417_v57 = vpop.f32.mrb[93].mxu1 }
0x2b4c   :  { %v10309_v57 = vsel %vm984_vm3, %v10305_v12, %v10307_v7 }
0x2b4e   :  { %v12042_v1 = vpop.f32.mrb[94].mxu1 }
0x2b4f   :  { %v16427_v8 = vpop.f32.mrb[95].mxu1 }
0x2b52   :  { %v11818_v9 = vpop.f32.mrb[86].mxu0  ;;  %v12188_v14 = vpop.f32.mrb[96].mxu1 }
0x2b53   :  { %v11895_v54 = vadd.f32 %v11894_v56, %v11818_v9  ;;  %v16412_v30 = vpop.f32.mrb[87].mxu0  ;;  %v16437_v47 = vpop.f32.mrb[97].mxu1 }
0x2b56   :  { %v11968_v43 = vpop.f32.mrb[88].mxu0 }
0x2b57   :  { %v11969_v26 = vadd.f32 %v11968_v43, %v11895_v54  ;;  %v16422_v48 = vpop.f32.mrb[89].mxu0 }
0x2b59   :  { %v12043_v29 = vadd.f32 %v12042_v1, %v11969_v26 }
0x2b5a   :  { %v12116_v4 = vpop.f32.mrb[90].mxu0 }
0x2b5b   :  { %v12117_v5 = vadd.f32 %v12116_v4, %v12043_v29  ;;  %v16432_v6 = vpop.f32.mrb[91].mxu0 }
0x2b5d   :  { %v12189_v11 = vadd.f32 %v12188_v14, %v12117_v5 }
0x2b5f   :  { %v12192_v21 = vadd.f32 %v12189_v11, %v10304_v51 }
0x2b61   :  { %17453 = vtanh.f32 %v12192_v21 }
0x2b6b   :  { %v17454_v37 = vpop.eup %17453 }
0x2b6c   :  { %12198 = vrot.lane.b32.xlu0 %v17454_v37, %s17532_s22  ;;  %v12194_v40 = vmul.f32 0.5, %v17454_v37 }
0x2b6e   :  { %v12195_v44 = vadd.f32 0.5, %v12194_v40 }
0x2b70   :  { %v12196_v58 = vmul.f32 %v12195_v44, %v18963_v2 }
0x2bde   :  { %v12199_v50 = vpop.permute.xlu0 %12198 }
0x2bdf   :  { %v12201_v46 = vmul.f32 %v12199_v50, %v12195_v44 }
0x2be1   :  { %12203 = vrot.lane.b32.xlu1 %v12201_v46, %s17533_s23 }
0x2c53   :  { %v12204_v59 = vpop.permute.xlu1 %12203 }
0x2c54   :  { %v18999_v62 = vadd.f32 %v12204_v59, %v12196_v58 }
0x2c56   :  { %17455 = vtanh.f32 %v18999_v62 }
0x2c60   :  { %v17456_v36 = vpop.eup %17455 }
0x2c61   :  { %12209 = vrot.lane.b32.xlu0 %v17456_v36, %s17533_s23 }
0x2cd3   :  { %v12210_v33 = vpop.permute.xlu0 %12209 }
0x2cd4   :  { %v12212_v42 = vmul.f32 %v12210_v33, %v12195_v44 }
0x2cd6   :  { %12214 = vrot.lane.b32.xlu1 %v12212_v42, %s17534_s24 }
0x2d48   :  { %v12215_v13 = vpop.permute.xlu1 %12214 }
0x2d49   :  { %v12216_v53 = vsel %vm76_vm2, %v12215_v13, 0 }
0x2d4a   :  { %v12284_v38 = vand.u32 4294901760, %v12216_v53 }
0x2d4c   :  { %v12285_v39 = vsub.f32 %v12216_v53, %v12284_v38  ;;  %16446 = vmatmul.mubr.f32.vlgmr.msra.gmra.mrb[98].mxu1 %v12284_v38 }
0x2d4d   :  { %16454 = vmatpush3.msra.mxu1 %v18787_v25  ;;  %16455 = vmatprep.mubr.msk.f32.mxu1 %vm17527_vm0, %v17526_v0 }
0x2d4e   :  { %v12286_v60 = vand.u32 4294901760, %v12285_v39  ;;  %16463 = vmatprep.subr.mxu1 %v17526_v0 }
0x2d50   :  { %v12287_v16 = vsub.f32 %v12285_v39, %v12286_v60  ;;  %16456 = vmatmul.mubr.f32.vlgmr.msra.gmra.mrb[100].mxu1 %v12286_v60 }
0x2d51   :  { %16464 = vmatpush3.msra.mxu1 %v18787_v25  ;;  %16465 = vmatprep.mubr.msk.f32.mxu1 %vm17527_vm0, %v17526_v0 }
0x2d52   :  { %v12288_v17 = vand.u32 4294901760, %v12287_v16  ;;  %16473 = vmatprep.subr.mxu1 %v17526_v0 }
0x2d54   :  { %16441 = vmatmul.mubr.f32.vlgmr.msra.gmra.mrb[92].mxu0 %v12288_v17  ;;  %16466 = vmatmul.mubr.f32.vlgmr.msra.gmra.mrb[102].mxu1 %v12284_v38  ;;  %v10310_v17 = vrot.slane %v18885_v23, 5 }
0x2d55   :  { %16449 = vmatpush3.msra.mxu0 %v18795_v20  ;;  %16450 = vmatprep.mubr.msk.f32.mxu0 %vm17527_vm0, %v17526_v0 }
0x2d56   :  { %16458 = vmatprep.subr.mxu0 %v17526_v0  ;;  %16474 = vmatpush3.msra.mxu1 %v18856_v41 }
0x2d57   :  { %16475 = vmatprep.mubr.msk.f32.mxu1 %vm17527_vm0, %v17526_v0  ;;  %16483 = vmatprep.subr.mxu1 %v17526_v0 }
0x2d58   :  { %16451 = vmatmul.mubr.f32.vlgmr.msra.gmra.mrb[94].mxu0 %v12285_v39 }
0x2d59   :  { %16459 = vmatpush3.msra.mxu0 %v18815_v49  ;;  %16460 = vmatprep.mubr.msk.f32.mxu0 %vm17527_vm0, %v17526_v0 }
0x2d5a   :  { %16468 = vmatprep.subr.mxu0 %v17526_v0 }
0x2d5c   :  { %16461 = vmatmul.mubr.f32.vlgmr.msra.gmra.mrb[96].mxu0 %v12284_v38  ;;  %v10312_v38 = vrot.slane %v18881_v31, 4 }
0x2d5d   :  { %16469 = vmatpush3.msra.mxu0 %v18787_v25  ;;  %16470 = vmatprep.mubr.msk.f32.mxu0 %vm17527_vm0, %v17526_v0 }
0x2d5e   :  { %16478 = vmatprep.subr.mxu0 %v17526_v0 }
0x2e1f   :  { %v12366_v18 = vpop.f32.mrb[98].mxu1 }
0x2e20   :  { %v16447_v27 = vpop.f32.mrb[99].mxu1 }
0x2e21   :  { %v10314_v27 = vsel %vm984_vm3, %v10310_v17, %v10312_v38 }
0x2e23   :  { %v12514_v19 = vpop.f32.mrb[100].mxu1 }
0x2e24   :  { %v16457_v3 = vpop.f32.mrb[101].mxu1 }
0x2e27   :  { %v12290_v22 = vpop.f32.mrb[92].mxu0  ;;  %v12660_v61 = vpop.f32.mrb[102].mxu1 }
0x2e28   :  { %v12367_v55 = vadd.f32 %v12366_v18, %v12290_v22  ;;  %v16442_v2 = vpop.f32.mrb[93].mxu0  ;;  %v16467_v32 = vpop.f32.mrb[103].mxu1 }
0x2e2b   :  { %v12440_v63 = vpop.f32.mrb[94].mxu0 }
0x2e2c   :  { %v12441_v15 = vadd.f32 %v12440_v63, %v12367_v55  ;;  %v16452_v52 = vpop.f32.mrb[95].mxu0 }
0x2e2e   :  { %v12515_v34 = vadd.f32 %v12514_v19, %v12441_v15 }
0x2e2f   :  { %v12588_v28 = vpop.f32.mrb[96].mxu0 }
0x2e30   :  { %v12589_v24 = vadd.f32 %v12588_v28, %v12515_v34  ;;  %v16462_v35 = vpop.f32.mrb[97].mxu0 }
0x2e32   :  { %v12661_v56 = vadd.f32 %v12660_v61, %v12589_v24 }
0x2e34   :  { %v12664_v1 = vadd.f32 %v12661_v56, %v10309_v57 }
0x2e36   :  { %17457 = vtanh.f32 %v12664_v1 }
0x2e40   :  { %v17458_v8 = vpop.eup %17457 }
0x2e41   :  { %12670 = vrot.lane.b32.xlu0 %v17458_v8, %s17532_s22  ;;  %v12666_v9 = vmul.f32 0.5, %v17458_v8 }
0x2e43   :  { %v12667_v14 = vadd.f32 0.5, %v12666_v9 }
0x2e45   :  { %v12668_v47 = vmul.f32 %v12667_v14, %v18999_v62 }
0x2eb3   :  { %v12671_v54 = vpop.permute.xlu0 %12670 }
0x2eb4   :  { %v12673_v30 = vmul.f32 %v12671_v54, %v12667_v14 }
0x2eb6   :  { %12675 = vrot.lane.b32.xlu1 %v12673_v30, %s17533_s23 }
0x2f28   :  { %v12676_v43 = vpop.permute.xlu1 %12675 }
0x2f29   :  { %v19035_v26 = vadd.f32 %v12676_v43, %v12668_v47 }
0x2f2b   :  { %17459 = vtanh.f32 %v19035_v26 }
0x2f35   :  { %v17460_v48 = vpop.eup %17459 }
0x2f36   :  { %12681 = vrot.lane.b32.xlu0 %v17460_v48, %s17533_s23 }
0x2fa8   :  { %v12682_v29 = vpop.permute.xlu0 %12681 }
0x2fa9   :  { %v12684_v10 = vmul.f32 %v12682_v29, %v12667_v14 }
0x2fab   :  { %12686 = vrot.lane.b32.xlu1 %v12684_v10, %s17534_s24 }
0x301d   :  { %v12687_v4 = vpop.permute.xlu1 %12686 }
0x301e   :  { %v12688_v5 = vsel %vm76_vm2, %v12687_v4, 0 }
0x301f   :  { %v12756_v6 = vand.u32 4294901760, %v12688_v5 }
0x3021   :  { %v12757_v45 = vsub.f32 %v12688_v5, %v12756_v6  ;;  %16476 = vmatmul.mubr.f32.vlgmr.msra.gmra.mrb[104].mxu1 %v12756_v6  ;;  %v10317_v5 = vrot.slane %v18881_v31, 5 }
0x3022   :  { %16484 = vmatpush3.msra.mxu1 %v18787_v25  ;;  %16485 = vmatprep.mubr.msk.f32.mxu1 %vm17527_vm0, %v17526_v0 }
0x3023   :  { %v12758_v11 = vand.u32 4294901760, %v12757_v45  ;;  %16493 = vmatprep.subr.mxu1 %v17526_v0 }
0x3025   :  { %v12759_v51 = vsub.f32 %v12757_v45, %v12758_v11  ;;  %16486 = vmatmul.mubr.f32.vlgmr.msra.gmra.mrb[106].mxu1 %v12758_v11 }
0x3026   :  { %16494 = vmatpush3.msra.mxu1 %v18787_v25  ;;  %16495 = vmatprep.mubr.msk.f32.mxu1 %vm17527_vm0, %v17526_v0 }
0x3027   :  { %v12760_v21 = vand.u32 4294901760, %v12759_v51  ;;  %16503 = vmatprep.subr.mxu1 %v17526_v0  ;;  %v10315_v51 = vrot.slane %v18885_v23, 6 }
0x3029   :  { %16471 = vmatmul.mubr.f32.vlgmr.msra.gmra.mrb[98].mxu0 %v12760_v21  ;;  %16496 = vmatmul.mubr.f32.vlgmr.msra.gmra.mrb[108].mxu1 %v12756_v6 }
0x302a   :  { %16479 = vmatpush3.msra.mxu0 %v18795_v20  ;;  %16480 = vmatprep.mubr.msk.f32.mxu0 %vm17527_vm0, %v17526_v0 }
0x302b   :  { %16488 = vmatprep.subr.mxu0 %v17526_v0  ;;  %16504 = vmatpush3.msra.mxu1 %v18856_v41 }
0x302c   :  { %16505 = vmatprep.mubr.msk.f32.mxu1 %vm17527_vm0, %v17526_v0  ;;  %16513 = vmatprep.subr.mxu1 %v17526_v0 }
0x302d   :  { %16481 = vmatmul.mubr.f32.vlgmr.msra.gmra.mrb[100].mxu0 %v12757_v45 }
0x302e   :  { %16489 = vmatpush3.msra.mxu0 %v18815_v49  ;;  %16490 = vmatprep.mubr.msk.f32.mxu0 %vm17527_vm0, %v17526_v0 }
0x302f   :  { %16498 = vmatprep.subr.mxu0 %v17526_v0 }
0x3031   :  { %16491 = vmatmul.mubr.f32.vlgmr.msra.gmra.mrb[102].mxu0 %v12756_v6 }
0x3032   :  { %16499 = vmatpush3.msra.mxu0 %v18787_v25  ;;  %16500 = vmatprep.mubr.msk.f32.mxu0 %vm17527_vm0, %v17526_v0 }
0x3033   :  { %16508 = vmatprep.subr.mxu0 %v17526_v0 }
0x30f4   :  { %v12838_v37 = vpop.f32.mrb[104].mxu1 }
0x30f5   :  { %v16477_v40 = vpop.f32.mrb[105].mxu1 }
0x30f8   :  { %v12986_v44 = vpop.f32.mrb[106].mxu1 }
0x30f9   :  { %v16487_v50 = vpop.f32.mrb[107].mxu1 }
0x30fc   :  { %v12762_v46 = vpop.f32.mrb[98].mxu0  ;;  %v13132_v58 = vpop.f32.mrb[108].mxu1 }
0x30fd   :  { %v12839_v59 = vadd.f32 %v12838_v37, %v12762_v46  ;;  %v16472_v62 = vpop.f32.mrb[99].mxu0  ;;  %v16497_v36 = vpop.f32.mrb[109].mxu1  ;;  %v10319_v37 = vsel %vm984_vm3, %v10315_v51, %v10317_v5 }
0x3100   :  { %v12912_v33 = vpop.f32.mrb[100].mxu0 }
0x3101   :  { %v12913_v42 = vadd.f32 %v12912_v33, %v12839_v59  ;;  %v16482_v13 = vpop.f32.mrb[101].mxu0 }
0x3103   :  { %v12987_v53 = vadd.f32 %v12986_v44, %v12913_v42 }
0x3104   :  { %v13060_v39 = vpop.f32.mrb[102].mxu0 }
0x3105   :  { %v13061_v60 = vadd.f32 %v13060_v39, %v12987_v53  ;;  %v16492_v16 = vpop.f32.mrb[103].mxu0 }
0x3107   :  { %v13133_v18 = vadd.f32 %v13132_v58, %v13061_v60 }
0x3109   :  { %v13136_v19 = vadd.f32 %v13133_v18, %v10314_v27 }
0x310b   :  { %17461 = vtanh.f32 %v13136_v19 }
0x3115   :  { %v17462_v3 = vpop.eup %17461 }
0x3116   :  { %13142 = vrot.lane.b32.xlu0 %v17462_v3, %s17532_s22  ;;  %v13138_v22 = vmul.f32 0.5, %v17462_v3 }
0x3118   :  { %v13139_v61 = vadd.f32 0.5, %v13138_v22 }
0x311a   :  { %v13140_v32 = vmul.f32 %v13139_v61, %v19035_v26 }
0x3188   :  { %v13143_v55 = vpop.permute.xlu0 %13142 }
0x3189   :  { %v13145_v2 = vmul.f32 %v13143_v55, %v13139_v61 }
0x318b   :  { %13147 = vrot.lane.b32.xlu1 %v13145_v2, %s17533_s23 }
0x31fd   :  { %v13148_v63 = vpop.permute.xlu1 %13147 }
0x31fe   :  { %v19071_v15 = vadd.f32 %v13148_v63, %v13140_v32 }
0x3200   :  { %17463 = vtanh.f32 %v19071_v15 }
0x320a   :  { %v17464_v52 = vpop.eup %17463 }
0x320b   :  { %13153 = vrot.lane.b32.xlu0 %v17464_v52, %s17533_s23 }
0x327d   :  { %v13154_v34 = vpop.permute.xlu0 %13153 }
0x327e   :  { %v13156_v7 = vmul.f32 %v13154_v34, %v13139_v61  ;;  %v10322_v34 = vrot.slane %v18881_v31, 6 }
0x3280   :  { %13158 = vrot.lane.b32.xlu1 %v13156_v7, %s17534_s24 }
0x32f2   :  { %v13159_v28 = vpop.permute.xlu1 %13158 }
0x32f3   :  { %v13160_v24 = vsel %vm76_vm2, %v13159_v28, 0 }
0x32f4   :  { %v13228_v35 = vand.u32 4294901760, %v13160_v24 }
0x32f6   :  { %v13229_v12 = vsub.f32 %v13160_v24, %v13228_v35  ;;  %16506 = vmatmul.mubr.f32.vlgmr.msra.gmra.mrb[110].mxu1 %v13228_v35 }
0x32f7   :  { %16514 = vmatpush3.msra.mxu1 %v18787_v25  ;;  %16515 = vmatprep.mubr.msk.f32.mxu1 %vm17527_vm0, %v17526_v0 }
0x32f8   :  { %v13230_v56 = vand.u32 4294901760, %v13229_v12  ;;  %16523 = vmatprep.subr.mxu1 %v17526_v0 }
0x32fa   :  { %v13231_v57 = vsub.f32 %v13229_v12, %v13230_v56  ;;  %16516 = vmatmul.mubr.f32.vlgmr.msra.gmra.mrb[112].mxu1 %v13230_v56 }
0x32fb   :  { %16524 = vmatpush3.msra.mxu1 %v18787_v25  ;;  %16525 = vmatprep.mubr.msk.f32.mxu1 %vm17527_vm0, %v17526_v0 }
0x32fc   :  { %v13232_v1 = vand.u32 4294901760, %v13231_v57  ;;  %16533 = vmatprep.subr.mxu1 %v17526_v0 }
0x32fe   :  { %16501 = vmatmul.mubr.f32.vlgmr.msra.gmra.mrb[104].mxu0 %v13232_v1  ;;  %16526 = vmatmul.mubr.f32.vlgmr.msra.gmra.mrb[114].mxu1 %v13228_v35 }
0x32ff   :  { %16509 = vmatpush3.msra.mxu0 %v18795_v20  ;;  %16510 = vmatprep.mubr.msk.f32.mxu0 %vm17527_vm0, %v17526_v0 }
0x3300   :  { %16518 = vmatprep.subr.mxu0 %v17526_v0  ;;  %16534 = vmatpush3.msra.mxu1 %v18856_v41 }
0x3301   :  { %16535 = vmatprep.mubr.msk.f32.mxu1 %vm17527_vm0, %v17526_v0  ;;  %16543 = vmatprep.subr.mxu1 %v17526_v0 }
0x3302   :  { %16511 = vmatmul.mubr.f32.vlgmr.msra.gmra.mrb[106].mxu0 %v13229_v12 }
0x3303   :  { %16519 = vmatpush3.msra.mxu0 %v18815_v49  ;;  %16520 = vmatprep.mubr.msk.f32.mxu0 %vm17527_vm0, %v17526_v0 }
0x3304   :  { %16528 = vmatprep.subr.mxu0 %v17526_v0 }
0x3306   :  { %16521 = vmatmul.mubr.f32.vlgmr.msra.gmra.mrb[108].mxu0 %v13228_v35  ;;  %v10320_v35 = vrot.slane %v18885_v23, 7  ;;  %v68_v23 = vld [vmem:[%s19172_s3 + $0x10] sm:$0x3f] }
0x3307   :  { %16529 = vmatpush3.msra.mxu0 %v18787_v25  ;;  %16530 = vmatprep.mubr.msk.f32.mxu0 %vm17527_vm0, %v17526_v0 }
0x3308   :  { %16538 = vmatprep.subr.mxu0 %v17526_v0  ;;  %v10324_v56 = vsel %vm984_vm3, %v10320_v35, %v10322_v34 }
0x33c9   :  { %v13310_v41 = vpop.f32.mrb[110].mxu1 }
0x33ca   :  { %v16507_v8 = vpop.f32.mrb[111].mxu1 }
0x33cd   :  { %v13458_v9 = vpop.f32.mrb[112].mxu1 }
0x33ce   :  { %v16517_v14 = vpop.f32.mrb[113].mxu1 }
0x33d1   :  { %v13234_v54 = vpop.f32.mrb[104].mxu0  ;;  %v13604_v30 = vpop.f32.mrb[114].mxu1 }
0x33d2   :  { %v13311_v47 = vadd.f32 %v13310_v41, %v13234_v54  ;;  %v16502_v43 = vpop.f32.mrb[105].mxu0  ;;  %v16527_v26 = vpop.f32.mrb[115].mxu1 }
0x33d3   :  { %v14114_v26 = vsel %vm80_vm1, %v68_v23, 0 }
0x33d5   :  { %v13384_v48 = vpop.f32.mrb[106].mxu0 }
0x33d6   :  { %v13385_v29 = vadd.f32 %v13384_v48, %v13311_v47  ;;  %v16512_v10 = vpop.f32.mrb[107].mxu0 }
0x33d8   :  { %v13459_v4 = vadd.f32 %v13458_v9, %v13385_v29  ;;  %v14117_v29 = vand.u32 4294901760, %v14114_v26 }
0x33d9   :  { %v13532_v6 = vpop.f32.mrb[108].mxu0 }
0x33da   :  { %v13533_v45 = vadd.f32 %v13532_v6, %v13459_v4  ;;  %v16522_v11 = vpop.f32.mrb[109].mxu0  ;;  %v14194_v4 = vsub.f32 %v14114_v26, %v14117_v29 }
0x33dc   :  { %v13605_v21 = vadd.f32 %v13604_v30, %v13533_v45  ;;  %v14195_v45 = vand.u32 4294901760, %v14194_v4 }
0x33de   :  { %v13608_v40 = vadd.f32 %v13605_v21, %v10319_v37  ;;  %v14196_v21 = vsub.f32 %v14194_v4, %v14195_v45 }
0x33e0   :  { %17465 = vtanh.f32 %v13608_v40 }
0x33ea   :  { %v17466_v44 = vpop.eup %17465 }
0x33eb   :  { %13614 = vrot.lane.b32.xlu0 %v17466_v44, %s17532_s22  ;;  %v13610_v50 = vmul.f32 0.5, %v17466_v44  ;;  %v14197_v44 = vand.u32 4294901760, %v14196_v21 }
0x33ed   :  { %v13611_v46 = vadd.f32 0.5, %v13610_v50 }
0x33ef   :  { %v13612_v62 = vmul.f32 %v13611_v46, %v19071_v15 }
0x345d   :  { %v13615_v58 = vpop.permute.xlu0 %13614 }
0x345e   :  { %v13617_v59 = vmul.f32 %v13615_v58, %v13611_v46 }
0x3460   :  { %13619 = vrot.lane.b32.xlu1 %v13617_v59, %s17533_s23 }
0x34d2   :  { %v13620_v36 = vpop.permute.xlu1 %13619 }
0x34d3   :  { %v13622_v33 = vadd.f32 %v13620_v36, %v13612_v62 }
0x34d5   :  { %17467 = vtanh.f32 %v13622_v33 }
0x34df   :  { %v17468_v42 = vpop.eup %17467 }
0x34e0   :  { %13625 = vrot.lane.b32.xlu0 %v17468_v42, %s17533_s23 }
0x3552   :  { %v13626_v13 = vpop.permute.xlu0 %13625 }
0x3553   :  { %v13628_v53 = vmul.f32 %v13626_v13, %v13611_v46  ;;  %v14589_v46 = vld [vmem:[%s19171_s2 + $0x5] ss:$0 sm:$0xff] }
0x3555   :  { %13630 = vrot.lane.b32.xlu1 %v13628_v53, %s17534_s24 }
0x35c7   :  { %v13631_v38 = vpop.permute.xlu1 %13630 }
0x35c8   :  { %v13632_v39 = vsel %vm76_vm2, %v13631_v38, 0 }
0x35c9   :  { %v13700_v60 = vand.u32 4294901760, %v13632_v39 }
0x35cb   :  { %v13701_v16 = vsub.f32 %v13632_v39, %v13700_v60  ;;  %16536 = vmatmul.mubr.f32.vlgmr.msra.gmra.mrb[116].mxu1 %v13700_v60 }
0x35cc   :  { %16544 = vmatpush3.msra.mxu1 %v18787_v25  ;;  %16545 = vmatprep.mubr.msk.f32.mxu1 %vm17527_vm0, %v17526_v0 }
0x35cd   :  { %v13702_v17 = vand.u32 4294901760, %v13701_v16  ;;  %16553 = vmatprep.subr.mxu1 %v17526_v0 }
0x35cf   :  { %v13703_v18 = vsub.f32 %v13701_v16, %v13702_v17  ;;  %16546 = vmatmul.mubr.f32.vlgmr.msra.gmra.mrb[118].mxu1 %v13702_v17 }
0x35d0   :  { %16554 = vmatpush3.msra.mxu1 %v18787_v25  ;;  %16555 = vmatprep.mubr.msk.f32.mxu1 %vm17527_vm0, %v17526_v0 }
0x35d1   :  { %v13704_v27 = vand.u32 4294901760, %v13703_v18 }
0x35d3   :  { %16531 = vmatmul.mubr.f32.vlgmr.msra.gmra.mrb[110].mxu0 %v13704_v27  ;;  %16556 = vmatmul.mubr.f32.vlgmr.msra.gmra.mrb[120].mxu1 %v13700_v60 }
0x35d4   :  { %16539 = vmatpush3.msra.mxu0 %v18795_v20  ;;  %16540 = vmatprep.mubr.msk.f32.mxu0 %vm17527_vm0, %v17526_v0 }
0x35d5   :  { %16548 = vmatprep.subr.mxu0 %v17526_v0 }
0x35d7   :  { %16541 = vmatmul.mubr.f32.vlgmr.msra.gmra.mrb[112].mxu0 %v13701_v16 }
0x35d8   :  { %16549 = vmatpush3.msra.mxu0 %v18815_v49  ;;  %16550 = vmatprep.mubr.msk.f32.mxu0 %vm17527_vm0, %v17526_v0 }
0x35d9   :  { %16558 = vmatprep.subr.mxu0 %v17526_v0 }
0x35db   :  { %16551 = vmatmul.mubr.f32.vlgmr.msra.gmra.mrb[114].mxu0 %v13700_v60 }
0x35dc   :  { %16560 = vmatprep.mubr.msk.f32.mxu0 %vm17527_vm0, %v17526_v0  ;;  %16559 = vmatpush3.msra.mxu0 %v14117_v29 }
0x35dd   :  { %16563 = vmatprep.subr.mxu0 %v17526_v0 }
0x369e   :  { %v13782_v25 = vpop.f32.mrb[116].mxu1 }
0x369f   :  { %v16537_v19 = vpop.f32.mrb[117].mxu1 }
0x36a2   :  { %v13930_v20 = vpop.f32.mrb[118].mxu1 }
0x36a3   :  { %v16547_v3 = vpop.f32.mrb[119].mxu1 }
0x36a6   :  { %v13706_v22 = vpop.f32.mrb[110].mxu0  ;;  %v14076_v61 = vpop.f32.mrb[120].mxu1 }
0x36a7   :  { %v13783_v55 = vadd.f32 %v13782_v25, %v13706_v22  ;;  %v16532_v2 = vpop.f32.mrb[111].mxu0  ;;  %v16557_v32 = vpop.f32.mrb[121].mxu1 }
0x36aa   :  { %v13856_v63 = vpop.f32.mrb[112].mxu0 }
0x36ab   :  { %v13857_v49 = vadd.f32 %v13856_v63, %v13783_v55  ;;  %v16542_v15 = vpop.f32.mrb[113].mxu0 }
0x36ad   :  { %v13931_v52 = vadd.f32 %v13930_v20, %v13857_v49 }
0x36ae   :  { %v14004_v7 = vpop.f32.mrb[114].mxu0 }
0x36af   :  { %v14005_v28 = vadd.f32 %v14004_v7, %v13931_v52  ;;  %v16552_v24 = vpop.f32.mrb[115].mxu0 }
0x36b1   :  { %v14077_v12 = vadd.f32 %v14076_v61, %v14005_v28 }
0x36b3   :  { %v14080_v57 = vadd.f32 %v14077_v12, %v10324_v56 }
0x36b5   :  { %17469 = vtanh.f32 %v14080_v57 }
0x36bf   :  { %v17470_v1 = vpop.eup %17469 }
0x36c0   :  { %14086 = vrot.lane.b32.xlu0 %v17470_v1, %s17532_s22  ;;  %v14082_v41 = vmul.f32 0.5, %v17470_v1 }
0x36c2   :  { %v14083_v8 = vadd.f32 0.5, %v14082_v41 }
0x36c4   :  { %v14084_v31 = vmul.f32 %v14083_v8, %v13622_v33 }
0x3732   :  { %v14087_v9 = vpop.permute.xlu0 %14086 }
0x3733   :  { %v14089_v14 = vmul.f32 %v14087_v9, %v14083_v8 }
0x3735   :  { %14091 = vrot.lane.b32.xlu1 %v14089_v14, %s17533_s23 }
0x37a7   :  { %v14092_v54 = vpop.permute.xlu1 %14091 }
0x37a8   :  { %v14094_v30 = vadd.f32 %v14092_v54, %v14084_v31 }
0x37aa   :  { %17471 = vtanh.f32 %v14094_v30 }
0x37b4   :  { %v17472_v47 = vpop.eup %17471 }
0x37b5   :  { %14097 = vrot.lane.b32.xlu0 %v17472_v47, %s17533_s23 }
0x3827   :  { %v14098_v43 = vpop.permute.xlu0 %14097 }
0x3828   :  { %v14100_v48 = vmul.f32 %v14098_v43, %v14083_v8 }
0x382a   :  { %v14101_v10 = vmax.f32 %v14100_v48, 0.0 }
0x382c   :  { %14109 = vrot.lane.b32.xlu1 %v14101_v10, %s17534_s24 }
0x389e   :  { %v14110_v5 = vpop.permute.xlu1 %14109 }
0x389f   :  { %v14111_v6 = vsel %vm76_vm2, %v14110_v5, 0 }
0x38a0   :  { %v14182_v11 = vand.u32 4294901760, %v14111_v6 }
0x38a2   :  { %v14183_v51 = vsub.f32 %v14111_v6, %v14182_v11 }
0x38a4   :  { %v14184_v37 = vand.u32 4294901760, %v14183_v51 }
0x38a6   :  { %v14185_v40 = vsub.f32 %v14183_v51, %v14184_v37 }
0x38a8   :  { %v14186_v50 = vand.u32 4294901760, %v14185_v40 }
0x38aa   :  { %16561 = vmatmul.mubr.f32.vlgmr.msra.gmra.mrb[116].mxu0 %v14186_v50 }
0x38ab   :  { %16564 = vmatpush3.msra.mxu0 %v14197_v44  ;;  %16565 = vmatprep.mubr.msk.f32.mxu0 %vm17527_vm0, %v17526_v0 }
0x38ac   :  { %16568 = vmatprep.subr.mxu0 %v17526_v0 }
0x38b2   :  { %16566 = vmatmul.mubr.f32.vlgmr.msra.gmra.mrb[116].mxu0 %v14182_v11 }
0x38b3   :  { %16569 = vmatpush3.msra.mxu0 %v14194_v4  ;;  %16570 = vmatprep.mubr.msk.f32.mxu0 %vm17527_vm0, %v17526_v0 }
0x38b4   :  { %16573 = vmatprep.subr.mxu0 %v17526_v0 }
0x38ba   :  { %16571 = vmatmul.mubr.f32.vlgmr.msra.gmra.mrb[116].mxu0 %v14183_v51 }
0x38bb   :  { %16574 = vmatpush3.msra.mxu0 %v14117_v29  ;;  %16575 = vmatprep.mubr.msk.f32.mxu0 %vm17527_vm0, %v17526_v0 }
0x38bc   :  { %16578 = vmatprep.subr.mxu0 %v17526_v0 }
0x38c2   :  { %16576 = vmatmul.mubr.f32.vlgmr.msra.gmra.mrb[116].mxu0 %v14184_v37 }
0x38c3   :  { %16579 = vmatpush3.msra.mxu0 %v14195_v45  ;;  %16580 = vmatprep.mubr.msk.f32.mxu0 %vm17527_vm0, %v17526_v0 }
0x38c4   :  { %16583 = vmatprep.subr.mxu0 %v17526_v0 }
0x38ca   :  { %16581 = vmatmul.mubr.f32.vlgmr.msra.gmra.mrb[116].mxu0 %v14182_v11 }
0x38cb   :  { %16584 = vmatpush3.msra.mxu0 %v14117_v29  ;;  %16585 = vmatprep.mubr.msk.f32.mxu0 %vm17527_vm0, %v17526_v0 }
0x38d2   :  { %16586 = vmatmul.mubr.f32.vlgmr.msra.gmra.mrb[116].mxu0 %v14182_v11 }
0x39a5   :  { %v14558_v58 = vpop.f32.mrb[116].mxu0 }
0x39a6   :  { %v17267_v59 = vadd.f32 %v14589_v46, %v14558_v58  ;;  %v16587_v62 = vpop.f32.mrb[117].mxu0 }
0x39a8   :  { %v14562_v36 = vmul.f32 0.5, %v17267_v59 }
0x39aa   :  { %17473 = vtanh.f32 %v14562_v36 }
0x39b4   :  { %v17474_v33 = vpop.eup %17473 }
0x39b5   :  { %v14564_v42 = vmul.f32 0.5, %v17474_v33 }
0x39b7   :  { %v14565_v13 = vadd.f32 0.5, %v14564_v42 }
0x39b9   :  { %14567 = vst.msk [vmem:[#allocation5] sm:$0x3] %vm14566_vm10, %v14565_v13 }
0x39ba   :  { %17508 = shalt.err (!%p17505_p12)
}
0x39bb   :  { %s17509_s5 = scalar_lea.hbm %s19173_s4, 32 }
0x39bc   :  { %p17510_p13 = scmp.ne.s32.totalorder %s19173_s4, %s17509_s5  ;;  %p17513_p0 = scmp.lt.u32.totalorder %s17509_s5, %s19173_s4 }
0x39be   :  { %p17515_p1 = pnand %p17513_p0, %p17510_p13 }
0x39c0   :  { %17518 = shalt.err (!%p17515_p1)
}
0x39c1   :  { %14577 = dma.vmem_to_hbm [thread:$0]  %s14575_s29, 32, %s19173_s4, [#allocation4]  }
0x39c2   :  { %17521 = dma.done.wait [#allocation4], 32  }
0x39c3   :  { %17522 = vsyncadd [#allocation4], 4294967264 }
0x39c4   :  { %14581 = vsyncpa [#allocation3], 1 }
0x39c5   :  { %14582 = vsyncpa [#allocation4], 1 }

</bundles_post_ra>
